<compile_context>
chip_gen: v6e
topology: v6e:2x2x1
jax: 0.10.0
libtpu: 0.0.40
codegen_flags: <defaults>
</compile_context>

<pallas_src>
import functools

import jax
import jax.numpy as jnp
from jax.experimental import pallas as pl
from jax.experimental.pallas import tpu as pltpu

EXPANSION = 4
BN_EPS = 1e-5


# ------------------------------ fused kernel -------------------------------- #

def _bottleneck_kernel(x_ref, w1_ref, s1_ref, b1_ref,
                       w2_ref, s2_ref, b2_ref,
                       w3_ref, s3_ref, b3_ref,
                       ws_ref, ss_ref, bs_ref,
                       o_ref, xp_ref, *, H, W, Ho, Wo, stride, has_sc_conv):
    cin = x_ref.shape[-1]
    planes = w1_ref.shape[1]

    x = x_ref[0]                                  # (H, W, Cin) bf16
    x2d = x.reshape(H * W, cin)

    # --- conv1 (1x1) + bn1 + relu -------------------------------------------
    o1 = jnp.dot(x2d, w1_ref[...], preferred_element_type=jnp.float32)
    o1 = jnp.maximum(o1 * s1_ref[...] + b1_ref[...], 0.0)        # (H*W, planes)

    # --- zero-pad o1 (spatial pad = 1) into VMEM scratch ----------------------
    xp_ref[...] = jnp.zeros_like(xp_ref)
    xp_ref[1:H + 1, 1:W + 1, :] = o1.reshape(H, W, planes)

    # --- conv2 (3x3, stride) as ONE matmul with K = 9*planes ------------------
    span_h = (Ho - 1) * stride + 1
    span_w = (Wo - 1) * stride + 1
    taps = []
    for kh in range(3):                            # static unroll over taps
        for kw in range(3):
            t = xp_ref[kh:kh + span_h, kw:kw + span_w, :]
            if stride > 1:                         # not exercised in the demo
                t = t[::stride, ::stride, :]
            taps.append(t.reshape(Ho * Wo, planes))
    im2col = jnp.concatenate(taps, axis=-1).astype(jnp.bfloat16)  # (M, 9*planes)
    o2 = jnp.dot(im2col, w2_ref[...], preferred_element_type=jnp.float32)
    o2 = jnp.maximum(o2 * s2_ref[...] + b2_ref[...], 0.0)

    # --- conv3 (1x1) + bn3 ----------------------------------------------------
    o3 = jnp.dot(o2.astype(jnp.bfloat16), w3_ref[...],
                 preferred_element_type=jnp.float32)
    o3 = o3 * s3_ref[...] + b3_ref[...]

    # --- shortcut -------------------------------------------------------------
    if stride > 1:
        xs = x[::stride, ::stride, :].reshape(Ho * Wo, cin)
    else:
        xs = x2d
    if has_sc_conv:
        sc = jnp.dot(xs, ws_ref[...], preferred_element_type=jnp.float32)
        sc = sc * ss_ref[...] + bs_ref[...]
    else:
        sc = xs.astype(jnp.float32)

    # --- residual add + relu --------------------------------------------------
    o_ref[0] = jnp.maximum(o3 + sc, 0.0).astype(o_ref.dtype)


# ------------------------------ parameters ---------------------------------- #

def init_params(key, in_planes, planes):
    out_planes = EXPANSION * planes
    ks = jax.random.split(key, 8)

    def conv_w(k, shape, fan_in):
        return jax.random.normal(k, shape, jnp.float32) * (2.0 / fan_in) ** 0.5

    def bn_fold(k, c):
        kg, kb, km, kv = jax.random.split(k, 4)
        gamma = 1.0 + 0.1 * jax.random.normal(kg, (c,), jnp.float32)
        beta = 0.1 * jax.random.normal(kb, (c,), jnp.float32)
        mean = 0.1 * jax.random.normal(km, (c,), jnp.float32)
        var = jax.random.uniform(kv, (c,), jnp.float32, minval=0.5, maxval=1.5)
        scale = gamma / jnp.sqrt(var + BN_EPS)
        bias = beta - mean * scale
        return scale.reshape(1, c), bias.reshape(1, c)

    p = {}
    # conv1: torch (planes, in_planes, 1, 1) -> (in_planes, planes)
    p['w1'] = conv_w(ks[0], (in_planes, planes), in_planes)
    p['s1'], p['b1'] = bn_fold(ks[1], planes)
    # conv2: torch (planes, planes, 3, 3) -> HWIO (3, 3, planes, planes)
    p['w2'] = conv_w(ks[2], (3, 3, planes, planes), 9 * planes)
    p['s2'], p['b2'] = bn_fold(ks[3], planes)
    # conv3: torch (4*planes, planes, 1, 1) -> (planes, 4*planes)
    p['w3'] = conv_w(ks[4], (planes, out_planes), planes)
    p['s3'], p['b3'] = bn_fold(ks[5], out_planes)
    # shortcut conv: torch (4*planes, in_planes, 1, 1) -> (in_planes, 4*planes)
    p['ws'] = conv_w(ks[6], (in_planes, out_planes), in_planes)
    p['ss'], p['bs'] = bn_fold(ks[7], out_planes)
    return p


# ------------------------------ forward pass -------------------------------- #

def bottleneck_forward(x_nchw, p, stride=1):
    N, cin, H, W = x_nchw.shape
    planes = p['w1'].shape[1]
    out_planes = p['w3'].shape[1]
    Ho = (H - 1) // stride + 1
    Wo = (W - 1) // stride + 1
    has_sc = (stride != 1) or (cin != out_planes)

    x = jnp.transpose(x_nchw, (0, 2, 3, 1)).astype(jnp.bfloat16)   # NHWC, bf16

    w1 = p['w1'].astype(jnp.bfloat16)
    w2 = p['w2'].reshape(9 * planes, planes).astype(jnp.bfloat16)  # taps folded into K
    w3 = p['w3'].astype(jnp.bfloat16)
    ws = p['ws'].astype(jnp.bfloat16)

    kernel = functools.partial(_bottleneck_kernel, H=H, W=W, Ho=Ho, Wo=Wo,
                               stride=stride, has_sc_conv=has_sc)

    def full(shape):
        # Whole-array block, constant index_map -> stays resident across grid.
        return pl.BlockSpec(shape, lambda n, _n=len(shape): (0,) * _n)

    out = pl.pallas_call(
        kernel,
        out_shape=jax.ShapeDtypeStruct((N, Ho * Wo, out_planes), jnp.float32),
        grid=(N,),
        in_specs=[
            pl.BlockSpec((1, H, W, cin), lambda n: (n, 0, 0, 0)),
            full(w1.shape), full(p['s1'].shape), full(p['b1'].shape),
            full(w2.shape), full(p['s2'].shape), full(p['b2'].shape),
            full(w3.shape), full(p['s3'].shape), full(p['b3'].shape),
            full(ws.shape), full(p['ss'].shape), full(p['bs'].shape),
        ],
        out_specs=pl.BlockSpec((1, Ho * Wo, out_planes), lambda n: (n, 0, 0)),
        scratch_shapes=[pltpu.VMEM((H + 2, W + 2, planes), jnp.float32)],
        compiler_params=pltpu.CompilerParams(
            dimension_semantics=("parallel",),
            vmem_limit_bytes=32 * 1024 * 1024),
    )(x, w1, p['s1'], p['b1'], w2, p['s2'], p['b2'],
      w3, p['s3'], p['b3'], ws, p['ss'], p['bs'])

    out = out.reshape(N, Ho, Wo, out_planes)
    return jnp.transpose(out, (0, 3, 1, 2))                        # NCHW


# ------------------------------- reference ---------------------------------- #
# Pure-JAX reference with matched bf16-input / f32-accumulate matmul precision.

def ref_forward(x_nchw, p, stride=1):
    xb = jnp.transpose(x_nchw, (0, 2, 3, 1)).astype(jnp.bfloat16)

    def bn(y, s, b):
        return y * s.reshape(1, 1, 1, -1) + b.reshape(1, 1, 1, -1)

    w1 = p['w1'].astype(jnp.bfloat16)
    w2 = p['w2'].astype(jnp.bfloat16)
    w3 = p['w3'].astype(jnp.bfloat16)
    ws = p['ws'].astype(jnp.bfloat16)

    o = jnp.einsum('nhwc,cd->nhwd', xb, w1, preferred_element_type=jnp.float32)
    o = jax.nn.relu(bn(o, p['s1'], p['b1']))
    o = jax.lax.conv_general_dilated(
        o.astype(jnp.bfloat16), w2, (stride, stride), ((1, 1), (1, 1)),
        dimension_numbers=('NHWC', 'HWIO', 'NHWC'),
        preferred_element_type=jnp.float32)
    o = jax.nn.relu(bn(o, p['s2'], p['b2']))
    o = bn(jnp.einsum('nhwc,cd->nhwd', o.astype(jnp.bfloat16), w3,
                      preferred_element_type=jnp.float32), p['s3'], p['b3'])
    out_planes = p['w3'].shape[1]
    if stride != 1 or xb.shape[-1] != out_planes:
        xs = xb[:, ::stride, ::stride, :]
        sc = bn(jnp.einsum('nhwc,cd->nhwd', xs, ws,
                           preferred_element_type=jnp.float32), p['ss'], p['bs'])
    else:
        sc = xb.astype(jnp.float32)
    return jnp.transpose(jax.nn.relu(o + sc), (0, 3, 1, 2))


# --------------------------------- main -------------------------------------- #

if __name__ == "__main__":
    key = jax.random.PRNGKey(0)
    kx, kp = jax.random.split(key)

    # Small, TPU-friendly shapes: Cout = 4*planes = 128 keeps stores lane-dense.
    N, in_planes, H, W = 2, 64, 16, 16
    planes = 32
    stride = 1

    x = jax.random.normal(kx, (N, in_planes, H, W), jnp.float32)
    params = init_params(kp, in_planes, planes)

    out = jax.block_until_ready(bottleneck_forward(x, params, stride=stride))
    ref = jax.block_until_ready(ref_forward(x, params, stride=stride))

    assert out.shape == (N, EXPANSION * planes, H, W), out.shape
    assert bool(jnp.all(jnp.isfinite(out)))
    max_err = float(jnp.max(jnp.abs(out - ref)))
    assert bool(jnp.allclose(out, ref, atol=1e-2, rtol=1e-2)), max_err
    print("KERNEL_OK")
</pallas_src>

<mosaic_0001>
module attributes {stable_mosaic.version = 11 : i64} {
  func.func @_bottleneck_kernel(%arg0: i32, %arg1: memref<1x16x16x64xbf16, #tpu.memory_space<vmem>>, %arg2: memref<64x32xbf16, #tpu.memory_space<vmem>>, %arg3: memref<1x32xf32, #tpu.memory_space<vmem>>, %arg4: memref<1x32xf32, #tpu.memory_space<vmem>>, %arg5: memref<288x32xbf16, #tpu.memory_space<vmem>>, %arg6: memref<1x32xf32, #tpu.memory_space<vmem>>, %arg7: memref<1x32xf32, #tpu.memory_space<vmem>>, %arg8: memref<32x128xbf16, #tpu.memory_space<vmem>>, %arg9: memref<1x128xf32, #tpu.memory_space<vmem>>, %arg10: memref<1x128xf32, #tpu.memory_space<vmem>>, %arg11: memref<64x128xbf16, #tpu.memory_space<vmem>>, %arg12: memref<1x128xf32, #tpu.memory_space<vmem>>, %arg13: memref<1x128xf32, #tpu.memory_space<vmem>>, %arg14: memref<1x256x128xf32, #tpu.memory_space<vmem>>, %arg15: memref<18x18x32xf32, #tpu.memory_space<vmem>>) attributes {dimension_semantics = [#tpu.dimension_semantics<parallel>], iteration_bounds = array<i64: 2>, scalar_prefetch = 0 : i64, scratch_operands = 1 : i64, tpu.core_type = #tpu.core_type<tc>, window_params = [{transform_indices = @transform_0, window_bounds = array<i64: 1, 16, 16, 64>}, {pipeline_mode = #tpu.pipeline_mode<synchronous>, transform_indices = @transform_1, window_bounds = array<i64: 64, 32>}, {pipeline_mode = #tpu.pipeline_mode<synchronous>, transform_indices = @transform_2, window_bounds = array<i64: 1, 32>}, {pipeline_mode = #tpu.pipeline_mode<synchronous>, transform_indices = @transform_3, window_bounds = array<i64: 1, 32>}, {pipeline_mode = #tpu.pipeline_mode<synchronous>, transform_indices = @transform_4, window_bounds = array<i64: 288, 32>}, {pipeline_mode = #tpu.pipeline_mode<synchronous>, transform_indices = @transform_5, window_bounds = array<i64: 1, 32>}, {pipeline_mode = #tpu.pipeline_mode<synchronous>, transform_indices = @transform_6, window_bounds = array<i64: 1, 32>}, {pipeline_mode = #tpu.pipeline_mode<synchronous>, transform_indices = @transform_7, window_bounds = array<i64: 32, 128>}, {pipeline_mode = #tpu.pipeline_mode<synchronous>, transform_indices = @transform_8, window_bounds = array<i64: 1, 128>}, {pipeline_mode = #tpu.pipeline_mode<synchronous>, transform_indices = @transform_9, window_bounds = array<i64: 1, 128>}, {pipeline_mode = #tpu.pipeline_mode<synchronous>, transform_indices = @transform_10, window_bounds = array<i64: 64, 128>}, {pipeline_mode = #tpu.pipeline_mode<synchronous>, transform_indices = @transform_11, window_bounds = array<i64: 1, 128>}, {pipeline_mode = #tpu.pipeline_mode<synchronous>, transform_indices = @transform_12, window_bounds = array<i64: 1, 128>}, {transform_indices = @transform_13, window_bounds = array<i64: 1, 256, 128>}]} {
    %c0 = arith.constant 0 : index
    %c0_0 = arith.constant 0 : index
    %c0_1 = arith.constant 0 : index
    %c0_2 = arith.constant 0 : index
    %0 = vector.load %arg1[%c0, %c0_0, %c0_1, %c0_2] : memref<1x16x16x64xbf16, #tpu.memory_space<vmem>>, vector<1x16x16x64xbf16>
    %1 = vector.shape_cast %0 : vector<1x16x16x64xbf16> to vector<16x16x64xbf16>
    %2 = vector.shape_cast %1 : vector<16x16x64xbf16> to vector<256x64xbf16>
    %c0_3 = arith.constant 0 : index
    %c0_4 = arith.constant 0 : index
    %3 = vector.load %arg2[%c0_3, %c0_4] : memref<64x32xbf16, #tpu.memory_space<vmem>>, vector<64x32xbf16>
    %cst = arith.constant dense<0.000000e+00> : vector<256x32xf32>
    %4 = tpu.matmul %2, %3, %cst {dimension_numbers = #tpu.dot_dimension_numbers<[1], [0], [0], [1], [0, 0, 1, 1], [], []>} : vector<256x64xbf16>, vector<64x32xbf16>, vector<256x32xf32> -> vector<256x32xf32>
    %c0_5 = arith.constant 0 : index
    %c0_6 = arith.constant 0 : index
    %5 = vector.load %arg3[%c0_5, %c0_6] : memref<1x32xf32, #tpu.memory_space<vmem>>, vector<1x32xf32>
    %6 = vector.broadcast %5 : vector<1x32xf32> to vector<256x32xf32>
    %7 = arith.mulf %4, %6 : vector<256x32xf32>
    %c0_7 = arith.constant 0 : index
    %c0_8 = arith.constant 0 : index
    %8 = vector.load %arg4[%c0_7, %c0_8] : memref<1x32xf32, #tpu.memory_space<vmem>>, vector<1x32xf32>
    %9 = vector.broadcast %8 : vector<1x32xf32> to vector<256x32xf32>
    %10 = arith.addf %7, %9 : vector<256x32xf32>
    %cst_9 = arith.constant 0.000000e+00 : f32
    %11 = vector.broadcast %cst_9 : f32 to vector<256x32xf32>
    %12 = arith.maximumf %10, %11 : vector<256x32xf32>
    %cst_10 = arith.constant 0.000000e+00 : f32
    %13 = vector.broadcast %cst_10 : f32 to vector<18x18x32xf32>
    %c0_11 = arith.constant 0 : index
    %c0_12 = arith.constant 0 : index
    %c0_13 = arith.constant 0 : index
    %14 = vector.load %arg15[%c0_11, %c0_12, %c0_13] : memref<18x18x32xf32, #tpu.memory_space<vmem>>, vector<18x18x32xf32>
    tpu.vector_store %arg15[%c0_11, %c0_12, %c0_13], %13 {strides = array<i32>} : memref<18x18x32xf32, #tpu.memory_space<vmem>>, vector<18x18x32xf32>,
    %15 = vector.shape_cast %12 : vector<256x32xf32> to vector<16x16x32xf32>
    %c1 = arith.constant 1 : index
    %c1_14 = arith.constant 1 : index
    %c0_15 = arith.constant 0 : index
    %16 = vector.load %arg15[%c1, %c1_14, %c0_15] : memref<18x18x32xf32, #tpu.memory_space<vmem>>, vector<16x16x32xf32>
    tpu.vector_store %arg15[%c1, %c1_14, %c0_15], %15 {strides = array<i32>} : memref<18x18x32xf32, #tpu.memory_space<vmem>>, vector<16x16x32xf32>,
    %c0_16 = arith.constant 0 : index
    %c0_17 = arith.constant 0 : index
    %c0_18 = arith.constant 0 : index
    %17 = vector.load %arg15[%c0_16, %c0_17, %c0_18] : memref<18x18x32xf32, #tpu.memory_space<vmem>>, vector<16x16x32xf32>
    %18 = vector.shape_cast %17 : vector<16x16x32xf32> to vector<256x32xf32>
    %c0_19 = arith.constant 0 : index
    %c1_20 = arith.constant 1 : index
    %c0_21 = arith.constant 0 : index
    %19 = vector.load %arg15[%c0_19, %c1_20, %c0_21] : memref<18x18x32xf32, #tpu.memory_space<vmem>>, vector<16x16x32xf32>
    %20 = vector.shape_cast %19 : vector<16x16x32xf32> to vector<256x32xf32>
    %c0_22 = arith.constant 0 : index
    %c2 = arith.constant 2 : index
    %c0_23 = arith.constant 0 : index
    %21 = vector.load %arg15[%c0_22, %c2, %c0_23] : memref<18x18x32xf32, #tpu.memory_space<vmem>>, vector<16x16x32xf32>
    %22 = vector.shape_cast %21 : vector<16x16x32xf32> to vector<256x32xf32>
    %c1_24 = arith.constant 1 : index
    %c0_25 = arith.constant 0 : index
    %c0_26 = arith.constant 0 : index
    %23 = vector.load %arg15[%c1_24, %c0_25, %c0_26] : memref<18x18x32xf32, #tpu.memory_space<vmem>>, vector<16x16x32xf32>
    %24 = vector.shape_cast %23 : vector<16x16x32xf32> to vector<256x32xf32>
    %c1_27 = arith.constant 1 : index
    %c1_28 = arith.constant 1 : index
    %c0_29 = arith.constant 0 : index
    %25 = vector.load %arg15[%c1_27, %c1_28, %c0_29] : memref<18x18x32xf32, #tpu.memory_space<vmem>>, vector<16x16x32xf32>
    %26 = vector.shape_cast %25 : vector<16x16x32xf32> to vector<256x32xf32>
    %c1_30 = arith.constant 1 : index
    %c2_31 = arith.constant 2 : index
    %c0_32 = arith.constant 0 : index
    %27 = vector.load %arg15[%c1_30, %c2_31, %c0_32] : memref<18x18x32xf32, #tpu.memory_space<vmem>>, vector<16x16x32xf32>
    %28 = vector.shape_cast %27 : vector<16x16x32xf32> to vector<256x32xf32>
    %c2_33 = arith.constant 2 : index
    %c0_34 = arith.constant 0 : index
    %c0_35 = arith.constant 0 : index
    %29 = vector.load %arg15[%c2_33, %c0_34, %c0_35] : memref<18x18x32xf32, #tpu.memory_space<vmem>>, vector<16x16x32xf32>
    %30 = vector.shape_cast %29 : vector<16x16x32xf32> to vector<256x32xf32>
    %c2_36 = arith.constant 2 : index
    %c1_37 = arith.constant 1 : index
    %c0_38 = arith.constant 0 : index
    %31 = vector.load %arg15[%c2_36, %c1_37, %c0_38] : memref<18x18x32xf32, #tpu.memory_space<vmem>>, vector<16x16x32xf32>
    %32 = vector.shape_cast %31 : vector<16x16x32xf32> to vector<256x32xf32>
    %c2_39 = arith.constant 2 : index
    %c2_40 = arith.constant 2 : index
    %c0_41 = arith.constant 0 : index
    %33 = vector.load %arg15[%c2_39, %c2_40, %c0_41] : memref<18x18x32xf32, #tpu.memory_space<vmem>>, vector<16x16x32xf32>
    %34 = vector.shape_cast %33 : vector<16x16x32xf32> to vector<256x32xf32>
    %35 = tpu.concatenate %18, %20, %22, %24, %26, %28, %30, %32, %34 in 1 : vector<256x32xf32>, vector<256x32xf32>, vector<256x32xf32>, vector<256x32xf32>, vector<256x32xf32>, vector<256x32xf32>, vector<256x32xf32>, vector<256x32xf32>, vector<256x32xf32> -> vector<256x288xf32>
    %36 = arith.truncf %35 : vector<256x288xf32> to vector<256x288xbf16>
    %c0_42 = arith.constant 0 : index
    %c0_43 = arith.constant 0 : index
    %37 = vector.load %arg5[%c0_42, %c0_43] : memref<288x32xbf16, #tpu.memory_space<vmem>>, vector<288x32xbf16>
    %cst_44 = arith.constant dense<0.000000e+00> : vector<256x32xf32>
    %38 = tpu.matmul %36, %37, %cst_44 {dimension_numbers = #tpu.dot_dimension_numbers<[1], [0], [0], [1], [0, 0, 1, 1], [], []>} : vector<256x288xbf16>, vector<288x32xbf16>, vector<256x32xf32> -> vector<256x32xf32>
    %c0_45 = arith.constant 0 : index
    %c0_46 = arith.constant 0 : index
    %39 = vector.load %arg6[%c0_45, %c0_46] : memref<1x32xf32, #tpu.memory_space<vmem>>, vector<1x32xf32>
    %40 = vector.broadcast %39 : vector<1x32xf32> to vector<256x32xf32>
    %41 = arith.mulf %38, %40 : vector<256x32xf32>
    %c0_47 = arith.constant 0 : index
    %c0_48 = arith.constant 0 : index
    %42 = vector.load %arg7[%c0_47, %c0_48] : memref<1x32xf32, #tpu.memory_space<vmem>>, vector<1x32xf32>
    %43 = vector.broadcast %42 : vector<1x32xf32> to vector<256x32xf32>
    %44 = arith.addf %41, %43 : vector<256x32xf32>
    %cst_49 = arith.constant 0.000000e+00 : f32
    %45 = vector.broadcast %cst_49 : f32 to vector<256x32xf32>
    %46 = arith.maximumf %44, %45 : vector<256x32xf32>
    %47 = arith.truncf %46 : vector<256x32xf32> to vector<256x32xbf16>
    %c0_50 = arith.constant 0 : index
    %c0_51 = arith.constant 0 : index
    %48 = vector.load %arg8[%c0_50, %c0_51] : memref<32x128xbf16, #tpu.memory_space<vmem>>, vector<32x128xbf16>
    %cst_52 = arith.constant dense<0.000000e+00> : vector<256x128xf32>
    %49 = tpu.matmul %47, %48, %cst_52 {dimension_numbers = #tpu.dot_dimension_numbers<[1], [0], [0], [1], [0, 0, 1, 1], [], []>} : vector<256x32xbf16>, vector<32x128xbf16>, vector<256x128xf32> -> vector<256x128xf32>
    %c0_53 = arith.constant 0 : index
    %c0_54 = arith.constant 0 : index
    %50 = vector.load %arg9[%c0_53, %c0_54] : memref<1x128xf32, #tpu.memory_space<vmem>>, vector<1x128xf32>
    %51 = vector.broadcast %50 : vector<1x128xf32> to vector<256x128xf32>
    %52 = arith.mulf %49, %51 : vector<256x128xf32>
    %c0_55 = arith.constant 0 : index
    %c0_56 = arith.constant 0 : index
    %53 = vector.load %arg10[%c0_55, %c0_56] : memref<1x128xf32, #tpu.memory_space<vmem>>, vector<1x128xf32>
    %54 = vector.broadcast %53 : vector<1x128xf32> to vector<256x128xf32>
    %55 = arith.addf %52, %54 : vector<256x128xf32>
    %c0_57 = arith.constant 0 : index
    %c0_58 = arith.constant 0 : index
    %56 = vector.load %arg11[%c0_57, %c0_58] : memref<64x128xbf16, #tpu.memory_space<vmem>>, vector<64x128xbf16>
    %cst_59 = arith.constant dense<0.000000e+00> : vector<256x128xf32>
    %57 = tpu.matmul %2, %56, %cst_59 {dimension_numbers = #tpu.dot_dimension_numbers<[1], [0], [0], [1], [0, 0, 1, 1], [], []>} : vector<256x64xbf16>, vector<64x128xbf16>, vector<256x128xf32> -> vector<256x128xf32>
    %c0_60 = arith.constant 0 : index
    %c0_61 = arith.constant 0 : index
    %58 = vector.load %arg12[%c0_60, %c0_61] : memref<1x128xf32, #tpu.memory_space<vmem>>, vector<1x128xf32>
    %59 = vector.broadcast %58 : vector<1x128xf32> to vector<256x128xf32>
    %60 = arith.mulf %57, %59 : vector<256x128xf32>
    %c0_62 = arith.constant 0 : index
    %c0_63 = arith.constant 0 : index
    %61 = vector.load %arg13[%c0_62, %c0_63] : memref<1x128xf32, #tpu.memory_space<vmem>>, vector<1x128xf32>
    %62 = vector.broadcast %61 : vector<1x128xf32> to vector<256x128xf32>
    %63 = arith.addf %60, %62 : vector<256x128xf32>
    %64 = arith.addf %55, %63 : vector<256x128xf32>
    %cst_64 = arith.constant 0.000000e+00 : f32
    %65 = vector.broadcast %cst_64 : f32 to vector<256x128xf32>
    %66 = arith.maximumf %64, %65 : vector<256x128xf32>
    %c0_65 = arith.constant 0 : index
    %c0_66 = arith.constant 0 : index
    %c0_67 = arith.constant 0 : index
    %67 = vector.load %arg14[%c0_65, %c0_66, %c0_67] : memref<1x256x128xf32, #tpu.memory_space<vmem>>, vector<1x256x128xf32>
    %68 = vector.shape_cast %67 : vector<1x256x128xf32> to vector<256x128xf32>
    %69 = vector.shape_cast %66 : vector<256x128xf32> to vector<1x256x128xf32>
    tpu.vector_store %arg14[%c0_65, %c0_66, %c0_67], %69 {strides = array<i32>} : memref<1x256x128xf32, #tpu.memory_space<vmem>>, vector<1x256x128xf32>,
    return
  }
  func.func @transform_0(%arg0: i32) -> (i32, i32, i32, i32) {
    %c0_i32 = arith.constant 0 : i32
    %c0_i32_0 = arith.constant 0 : i32
    %c0_i32_1 = arith.constant 0 : i32
    %c0_i32_2 = arith.constant 0 : i32
    return %arg0, %c0_i32, %c0_i32_0, %c0_i32_1 : i32, i32, i32, i32
  }
  func.func @transform_1(%arg0: i32) -> (i32, i32) {
    %c0_i32 = arith.constant 0 : i32
    %c0_i32_0 = arith.constant 0 : i32
    %c0_i32_1 = arith.constant 0 : i32
    return %c0_i32, %c0_i32_0 : i32, i32
  }
  func.func @transform_2(%arg0: i32) -> (i32, i32) {
    %c0_i32 = arith.constant 0 : i32
    %c0_i32_0 = arith.constant 0 : i32
    %c0_i32_1 = arith.constant 0 : i32
    return %c0_i32, %c0_i32_0 : i32, i32
  }
  func.func @transform_3(%arg0: i32) -> (i32, i32) {
    %c0_i32 = arith.constant 0 : i32
    %c0_i32_0 = arith.constant 0 : i32
    %c0_i32_1 = arith.constant 0 : i32
    return %c0_i32, %c0_i32_0 : i32, i32
  }
  func.func @transform_4(%arg0: i32) -> (i32, i32) {
    %c0_i32 = arith.constant 0 : i32
    %c0_i32_0 = arith.constant 0 : i32
    %c0_i32_1 = arith.constant 0 : i32
    return %c0_i32, %c0_i32_0 : i32, i32
  }
  func.func @transform_5(%arg0: i32) -> (i32, i32) {
    %c0_i32 = arith.constant 0 : i32
    %c0_i32_0 = arith.constant 0 : i32
    %c0_i32_1 = arith.constant 0 : i32
    return %c0_i32, %c0_i32_0 : i32, i32
  }
  func.func @transform_6(%arg0: i32) -> (i32, i32) {
    %c0_i32 = arith.constant 0 : i32
    %c0_i32_0 = arith.constant 0 : i32
    %c0_i32_1 = arith.constant 0 : i32
    return %c0_i32, %c0_i32_0 : i32, i32
  }
  func.func @transform_7(%arg0: i32) -> (i32, i32) {
    %c0_i32 = arith.constant 0 : i32
    %c0_i32_0 = arith.constant 0 : i32
    %c0_i32_1 = arith.constant 0 : i32
    return %c0_i32, %c0_i32_0 : i32, i32
  }
  func.func @transform_8(%arg0: i32) -> (i32, i32) {
    %c0_i32 = arith.constant 0 : i32
    %c0_i32_0 = arith.constant 0 : i32
    %c0_i32_1 = arith.constant 0 : i32
    return %c0_i32, %c0_i32_0 : i32, i32
  }
  func.func @transform_9(%arg0: i32) -> (i32, i32) {
    %c0_i32 = arith.constant 0 : i32
    %c0_i32_0 = arith.constant 0 : i32
    %c0_i32_1 = arith.constant 0 : i32
    return %c0_i32, %c0_i32_0 : i32, i32
  }
  func.func @transform_10(%arg0: i32) -> (i32, i32) {
    %c0_i32 = arith.constant 0 : i32
    %c0_i32_0 = arith.constant 0 : i32
    %c0_i32_1 = arith.constant 0 : i32
    return %c0_i32, %c0_i32_0 : i32, i32
  }
  func.func @transform_11(%arg0: i32) -> (i32, i32) {
    %c0_i32 = arith.constant 0 : i32
    %c0_i32_0 = arith.constant 0 : i32
    %c0_i32_1 = arith.constant 0 : i32
    return %c0_i32, %c0_i32_0 : i32, i32
  }
  func.func @transform_12(%arg0: i32) -> (i32, i32) {
    %c0_i32 = arith.constant 0 : i32
    %c0_i32_0 = arith.constant 0 : i32
    %c0_i32_1 = arith.constant 0 : i32
    return %c0_i32, %c0_i32_0 : i32, i32
  }
  func.func @transform_13(%arg0: i32) -> (i32, i32, i32) {
    %c0_i32 = arith.constant 0 : i32
    %c0_i32_0 = arith.constant 0 : i32
    %c0_i32_1 = arith.constant 0 : i32
    return %arg0, %c0_i32, %c0_i32_0 : i32, i32, i32
  }
}

</mosaic_0001>

<bundles_post_ra>
// kernel: tpu_custom_call.1
= control target key start
LH: loop header
LB: loop body
LE: loop exit
PB: predicated region body
PF: predicated region fallthrough
CT: control target
= control target key end

     0   :  { %s6383_s0 = inlined_call_operand.hbm [shape: bf16[2,16,16,64], index: 0, kind: input, shape index: {}]   ;;  %s6384_s1 = inlined_call_operand.vmem [shape: bf16[64,32], index: 1, kind: input, shape index: {}]   ;;  %s6385_s2 = inlined_call_operand.vmem [shape: f32[1,32], index: 2, kind: input, shape index: {}]   ;;  %s6386_s3 = inlined_call_operand.vmem [shape: f32[1,32], index: 3, kind: input, shape index: {}]   ;;  %s6387_s4 = inlined_call_operand.vmem [shape: bf16[288,32], index: 4, kind: input, shape index: {}]   ;;  %s6388_s5 = inlined_call_operand.vmem [shape: f32[1,32], index: 5, kind: input, shape index: {}]   ;;  %s6389_s6 = inlined_call_operand.vmem [shape: f32[1,32], index: 6, kind: input, shape index: {}]   ;;  %s6390_s7 = inlined_call_operand.vmem [shape: bf16[32,128], index: 7, kind: input, shape index: {}]   ;;  %s6391_s8 = inlined_call_operand.vmem [shape: f32[1,128], index: 8, kind: input, shape index: {}]   ;;  %s6392_s9 = inlined_call_operand.vmem [shape: f32[1,128], index: 9, kind: input, shape index: {}]   ;;  %s6393_s10 = inlined_call_operand.vmem [shape: bf16[64,128], index: 10, kind: input, shape index: {}]   ;;  %s6394_s11 = inlined_call_operand.vmem [shape: f32[1,128], index: 11, kind: input, shape index: {}]   ;;  %s6395_s12 = inlined_call_operand.vmem [shape: f32[1,128], index: 12, kind: input, shape index: {}]   ;;  %s6396_s13 = inlined_call_operand.hbm [shape: f32[2,256,128], index: 13, kind: output, shape index: {}]  }
   0x1   :  { %6405 = sst [smem:[#allocation14_spill]] %s6396_s13 }
   0x2   :  { %18 = vsyncpa [#allocation4], 0 }
   0x3   :  { %20 = vsyncpa [#allocation4 + $0x1], 0 }
   0x4   :  { %21 = vsyncpa [#allocation5], 0 }
   0x5   :  { %23 = vsyncpa [#allocation5 + $0x1], 0  ;;  %s4964_s25 = smov 0   ;;  %s4966_s26 = smov 0  }
   0x6   :  { %s4968_s27 = smov 0   ;;  %s4970_s28 = smov 0  }
   0x7 LB: > { %6406 = sst [smem:[#allocation9_spill]] %s4870_s25  ;;  %s4985_s29 = sadd.s32 4294967295, %s4882_s28   ;;  %s4882_s28 = sphi %s4970_s28, %s6426_s28   ;;  %s4878_s27 = sphi %s4968_s27, %s6428_s27   ;;  %s4874_s26 = sphi %s4966_s26, %s6430_s26   ;;  %s4870_s25 = sphi %s4964_s25, %s6429_s25  }
   0x8   : > { %6407 = sst [smem:[#allocation10_spill]] %s4878_s27  ;;  %s3708_s30 = sadd.s32 4294967294, %s4882_s28  }
   0x9   : > { %s4989_s14 = sadd.s32 1, %s4882_s28   ;;  %s36_s15 = sadd.s32 1, %s4878_s27 }
   0xa   : > { %6408 = sst [smem:[#allocation11_spill]] %s4989_s14  ;;  %s33_s16 = ssub.s32 %s4882_s28, %s4989_s14 }
   0xb   : > { %p43_p0 = scmp.ne.s32.totalorder %s4878_s27, %s4874_s26  ;;  %p34_p1 = scmp.eq.s32.totalorder %s33_s16, 0 }
   0xc   : > { %p44_p2 = scmp.eq.s32.totalorder %s4882_s28, 0  ;;  %p49_p3 = scmp.ne.s32.totalorder %s4874_s26, %s4870_s25 }
   0xd   : > { %p50_p4 = scmp.eq.s32.totalorder %s4985_s29, 0  ;;  %p325_p7 = scmp.eq.s32.totalorder %s4985_s29, 1 }
   0xe   : > { %s5001_s17 = scalar_select %p34_p1, %s4878_s27, %s36_s15  }
   0xf   : > { %p5003_p5 = por %p44_p2, %p43_p0  ;;  %p5007_p6 = por %p50_p4, %p49_p3 }
  0x10   : > { %6409 = sst [smem:[#allocation12_spill]] %s5001_s17  ;;  %p331_p8 = scmp.eq.s32.totalorder %s3708_s30, 1 }
  0x11   : > { %s6411_s19 = scalar_select %p5007_p6, 1, 0 }
  0x12   : > { %p4208_p10 = scmp.lt.s32.totalorder %s4882_s28, 2  ;;  %p5014_p11 = por %p325_p7, %p43_p0 }
  0x13   : > { %p5018_p12 = por %p331_p8, %p49_p3  ;;  %s387_s22 = sand.u32 1, %s4878_s27  }
  0x14   : > { %s6412_s20 = scalar_select %p5014_p11, 1, 0 }
  0x15   : > { %s6413_s21 = scalar_select %p5018_p12, 1, 0 }
  0x16   : > { %s3838_s23 = sshll.u32 %s4882_s28, 11  ;;  %s3711_s24 = sshll.u32 %s387_s22, 7 }
  0x17   : > { %6414 = sst [smem:[#allocation13_spill]] %s6413_s21  ;;  %s5027_s17 = scalar_lea.hbm %s6383_s0, %s3838_s23 }
  0x18   : > { %s391_s30 = scalar_lea.vmem [#allocation3], %s3711_s24  ;;  %p5031_p13 = pnand %p4208_p10, %p5003_p5 }
  0x19   : > { %s398_s14 = sshll.u32 %s391_s30, 4  ;;  %s5037_s27 = scalar_lea.sflag [#allocation4], %s387_s22  ;;  %s5035_s14 = int_to_ptr.vmem [resolvable:$true] %s398_s14 }
  0x1a   : > { %s4790_s21 = scalar_lea.hbm %s5027_s17, 2048  ;;  %p4792_p1 = pneg %p5031_p13 }
  0x1b   : > { %p4791_p0 = scmp.ne.s32.totalorder %s5027_s17, %s4790_s21  ;;  %s4795_s24 = scalar_lea.hbm %s6383_s0, 4096 }
  0x1c   : > { %p4796_p4 = scmp.lt.s32.totalorder %s5027_s17, %s6383_s0  ;;  %p4797_p5 = scmp.lt.s32.totalorder %s4795_s24, %s4790_s21 }
  0x1d   : > { %p4793_p2 = pnand %p4792_p1, %p4791_p0 }
  0x1e   : > { %p4798_p7 = por %p4797_p5, %p4796_p4 }
  0x1f   : > { %p4794_p3 = pneg %p4793_p2 }
  0x21   : > { %p4799_p8 = pnand %p4798_p7, %p4794_p3 }
  0x23   : > { %4802 = shalt.err (!%p4799_p8)
}
  0x24   : > { %s4803_s22 = scalar_lea.vmem %s5035_s14, 2048  ;;  %s4884_s30 = smov [#allocation3]  }
  0x25   : > { %p4804_p10 = scmp.ne.s32.totalorder %s5035_s14, %s4803_s22  ;;  %s4808_s13 = sshll.u32 %s4884_s30, 4  ;;  %s4809_s13 = int_to_ptr.vmem [resolvable:$false] %s4808_s13 }
  0x26   : > { %s4810_s23 = scalar_lea.vmem %s4809_s13, 4096  ;;  %p4811_p2 = scmp.lt.s32.totalorder %s5035_s14, %s4809_s13 }
  0x27   : > { %p4806_p9 = pnand %p4804_p10, %p4792_p1  ;;  %p4812_p12 = scmp.lt.s32.totalorder %s4810_s23, %s4803_s22 }
  0x29   : > { %p4807_p0 = pneg %p4806_p9  ;;  %p4813_p11 = por %p4812_p12, %p4811_p2 }
  0x2b   : > { %p4814_p6 = pnand %p4813_p11, %p4807_p0 }
  0x2d   : > { %4817 = shalt.err (!%p4814_p6)
}
  0x2e   : > { %s4885_s21 = smov 64   ;;  %s4886_s15 = smov 4  }
  0x2f   : > { %4203 = dma.hbm_to_vmem [thread:$0]  (!%p5031_p13), %s5027_s17, 2048, %s5035_s14, %s5037_s27, %s4885_s21, %s4885_s21, %s4886_s15  }
  0x30   : > { %p3714_p9 = scmp.ge.s32.totalorder %s4882_s28, 1  ;;  %p406_p1 = scmp.lt.s32.totalorder %s4882_s28, 3 }
  0x32   : > { %p407_p3 = pnand %p3714_p9, %p406_p1 }
  0x33   : > { %s5061_s13 = sand.u32 (!%p407_p3), 1, %s4874_s26   ;;  %p6416_p6 = scmp.ne.s32.totalorder (!%p407_p3), %s6411_s19, 0 }
  0x34   : > { %410 = sbr.rel (%p407_p3) target bundleno = 1029 (0x405), region = 72  ;;  %s3715_s24 = sshll.u32 (!%p407_p3), %s5061_s13, 7 }
  0x35   : > { %s413_s18 = scalar_lea.sflag (!%p407_p3), [#allocation4], %s5061_s13  ;;  %s5065_s16 = scalar_lea.vmem (!%p407_p3), [#allocation3], %s3715_s24 }
  0x39   : > { %4861 = dma.done.wait (%p6416_p6), %s413_s18, 2048  }
  0x3a   : > { %4863 = vsyncadd (%p6416_p6), %s413_s18, 4294965248  ;;  %v4730_v0 = vld [vmem:[%s6384_s1 + $0x18] sm:$0xff]   ;;  %v4731_v1 = vld [vmem:[%s6384_s1 + $0x10] sm:$0xff]   ;;  %vm604_vm0 = vcmask 523264   ;;  %vm924_vm1 = vcmask 261120   ;;  %vm927_vm2 = vcmask 254976  }
  0x3b   : > { %4028 = vmatprep.subr.bf16.mxu0 %v4730_v0  ;;  %v4732_v2 = vld [vmem:[%s6384_s1 + $0x8] sm:$0xff]   ;;  %v4734_v3 = vld [vmem:[%s5065_s16] sm:$0xff]   ;;  %v4733_v4 = vld [vmem:[%s6384_s1] sm:$0xff]   ;;  %v4887_v20 = vmov 0.0   ;;  %s4888_s21 = smov 32   ;;  %s4889_s15 = smov 64  }
  0x3c   : > { %4029 = vmatpush3.bf16.msra.mxu0 %v4730_v0  ;;  %4036 = vmatprep.mubr.msk.bf16.mxu0 %vm604_vm0, %v4734_v3  ;;  %v4735_v5 = vld [vmem:[%s5065_s16 + $0x8] sm:$0xff]   ;;  %v4736_v6 = vld [vmem:[%s5065_s16 + $0x10] sm:$0xff]   ;;  %v4737_v7 = vld [vmem:[%s5065_s16 + $0x18] sm:$0xff]   ;;  %932 = vst.msk [vmem:[#allocation2 + $0x30] sm:$0xff] %vm924_vm1, %v4887_v20  ;;  %s4890_s22 = smov 96   ;;  %vm2134_vm3 = vcmask 785408  }
  0x3d   : > { %4030 = vmatprep.subr.bf16.mxu0 %v4731_v1  ;;  %v4738_v8 = vld [vmem:[%s5065_s16 + $0x20] sm:$0xff]   ;;  %v4739_v9 = vld [vmem:[%s5065_s16 + $0x28] sm:$0xff]   ;;  %v4740_v10 = vld [vmem:[%s5065_s16 + $0x30] sm:$0xff]   ;;  %933 = vst.msk [vmem:[#allocation2 + $0x38] sm:$0xff] %vm924_vm1, %v4887_v20  ;;  %s3716_s18 = sshll.u32 %s5061_s13, 8  ;;  %s6419_s27 = sld [smem:[#allocation14_spill]] }
  0x3e   : > { %v4741_v11 = vld [vmem:[%s5065_s16 + $0x38] sm:$0xff]   ;;  %v4742_v12 = vld [vmem:[%s5065_s16 + $0x40] sm:$0xff]   ;;  %v4743_v13 = vld [vmem:[%s5065_s16 + $0x48] sm:$0xff]   ;;  %925 = vst.msk [vmem:[#allocation2] sm:$0xff] %vm924_vm1, %v4887_v20  ;;  %s3622_s30 = scalar_lea.sflag [#allocation5], %s5061_s13  ;;  %p6421_p12 = scmp.ne.s32.totalorder %s6412_s20, 0 }
  0x3f   : > { %v4744_v14 = vld [vmem:[%s5065_s16 + $0x50] sm:$0xff]   ;;  %v4745_v15 = vld [vmem:[%s5065_s16 + $0x58] sm:$0xff]   ;;  %v4746_v16 = vld [vmem:[%s5065_s16 + $0x60] sm:$0xff]   ;;  %926 = vst.msk [vmem:[#allocation2 + $0x8] sm:$0xff] %vm924_vm1, %v4887_v20 }
  0x40   : > { %4031 = vmatpush3.bf16.msra.mxu0 %v4731_v1  ;;  %v4747_v17 = vld [vmem:[%s5065_s16 + $0x68] sm:$0xff]   ;;  %v4748_v18 = vld [vmem:[%s5065_s16 + $0x70] sm:$0xff]   ;;  %v4749_v19 = vld [vmem:[%s5065_s16 + $0x78] sm:$0xff]   ;;  %929 = vst.msk [vmem:[#allocation2 + $0x18] sm:$0xff] %vm924_vm1, %v4887_v20 }
  0x41   : > { %4032 = vmatprep.subr.bf16.mxu0 %v4732_v2  ;;  %930 = vst.msk [vmem:[#allocation2 + $0x20] sm:$0xff] %vm924_vm1, %v4887_v20  ;;  %935 = vst.msk [vmem:[#allocation2 + $0x48] sm:$0xff] %vm924_vm1, %v4887_v20  ;;  %v4750_v27 = vld [vmem:[%s6387_s4 + $0x78] sm:$0xff]   ;;  %v5177_v28 = vld [vmem:[%s6385_s2] ss:$0 sm:$0xff] }
  0x42   : > { %936 = vst.msk [vmem:[#allocation2 + $0x50] sm:$0xff] %vm924_vm1, %v4887_v20  ;;  %938 = vst.msk [vmem:[#allocation2 + $0x60] sm:$0xff] %vm924_vm1, %v4887_v20  ;;  %v4751_v29 = vld [vmem:[%s6387_s4 + $0x38] sm:$0xff]   ;;  %4180 = vmatprep.subr.bf16.mxu1 %v4750_v27  ;;  %v5185_v31 = vld [vmem:[%s6386_s3] ss:$0 sm:$0xff] }
  0x43   : > { %939 = vst.msk [vmem:[#allocation2 + $0x68] sm:$0xff] %vm924_vm1, %v4887_v20  ;;  %941 = vst.msk [vmem:[#allocation2 + $0x78] sm:$0xff] %vm924_vm1, %v4887_v20  ;;  %4188 = vmatpush3.bf16.msra.mxu1 %v4751_v29  ;;  %v4752_v33 = vld [vmem:[%s6387_s4 + $0x70] sm:$0xff]   ;;  %v4754_v46 = vld [vmem:[%s6387_s4 + $0x68] sm:$0xff]   ;;  %s6420_s14 = smov %s6419_s27 }
  0x44   : > { %4033 = vmatpush3.bf16.msra.mxu0 %v4732_v2  ;;  %942 = vst.msk [vmem:[#allocation2 + $0x80] sm:$0xff] %vm924_vm1, %v4887_v20  ;;  %944 = vst.msk [vmem:[#allocation2 + $0x90] sm:$0xff] %vm924_vm1, %v4887_v20  ;;  %v4753_v34 = vld [vmem:[%s6387_s4 + $0x30] sm:$0xff]   ;;  %4181 = vmatprep.subr.bf16.mxu1 %v4752_v33  ;;  %v4755_v48 = vld [vmem:[%s6387_s4 + $0x28] sm:$0xff]  }
  0x45   : > { %4034 = vmatprep.subr.bf16.mxu0 %v4733_v4  ;;  %945 = vst.msk [vmem:[#allocation2 + $0x98] sm:$0xff] %vm924_vm1, %v4887_v20  ;;  %947 = vst.msk [vmem:[#allocation2 + $0xa8] sm:$0xff] %vm924_vm1, %v4887_v20  ;;  %v4756_v56 = vld [vmem:[%s6387_s4 + $0x60] sm:$0xff]   ;;  %v4758_v2 = vld [vmem:[%s6387_s4 + $0x58] sm:$0xff]  }
  0x46   : > { %948 = vst.msk [vmem:[#allocation2 + $0xb0] sm:$0xff] %vm924_vm1, %v4887_v20  ;;  %950 = vst.msk [vmem:[#allocation2 + $0xc0] sm:$0xff] %vm924_vm1, %v4887_v20  ;;  %v1045_v21 = vld [vmem:[#allocation2 + $0x1] sm:$0xff] }
  0x47   : > { %951 = vst.msk [vmem:[#allocation2 + $0xc8] sm:$0xff] %vm924_vm1, %v4887_v20  ;;  %953 = vst.msk [vmem:[#allocation2 + $0xd8] sm:$0xff] %vm924_vm1, %v4887_v20  ;;  %v1077_v24 = vld [vmem:[#allocation2 + $0x2] sm:$0xff]  ;;  %4189 = vmatpush3.bf16.msra.mxu1 %v4753_v34 }
  0x48   : > { %4035 = vmatpush3.bf16.msra.mxu0 %v4733_v4  ;;  %954 = vst.msk [vmem:[#allocation2 + $0xe0] sm:$0xff] %vm924_vm1, %v4887_v20  ;;  %956 = vst.msk [vmem:[#allocation2 + $0xf0] sm:$0xff] %vm924_vm1, %v4887_v20  ;;  %4182 = vmatprep.subr.bf16.mxu1 %v4754_v46  ;;  %v4757_v58 = vld [vmem:[%s6387_s4 + $0x20] sm:$0xff]   ;;  %v4759_v4 = vld [vmem:[%s6387_s4 + $0x18] sm:$0xff]  }
  0x49   : > { %957 = vst.msk [vmem:[#allocation2 + $0xf8] sm:$0xff] %vm924_vm1, %v4887_v20  ;;  %959 = vst.msk [vmem:[#allocation2 + $0x108] sm:$0xff] %vm924_vm1, %v4887_v20  ;;  %3860 = vmatprep.subr.bf16.mxu0 %v4750_v27 }
  0x4a   : > { %960 = vst.msk [vmem:[#allocation2 + $0x110] sm:$0xff] %vm924_vm1, %v4887_v20  ;;  %962 = vst.msk [vmem:[#allocation2 + $0x120] sm:$0xff] %vm924_vm1, %v4887_v20 }
  0x4b   : > { %4037 = vmatmul.mubr.msk.bf16.vlgmr.msra.gmra.mxu0 %vm604_vm0, %v4735_v5  ;;  %963 = vst.msk [vmem:[#allocation2 + $0x128] sm:$0xff] %vm924_vm1, %v4887_v20  ;;  %965 = vst.msk [vmem:[#allocation2 + $0x138] sm:$0xff] %vm924_vm1, %v4887_v20  ;;  %4190 = vmatpush3.bf16.msra.mxu1 %v4755_v48 }
  0x4c   : > { %4040 = vmatprep.mubr.msk.bf16.mxu0 %vm604_vm0, %v4736_v6  ;;  %966 = vst.msk [vmem:[#allocation2 + $0x140] sm:$0xff] %vm924_vm1, %v4887_v20  ;;  %968 = vst.msk [vmem:[#allocation2 + $0x150] sm:$0xff] %vm924_vm1, %v4887_v20  ;;  %3861 = vmatpush3.bf16.msra.mxu0 %v4751_v29 }
  0x4d   : > { %969 = vst.msk [vmem:[#allocation2 + $0x158] sm:$0xff] %vm924_vm1, %v4887_v20  ;;  %971 = vst.msk [vmem:[#allocation2 + $0x168] sm:$0xff] %vm924_vm1, %v4887_v20  ;;  %3862 = vmatprep.subr.bf16.mxu0 %v4752_v33  ;;  %4183 = vmatprep.subr.bf16.mxu1 %v4756_v56 }
  0x4e   : > { %972 = vst.msk [vmem:[#allocation2 + $0x170] sm:$0xff] %vm924_vm1, %v4887_v20  ;;  %974 = vst.msk [vmem:[#allocation2 + $0x180] sm:$0xff] %vm924_vm1, %v4887_v20 }
  0x4f   : > { %975 = vst.msk [vmem:[#allocation2 + $0x188] sm:$0xff] %vm924_vm1, %v4887_v20  ;;  %977 = vst.msk [vmem:[#allocation2 + $0x198] sm:$0xff] %vm924_vm1, %v4887_v20  ;;  %4191 = vmatpush3.bf16.msra.mxu1 %v4757_v58 }
  0x50   : > { %978 = vst.msk [vmem:[#allocation2 + $0x1a0] sm:$0xff] %vm924_vm1, %v4887_v20  ;;  %3863 = vmatpush3.bf16.msra.mxu0 %v4753_v34  ;;  %4184 = vmatprep.subr.bf16.mxu1 %v4758_v2 }
  0x51   : > { %934 = vst.msk [vmem:[#allocation2 + $0x40] sm:$0x3] %vm927_vm2, %v4887_v20  ;;  %928 = vst.msk [vmem:[#allocation2 + $0x10] sm:$0x3] %vm927_vm2, %v4887_v20  ;;  %3864 = vmatprep.subr.bf16.mxu0 %v4754_v46 }
  0x52   : > { %931 = vst.msk [vmem:[#allocation2 + $0x28] sm:$0x3] %vm927_vm2, %v4887_v20  ;;  %937 = vst.msk [vmem:[#allocation2 + $0x58] sm:$0x3] %vm927_vm2, %v4887_v20 }
  0x53   : > { %4041 = vmatmul.mubr.msk.bf16.gmra.mxu0 %vm604_vm0, %v4737_v7  ;;  %940 = vst.msk [vmem:[#allocation2 + $0x70] sm:$0x3] %vm927_vm2, %v4887_v20  ;;  %943 = vst.msk [vmem:[#allocation2 + $0x88] sm:$0x3] %vm927_vm2, %v4887_v20  ;;  %4192 = vmatpush3.bf16.msra.mxu1 %v4759_v4 }
  0x54   : > { %4044 = vmatprep.mubr.msk.bf16.mxu0 %vm604_vm0, %v4738_v8  ;;  %946 = vst.msk [vmem:[#allocation2 + $0xa0] sm:$0x3] %vm927_vm2, %v4887_v20  ;;  %949 = vst.msk [vmem:[#allocation2 + $0xb8] sm:$0x3] %vm927_vm2, %v4887_v20  ;;  %3865 = vmatpush3.bf16.msra.mxu0 %v4755_v48 }
  0x55   : > { %952 = vst.msk [vmem:[#allocation2 + $0xd0] sm:$0x3] %vm927_vm2, %v4887_v20  ;;  %955 = vst.msk [vmem:[#allocation2 + $0xe8] sm:$0x3] %vm927_vm2, %v4887_v20  ;;  %3866 = vmatprep.subr.bf16.mxu0 %v4756_v56 }
  0x56   : > { %958 = vst.msk [vmem:[#allocation2 + $0x100] sm:$0x3] %vm927_vm2, %v4887_v20  ;;  %961 = vst.msk [vmem:[#allocation2 + $0x118] sm:$0x3] %vm927_vm2, %v4887_v20 }
  0x57   : > { %964 = vst.msk [vmem:[#allocation2 + $0x130] sm:$0x3] %vm927_vm2, %v4887_v20  ;;  %967 = vst.msk [vmem:[#allocation2 + $0x148] sm:$0x3] %vm927_vm2, %v4887_v20 }
  0x58   : > { %970 = vst.msk [vmem:[#allocation2 + $0x160] sm:$0x3] %vm927_vm2, %v4887_v20  ;;  %973 = vst.msk [vmem:[#allocation2 + $0x178] sm:$0x3] %vm927_vm2, %v4887_v20  ;;  %v1046_v22 = vld [vmem:[#allocation2 + $0x9] sm:$0xff]  ;;  %3867 = vmatpush3.bf16.msra.mxu0 %v4757_v58 }
  0x59   : > { %976 = vst.msk [vmem:[#allocation2 + $0x190] sm:$0x3] %vm927_vm2, %v4887_v20  ;;  %979 = vst.msk [vmem:[#allocation2 + $0x1a8] sm:$0x3] %vm927_vm2, %v4887_v20  ;;  %v4250_v23 = vpack.i.bf16 %v1046_v22, %v1045_v21  ;;  %v1078_v25 = vld [vmem:[#allocation2 + $0xa] sm:$0xff]  ;;  %3868 = vmatprep.subr.bf16.mxu0 %v4758_v2 }
  0x5a   : > { %v4255_v26 = vpack.i.bf16 %v1078_v25, %v1077_v24  ;;  %v5294_v58 = vld [vmem:[%s6387_s4 + $0x88] sm:$0xff]  }
  0x5b   : > { %4045 = vmatmul.mubr.msk.bf16.gmra.mxu0 %vm604_vm0, %v4739_v9  ;;  %4251 = vrot.lane.b32.xlu0 %v4250_v23, %s4888_s21  ;;  %v4761_v23 = vld [vmem:[%s6387_s4 + $0x10] sm:$0xff]  }
  0x5c   : > { %4048 = vmatprep.mubr.msk.bf16.mxu0 %vm604_vm0, %v4740_v10  ;;  %3869 = vmatpush3.bf16.msra.mxu0 %v4759_v4 }
  0x5f   : > { %4256 = vrot.lane.b32.xlu0 %v4255_v26, %s4889_s15 }
  0x63   : > { %4049 = vmatmul.mubr.msk.bf16.gmra.mxu0 %vm604_vm0, %v4741_v11 }
  0x64   : > { %4052 = vmatprep.mubr.msk.bf16.mxu0 %vm604_vm0, %v4742_v12 }
  0x6b   : > { %4053 = vmatmul.mubr.msk.bf16.gmra.mxu0 %vm604_vm0, %v4743_v13 }
  0x6c   : > { %4056 = vmatprep.mubr.msk.bf16.mxu0 %vm604_vm0, %v4744_v14 }
  0x73   : > { %4057 = vmatmul.mubr.msk.bf16.gmra.mxu0 %vm604_vm0, %v4745_v15 }
  0x74   : > { %4060 = vmatprep.mubr.msk.bf16.mxu0 %vm604_vm0, %v4746_v16 }
  0x7b   : > { %4061 = vmatmul.mubr.msk.bf16.gmra.mxu0 %vm604_vm0, %v4747_v17  ;;  %v4760_v17 = vld [vmem:[%s6387_s4 + $0x50] sm:$0xff]  }
  0x7c   : > { %4064 = vmatprep.mubr.msk.bf16.mxu0 %vm604_vm0, %v4748_v18  ;;  %3870 = vmatprep.subr.bf16.mxu0 %v4760_v17 }
  0x7d   : > { %4185 = vmatprep.subr.bf16.mxu1 %v4760_v17  ;;  %3871 = vmatpush3.bf16.msra.mxu0 %v4761_v23 }
  0x7e   : > { %4193 = vmatpush3.bf16.msra.mxu1 %v4761_v23 }
  0x83   : > { %4065 = vmatmul.mubr.msk.bf16.gmra.mxu0 %vm604_vm0, %v4749_v19 }
 0x10b   : > { %v4038_v30 = vpop.f32.mrf.mxu0 }
 0x10c   : > { %v823_v32 = vmul.f32 %v4038_v30, %v5177_v28 }
 0x10d   : > { %v687_v35 = vpop.f32.mrf.mxu0 }
 0x10e   : > { %v862_v36 = vadd.f32 %v5185_v31, %v823_v32  ;;  %v821_v37 = vmul.f32 %v5177_v28, %v687_v35  ;;  %v4762_v32 = vld [vmem:[%s6387_s4 + $0x48] sm:$0xff]  }
 0x10f   : > { %v4039_v38 = vpop.f32.mrf.mxu0  ;;  %v4763_v35 = vld [vmem:[%s6387_s4 + $0x8] sm:$0xff]   ;;  %3872 = vmatprep.subr.bf16.mxu0 %v4762_v32  ;;  %4186 = vmatprep.subr.bf16.mxu1 %v4762_v32 }
 0x110   : > { %v894_v39 = vmax.f32 %v862_v36, 0.0  ;;  %v860_v40 = vadd.f32 %v5185_v31, %v821_v37  ;;  %v824_v41 = vmul.f32 %v4039_v38, %v5177_v28  ;;  %3873 = vmatpush3.bf16.msra.mxu0 %v4763_v35  ;;  %4194 = vmatpush3.bf16.msra.mxu1 %v4763_v35 }
 0x111   : > { %v690_v42 = vpop.f32.mrf.mxu0 }
 0x112   : > { %983 = vst.msk [vmem:[#allocation2 + $0x31] sm:$0xff] %vm924_vm1, %v894_v39  ;;  %v892_v43 = vmax.f32 %v860_v40, 0.0  ;;  %v863_v44 = vadd.f32 %v5185_v31, %v824_v41  ;;  %v822_v45 = vmul.f32 %v5177_v28, %v690_v42 }
 0x113   : > { %v4042_v47 = vpop.f32.mrf.mxu0 }
 0x114   : > { %981 = vst.msk [vmem:[#allocation2 + $0x19] sm:$0xff] %vm924_vm1, %v892_v43  ;;  %v895_v49 = vmax.f32 %v863_v44, 0.0  ;;  %v861_v50 = vadd.f32 %v5185_v31, %v822_v45  ;;  %v827_v51 = vmul.f32 %v4042_v47, %v5177_v28  ;;  %v4764_v44 = vld [vmem:[%s6387_s4 + $0x40] sm:$0xff]  }
 0x115   : > { %v703_v52 = vpop.f32.mrf.mxu0  ;;  %3874 = vmatprep.subr.bf16.mxu0 %v4764_v44  ;;  %4187 = vmatprep.subr.bf16.mxu1 %v4764_v44 }
 0x116   : > { %984 = vst.msk [vmem:[#allocation2 + $0x39] sm:$0xff] %vm924_vm1, %v895_v49  ;;  %v893_v53 = vmax.f32 %v861_v50, 0.0  ;;  %v866_v54 = vadd.f32 %v5185_v31, %v827_v51  ;;  %v825_v55 = vmul.f32 %v5177_v28, %v703_v52  ;;  %v4765_v50 = vld [vmem:[%s6387_s4] sm:$0xff]  }
 0x117   : > { %v4043_v57 = vpop.f32.mrf.mxu0  ;;  %3875 = vmatpush3.bf16.msra.mxu0 %v4765_v50  ;;  %4195 = vmatpush3.bf16.msra.mxu1 %v4765_v50 }
 0x118   : > { %982 = vst.msk [vmem:[#allocation2 + $0x21] sm:$0xff] %vm924_vm1, %v893_v53  ;;  %v898_v59 = vmax.f32 %v866_v54, 0.0  ;;  %v864_v60 = vadd.f32 %v5185_v31, %v825_v55  ;;  %v828_v61 = vmul.f32 %v4043_v57, %v5177_v28  ;;  %4068 = vmatprep.subr.bf16.mxu0 %v5294_v58 }
 0x119   : > { %v706_v62 = vpop.f32.mrf.mxu0  ;;  %v5233_v7 = vld [vmem:[#allocation2 + $0x30] sm:$0xff] }
 0x11a   : > { %987 = vst.msk [vmem:[#allocation2 + $0x61] sm:$0xff] %vm924_vm1, %v898_v59  ;;  %v896_v63 = vmax.f32 %v864_v60, 0.0  ;;  %v867_v0 = vadd.f32 %v5185_v31, %v828_v61  ;;  %v826_v1 = vmul.f32 %v5177_v28, %v706_v62  ;;  %v1049_v24 = vld [vmem:[#allocation2 + $0x31] sm:$0xff] }
 0x11b   : > { %v4046_v3 = vpop.f32.mrf.mxu0  ;;  %v5283_v52 = vld [vmem:[#allocation2 + $0x19] sm:$0xff] }
 0x11c   : > { %985 = vst.msk [vmem:[#allocation2 + $0x49] sm:$0xff] %vm924_vm1, %v896_v63  ;;  %v899_v5 = vmax.f32 %v867_v0, 0.0  ;;  %v865_v6 = vadd.f32 %v5185_v31, %v826_v1  ;;  %v831_v8 = vmul.f32 %v4046_v3, %v5177_v28  ;;  %v5302_v1 = vld [vmem:[#allocation2 + $0x18] sm:$0xff] }
 0x11d   : > { %v1175_v9 = vld [vmem:[#allocation2 + $0x32] sm:$0xff]  ;;  %v1176_v10 = vld [vmem:[#allocation2 + $0x3a] sm:$0xff]  ;;  %v719_v12 = vpop.f32.mrf.mxu0 }
 0x11e   : > { %v5236_v11 = vld [vmem:[#allocation2 + $0x38] sm:$0xff]  ;;  %988 = vst.msk [vmem:[#allocation2 + $0x69] sm:$0xff] %vm924_vm1, %v899_v5  ;;  %v897_v13 = vmax.f32 %v865_v6, 0.0  ;;  %v4260_v14 = vpack.i.bf16 %v1176_v10, %v1175_v9  ;;  %v870_v16 = vadd.f32 %v5185_v31, %v831_v8  ;;  %v829_v19 = vmul.f32 %v5177_v28, %v719_v12 }
 0x11f   : > { %v4265_v15 = vpack.i.bf16 %v5236_v11, %v5233_v7  ;;  %v1050_v18 = vld [vmem:[#allocation2 + $0x39] sm:$0xff]  ;;  %v4047_v20 = vpop.f32.mrf.mxu0  ;;  %v1080_v41 = vld [vmem:[#allocation2 + $0x22] sm:$0xff] }
 0x120   : > { %986 = vst.msk [vmem:[#allocation2 + $0x51] sm:$0xff] %vm924_vm1, %v897_v13  ;;  %4261 = vrot.lane.b32.xlu0 %v4260_v14, %s4888_s21  ;;  %v902_v21 = vmax.f32 %v870_v16, 0.0  ;;  %v832_v22 = vmul.f32 %v4047_v20, %v5177_v28  ;;  %v868_v25 = vadd.f32 %v5185_v31, %v829_v19  ;;  %v4270_v27 = vpack.i.bf16 %v1050_v18, %v1049_v24  ;;  %v1079_v40 = vld [vmem:[#allocation2 + $0x1a] sm:$0xff] }
 0x121   : > { %4266 = vrot.lane.b32.xlu1 %v4265_v15, %s4890_s22  ;;  %v722_v26 = vpop.f32.mrf.mxu0  ;;  %v5273_v45 = vld [vmem:[#allocation2 + $0x21] sm:$0xff]  ;;  %v4295_v51 = vpack.i.bf16 %v1080_v41, %v1079_v40 }
 0x122   : > { %991 = vst.msk [vmem:[#allocation2 + $0x91] sm:$0xff] %vm924_vm1, %v902_v21  ;;  %v871_v29 = vadd.f32 %v5185_v31, %v832_v22  ;;  %v830_v30 = vmul.f32 %v5177_v28, %v722_v26  ;;  %v900_v33 = vmax.f32 %v868_v25, 0.0  ;;  %v4290_v55 = vpack.i.bf16 %v5273_v45, %v5283_v52  ;;  %v5296_v59 = vld [vmem:[#allocation2 + $0x20] sm:$0xff] }
 0x123   : > { %v4050_v34 = vpop.f32.mrf.mxu0  ;;  %v4305_v3 = vpack.i.bf16 %v5296_v59, %v5302_v1  ;;  %v5310_v6 = vld [vmem:[#allocation2 + $0x60] sm:$0xff] }
 0x124   : > { %4281 = vrot.lane.b32.xlu0 %v4265_v15, %s4889_s15  ;;  %v903_v36 = vmax.f32 %v871_v29, 0.0  ;;  %v869_v37 = vadd.f32 %v5185_v31, %v830_v30  ;;  %v835_v38 = vmul.f32 %v4050_v34, %v5177_v28  ;;  %989 = vst.msk [vmem:[#allocation2 + $0x79] sm:$0xff] %vm924_vm1, %v900_v33  ;;  %v5331_v22 = vld [vmem:[#allocation2 + $0x61] sm:$0xff] }
 0x125   : > { %4271 = vrot.lane.b32.xlu1 %v4270_v27, %s4888_s21  ;;  %v735_v39 = vpop.f32.mrf.mxu0  ;;  %v5312_v8 = vld [vmem:[#allocation2 + $0x68] sm:$0xff] }
 0x126   : > { %992 = vst.msk [vmem:[#allocation2 + $0x99] sm:$0xff] %vm924_vm1, %v903_v36  ;;  %v901_v42 = vmax.f32 %v869_v37, 0.0  ;;  %v874_v43 = vadd.f32 %v5185_v31, %v835_v38  ;;  %v833_v46 = vmul.f32 %v5177_v28, %v735_v39  ;;  %v4310_v19 = vpack.i.bf16 %v5312_v8, %v5310_v6  ;;  %v1243_v23 = vld [vmem:[#allocation2 + $0x69] sm:$0xff] }
 0x127   : > { %v4051_v47 = vpop.f32.mrf.mxu0  ;;  %v4315_v32 = vpack.i.bf16 %v1243_v23, %v5331_v22  ;;  %v1179_v35 = vld [vmem:[#allocation2 + $0x62] sm:$0xff]  ;;  %v1180_v36 = vld [vmem:[#allocation2 + $0x6a] sm:$0xff] }
 0x128   : > { %4286 = vrot.lane.b32.xlu0 %v4270_v27, %s4890_s22  ;;  %990 = vst.msk [vmem:[#allocation2 + $0x81] sm:$0xff] %vm924_vm1, %v901_v42  ;;  %v906_v48 = vmax.f32 %v874_v43, 0.0  ;;  %v836_v49 = vmul.f32 %v4051_v47, %v5177_v28  ;;  %v872_v53 = vadd.f32 %v5185_v31, %v833_v46  ;;  %v4320_v47 = vpack.i.bf16 %v1180_v36, %v1179_v35 }
 0x129   : > { %4276 = vrot.lane.b32.xlu1 %v4260_v14, %s4889_s15  ;;  %v738_v54 = vpop.f32.mrf.mxu0  ;;  %v1214_v23 = vld [vmem:[#allocation2 + $0x90] sm:$0xff] }
 0x12a   : > { %995 = vst.msk [vmem:[#allocation2 + $0xc1] sm:$0xff] %vm924_vm1, %v906_v48  ;;  %v875_v56 = vadd.f32 %v5185_v31, %v836_v49  ;;  %v834_v57 = vmul.f32 %v5177_v28, %v738_v54  ;;  %v904_v60 = vmax.f32 %v872_v53, 0.0  ;;  %v1240_v48 = vld [vmem:[#allocation2 + $0x49] sm:$0xff] }
 0x12b   : > { %v4054_v61 = vpop.f32.mrf.mxu0  ;;  %v1208_v53 = vld [vmem:[#allocation2 + $0x48] sm:$0xff]  ;;  %v1209_v54 = vld [vmem:[#allocation2 + $0x50] sm:$0xff] }
 0x12c   : > { %4291 = vrot.lane.b32.xlu0 %v4290_v55, %s4888_s21  ;;  %v907_v62 = vmax.f32 %v875_v56, 0.0  ;;  %v873_v63 = vadd.f32 %v5185_v31, %v834_v57  ;;  %v839_v0 = vmul.f32 %v4054_v61, %v5177_v28  ;;  %993 = vst.msk [vmem:[#allocation2 + $0xa9] sm:$0xff] %vm924_vm1, %v904_v60 }
 0x12d   : > { %4296 = vrot.lane.b32.xlu1 %v4295_v51, %s4889_s15  ;;  %v751_v2 = vpop.f32.mrf.mxu0 }
 0x12e   : > { %996 = vst.msk [vmem:[#allocation2 + $0xc9] sm:$0xff] %vm924_vm1, %v907_v62  ;;  %v905_v4 = vmax.f32 %v873_v63, 0.0  ;;  %v878_v5 = vadd.f32 %v5185_v31, %v839_v0  ;;  %v837_v10 = vmul.f32 %v5177_v28, %v751_v2  ;;  %v4340_v2 = vpack.i.bf16 %v1209_v54, %v1208_v53 }
 0x12f   : > { %v5314_v9 = vld [vmem:[#allocation2 + $0x7a] sm:$0xff]  ;;  %v4055_v12 = vpop.f32.mrf.mxu0  ;;  %v5320_v13 = vld [vmem:[#allocation2 + $0x82] sm:$0xff] }
 0x130   : > { %4301 = vrot.lane.b32.xlu0 %v4295_v51, %s4888_s21  ;;  %994 = vst.msk [vmem:[#allocation2 + $0xb1] sm:$0xff] %vm924_vm1, %v905_v4  ;;  %v910_v14 = vmax.f32 %v878_v5, 0.0  ;;  %v840_v15 = vmul.f32 %v4055_v12, %v5177_v28  ;;  %v876_v16 = vadd.f32 %v5185_v31, %v837_v10  ;;  %v2274_v18 = vpack.c.bf16 %v5320_v13, %v5314_v9  ;;  %v1241_v51 = vld [vmem:[#allocation2 + $0x51] sm:$0xff] }
 0x131   : > { %4306 = vrot.lane.b32.xlu1 %v4305_v3, %s4890_s22  ;;  %v754_v17 = vpop.f32.mrf.mxu0  ;;  %v4345_v0 = vpack.i.bf16 %v1241_v51, %v1240_v48  ;;  %v1177_v3 = vld [vmem:[#allocation2 + $0x4a] sm:$0xff]  ;;  %v1178_v12 = vld [vmem:[#allocation2 + $0x52] sm:$0xff] }
 0x132   : > { %999 = vst.msk [vmem:[#allocation2 + $0xf1] sm:$0xff] %vm924_vm1, %v910_v14  ;;  %v879_v20 = vadd.f32 %v5185_v31, %v840_v15  ;;  %v838_v21 = vmul.f32 %v5177_v28, %v754_v17  ;;  %v908_v24 = vmax.f32 %v876_v16, 0.0 }
 0x133   : > { %v4058_v25 = vpop.f32.mrf.mxu0 }
 0x134   : > { %4311 = vrot.lane.b32.xlu0 %v4310_v19, %s4889_s15  ;;  %v911_v26 = vmax.f32 %v879_v20, 0.0  ;;  %v877_v27 = vadd.f32 %v5185_v31, %v838_v21  ;;  %v843_v29 = vmul.f32 %v4058_v25, %v5177_v28  ;;  %997 = vst.msk [vmem:[#allocation2 + $0xd9] sm:$0xff] %vm924_vm1, %v908_v24  ;;  %v1215_v24 = vld [vmem:[#allocation2 + $0x98] sm:$0xff] }
 0x135   : > { %4326 = vrot.lane.b32.xlu1 %v4310_v19, %s4890_s22  ;;  %v767_v30 = vpop.f32.mrf.mxu0  ;;  %v4370_v35 = vpack.i.bf16 %v1215_v24, %v1214_v23  ;;  %v1245_v23 = vld [vmem:[#allocation2 + $0x81] sm:$0xff] }
 0x136   : > { %1000 = vst.msk [vmem:[#allocation2 + $0xf9] sm:$0xff] %vm924_vm1, %v911_v26  ;;  %v909_v33 = vmax.f32 %v877_v27, 0.0  ;;  %v882_v34 = vadd.f32 %v5185_v31, %v843_v29  ;;  %v841_v38 = vmul.f32 %v5177_v28, %v767_v30  ;;  %v4350_v29 = vpack.i.bf16 %v1178_v12, %v1177_v3  ;;  %v1184_v3 = vld [vmem:[#allocation2 + $0x9a] sm:$0xff] }
 0x137   : > { %v5341_v37 = vld [vmem:[#allocation2 + $0xaa] sm:$0xff]  ;;  %v4059_v39 = vpop.f32.mrf.mxu0  ;;  %v5347_v41 = vld [vmem:[#allocation2 + $0xb2] sm:$0xff]  ;;  %v1218_v24 = vld [vmem:[#allocation2 + $0xc0] sm:$0xff] }
 0x138   : > { %4316 = vrot.lane.b32.xlu0 %v4315_v32, %s4890_s22  ;;  %998 = vst.msk [vmem:[#allocation2 + $0xe1] sm:$0xff] %vm924_vm1, %v909_v33  ;;  %v914_v40 = vmax.f32 %v882_v34, 0.0  ;;  %v844_v42 = vmul.f32 %v4059_v39, %v5177_v28  ;;  %v880_v43 = vadd.f32 %v5185_v31, %v841_v38  ;;  %v2280_v46 = vpack.c.bf16 %v5347_v41, %v5341_v37 }
 0x139   : > { %4331 = vrot.lane.b32.xlu1 %v4315_v32, %s4888_s21  ;;  %v770_v44 = vpop.f32.mrf.mxu0 }
 0x13a   : > { %1003 = vst.msk [vmem:[#allocation2 + $0x121] sm:$0xff] %vm924_vm1, %v914_v40  ;;  %v883_v49 = vadd.f32 %v5185_v31, %v844_v42  ;;  %v842_v50 = vmul.f32 %v5177_v28, %v770_v44  ;;  %v912_v55 = vmax.f32 %v880_v43, 0.0  ;;  %v1246_v40 = vld [vmem:[#allocation2 + $0x91] sm:$0xff]  ;;  %v1247_v42 = vld [vmem:[#allocation2 + $0x99] sm:$0xff] }
 0x13b   : > { %v4062_v56 = vpop.f32.mrf.mxu0  ;;  %v4375_v54 = vpack.i.bf16 %v1247_v42, %v1246_v40  ;;  %v1248_v42 = vld [vmem:[#allocation2 + $0xa9] sm:$0xff] }
 0x13c   : > { %4321 = vrot.lane.b32.xlu0 %v4320_v47, %s4888_s21  ;;  %v915_v57 = vmax.f32 %v883_v49, 0.0  ;;  %v881_v60 = vadd.f32 %v5185_v31, %v842_v50  ;;  %v847_v61 = vmul.f32 %v4062_v56, %v5177_v28  ;;  %1001 = vst.msk [vmem:[#allocation2 + $0x109] sm:$0xff] %vm924_vm1, %v912_v55 }
 0x13d   : > { %4336 = vrot.lane.b32.xlu1 %v4320_v47, %s4889_s15  ;;  %v5361_v62 = vld [vmem:[#allocation2 + $0xf2] sm:$0xff]  ;;  %v783_v63 = vpop.f32.mrf.mxu0  ;;  %v5364_v5 = vld [vmem:[#allocation2 + $0xfa] sm:$0xff] }
 0x13e   : > { %1004 = vst.msk [vmem:[#allocation2 + $0x129] sm:$0xff] %vm924_vm1, %v915_v57  ;;  %v913_v4 = vmax.f32 %v881_v60, 0.0  ;;  %v886_v10 = vadd.f32 %v5185_v31, %v847_v61  ;;  %v845_v16 = vmul.f32 %v5177_v28, %v783_v63 }
 0x13f   : > { %v5367_v14 = vld [vmem:[#allocation2 + $0xda] sm:$0xff]  ;;  %v5369_v15 = vld [vmem:[#allocation2 + $0xe2] sm:$0xff]  ;;  %v4063_v17 = vpop.f32.mrf.mxu0 }
 0x140   : > { %4346 = vrot.lane.b32.xlu0 %v4345_v0, %s4890_s22  ;;  %1002 = vst.msk [vmem:[#allocation2 + $0x111] sm:$0xff] %vm924_vm1, %v913_v4  ;;  %v918_v20 = vmax.f32 %v886_v10, 0.0  ;;  %v848_v21 = vmul.f32 %v4063_v17, %v5177_v28  ;;  %v884_v25 = vadd.f32 %v5185_v31, %v845_v16  ;;  %v2286_v27 = vpack.c.bf16 %v5369_v15, %v5367_v14  ;;  %v1212_v17 = vld [vmem:[#allocation2 + $0x78] sm:$0xff] }
 0x141   : > { %4341 = vrot.lane.b32.xlu1 %v4340_v2, %s4889_s15  ;;  %v786_v26 = vpop.f32.mrf.mxu0 }
 0x142   : > { %1007 = vst.msk [vmem:[#allocation2 + $0x151] sm:$0xff] %vm924_vm1, %v918_v20  ;;  %v887_v30 = vadd.f32 %v5185_v31, %v848_v21  ;;  %v846_v32 = vmul.f32 %v5177_v28, %v786_v26  ;;  %v916_v33 = vmax.f32 %v884_v25, 0.0  ;;  %v1213_v20 = vld [vmem:[#allocation2 + $0x80] sm:$0xff]  ;;  %v1219_v25 = vld [vmem:[#allocation2 + $0xc8] sm:$0xff]  ;;  %v4410_v26 = vpack.i.bf16 %v5320_v13, %v5314_v9 }
 0x143   : > { %v4066_v34 = vpop.f32.mrf.mxu0  ;;  %v1244_v21 = vld [vmem:[#allocation2 + $0x79] sm:$0xff] }
 0x144   : > { %4351 = vrot.lane.b32.xlu0 %v4350_v29, %s4888_s21  ;;  %v919_v36 = vmax.f32 %v887_v30, 0.0  ;;  %v885_v38 = vadd.f32 %v5185_v31, %v846_v32  ;;  %v851_v39 = vmul.f32 %v4066_v34, %v5177_v28  ;;  %1005 = vst.msk [vmem:[#allocation2 + $0x139] sm:$0xff] %vm924_vm1, %v916_v33  ;;  %v1250_v30 = vld [vmem:[#allocation2 + $0xc1] sm:$0xff]  ;;  %v1251_v32 = vld [vmem:[#allocation2 + $0xc9] sm:$0xff] }
 0x145   : > { %4356 = vrot.lane.b32.xlu1 %v4340_v2, %s4890_s22  ;;  %v5389_v43 = vld [vmem:[#allocation2 + $0x122] sm:$0xff]  ;;  %v799_v44 = vpop.f32.mrf.mxu0  ;;  %v5392_v47 = vld [vmem:[#allocation2 + $0x12a] sm:$0xff]  ;;  %v1183_v2 = vld [vmem:[#allocation2 + $0x92] sm:$0xff]  ;;  %v4435_v33 = vpack.i.bf16 %v1251_v32, %v1250_v30 }
 0x146   : > { %1008 = vst.msk [vmem:[#allocation2 + $0x159] sm:$0xff] %vm924_vm1, %v919_v36  ;;  %v917_v48 = vmax.f32 %v885_v38, 0.0  ;;  %v890_v49 = vadd.f32 %v5185_v31, %v851_v39  ;;  %v849_v50 = vmul.f32 %v5177_v28, %v799_v44  ;;  %v4380_v12 = vpack.i.bf16 %v1184_v3, %v1183_v2  ;;  %v1187_v34 = vld [vmem:[#allocation2 + $0xc2] sm:$0xff]  ;;  %v1217_v39 = vld [vmem:[#allocation2 + $0xb0] sm:$0xff] }
 0x147   : > { %v4067_v51 = vpop.f32.mrf.mxu0  ;;  %v1216_v38 = vld [vmem:[#allocation2 + $0xa8] sm:$0xff]  ;;  %v1249_v44 = vld [vmem:[#allocation2 + $0xb1] sm:$0xff]  ;;  %v4530_v2 = vpack.i.bf16 %v5369_v15, %v5367_v14 }
 0x148   : > { %4371 = vrot.lane.b32.xlu0 %v4370_v35, %s4889_s15  ;;  %1006 = vst.msk [vmem:[#allocation2 + $0x141] sm:$0xff] %vm924_vm1, %v917_v48  ;;  %v922_v55 = vmax.f32 %v890_v49, 0.0  ;;  %v852_v56 = vmul.f32 %v4067_v51, %v5177_v28  ;;  %v888_v57 = vadd.f32 %v5185_v31, %v849_v50  ;;  %v4460_v40 = vpack.i.bf16 %v1217_v39, %v1216_v38  ;;  %v1222_v49 = vld [vmem:[#allocation2 + $0xf0] sm:$0xff]  ;;  %v1223_v50 = vld [vmem:[#allocation2 + $0xf8] sm:$0xff] }
 0x149   : > { %4361 = vrot.lane.b32.xlu1 %v4345_v0, %s4888_s21  ;;  %v802_v60 = vpop.f32.mrf.mxu0  ;;  %v4465_v48 = vpack.i.bf16 %v1249_v44, %v1248_v42  ;;  %v4470_v51 = vpack.i.bf16 %v5347_v41, %v5341_v37  ;;  %v5472_v39 = vld [vmem:[#allocation2 + $0x10a] sm:$0xff] }
 0x14a   : > { %1011 = vst.msk [vmem:[#allocation2 + $0x181] sm:$0xff] %vm924_vm1, %v922_v55  ;;  %v891_v61 = vadd.f32 %v5185_v31, %v852_v56  ;;  %v850_v63 = vmul.f32 %v5177_v28, %v802_v60  ;;  %v920_v0 = vmax.f32 %v888_v57, 0.0  ;;  %v4400_v28 = vpack.i.bf16 %v1213_v20, %v1212_v17  ;;  %v1254_v55 = vld [vmem:[#allocation2 + $0xf1] sm:$0xff]  ;;  %v1255_v56 = vld [vmem:[#allocation2 + $0xf9] sm:$0xff] }
 0x14b   : > { %v4495_v57 = vpack.i.bf16 %v1255_v56, %v1254_v55  ;;  %v4500_v60 = vpack.i.bf16 %v5364_v5, %v5361_v62  ;;  %v1230_v42 = vld [vmem:[#allocation2 + $0x150] sm:$0xff] }
 0x14c   : > { %4376 = vrot.lane.b32.xlu0 %v4375_v54, %s4890_s22  ;;  %v923_v4 = vmax.f32 %v891_v61, 0.0  ;;  %v889_v10 = vadd.f32 %v5185_v31, %v850_v63  ;;  %1009 = vst.msk [vmem:[#allocation2 + $0x169] sm:$0xff] %vm924_vm1, %v920_v0  ;;  %v4405_v31 = vpack.i.bf16 %v1245_v23, %v1244_v21  ;;  %v1226_v61 = vld [vmem:[#allocation2 + $0x120] sm:$0xff]  ;;  %v1227_v63 = vld [vmem:[#allocation2 + $0x128] sm:$0xff]  ;;  %v1262_v56 = vld [vmem:[#allocation2 + $0x151] sm:$0xff] }
 0x14d   : > { %4366 = vrot.lane.b32.xlu1 %v4350_v29, %s4889_s15  ;;  %v4430_v29 = vpack.i.bf16 %v1219_v25, %v1218_v24  ;;  %v4550_v3 = vpack.i.bf16 %v1227_v63, %v1226_v61  ;;  %v1258_v0 = vld [vmem:[#allocation2 + $0x121] sm:$0xff]  ;;  %v5454_v24 = vpack.i.bf16 %v5392_v47, %v5389_v43  ;;  %v1231_v44 = vld [vmem:[#allocation2 + $0x158] sm:$0xff] }
 0x14e   : > { %1012 = vst.msk [vmem:[#allocation2 + $0x189] sm:$0xff] %vm924_vm1, %v923_v4  ;;  %v921_v16 = vmax.f32 %v889_v10, 0.0  ;;  %v1259_v4 = vld [vmem:[#allocation2 + $0x129] sm:$0xff]  ;;  %v4252_v10 = vpop.permute.xlu0 %4251  ;;  %v1253_v21 = vld [vmem:[#allocation2 + $0xe1] sm:$0xff] }
 0x14f   : > { %v4555_v17 = vpack.i.bf16 %v1259_v4, %v1258_v0  ;;  %v1224_v25 = vld [vmem:[#allocation2 + $0x108] sm:$0xff]  ;;  %v4253_v55 = vunpack.i.l.bf16 %v4252_v10  ;;  %v1013_v61 = vld [vmem:[#allocation2] sm:$0xff] }
 0x150   : > { %4381 = vrot.lane.b32.xlu0 %v4380_v12, %s4888_s21  ;;  %1010 = vst.msk [vmem:[#allocation2 + $0x171] sm:$0xff] %vm924_vm1, %v921_v16  ;;  %v1221_v16 = vld [vmem:[#allocation2 + $0xe0] sm:$0xff] }
 0x151   : > { %4386 = vrot.lane.b32.xlu1 %v4370_v35, %s4890_s22  ;;  %v1188_v35 = vld [vmem:[#allocation2 + $0xca] sm:$0xff] }
 0x152   : > { %v4440_v36 = vpack.i.bf16 %v1188_v35, %v1187_v34  ;;  %v4257_v23 = vpop.permute.xlu0 %4256  ;;  %v1257_v34 = vld [vmem:[#allocation2 + $0x111] sm:$0xff] }
 0x153   : > { %v4259_v4 = vunpack.i.h.bf16 %v4257_v23 }
 0x154   : > { %4401 = vrot.lane.b32.xlu0 %v4400_v28, %s4889_s15 }
 0x155   : > { %4391 = vrot.lane.b32.xlu1 %v4375_v54, %s4888_s21  ;;  %v4490_v54 = vpack.i.bf16 %v1223_v50, %v1222_v49 }
 0x158   : > { %4406 = vrot.lane.b32.xlu0 %v4405_v31, %s4890_s22 }
 0x159   : > { %4396 = vrot.lane.b32.xlu1 %v4380_v12, %s4889_s15  ;;  %v1220_v12 = vld [vmem:[#allocation2 + $0xd8] sm:$0xff] }
 0x15a   : > { %v4520_v20 = vpack.i.bf16 %v1221_v16, %v1220_v12  ;;  %v4258_v12 = vunpack.i.l.bf16 %v4257_v23 }
 0x15c   : > { %4411 = vrot.lane.b32.xlu0 %v4410_v26, %s4888_s21 }
 0x15d   : > { %4416 = vrot.lane.b32.xlu1 %v4400_v28, %s4890_s22  ;;  %v1252_v28 = vld [vmem:[#allocation2 + $0xd9] sm:$0xff] }
 0x160   : > { %4431 = vrot.lane.b32.xlu0 %v4430_v29, %s4889_s15 }
 0x161   : > { %4421 = vrot.lane.b32.xlu1 %v4405_v31, %s4888_s21  ;;  %v4525_v31 = vpack.i.bf16 %v1253_v21, %v1252_v28  ;;  %v5501_v21 = vld [vmem:[#allocation2 + $0x152] sm:$0xff] }
 0x164   : > { %4436 = vrot.lane.b32.xlu0 %v4435_v33, %s4890_s22 }
 0x165   : > { %4426 = vrot.lane.b32.xlu1 %v4410_v26, %s4889_s15  ;;  %v1225_v26 = vld [vmem:[#allocation2 + $0x110] sm:$0xff] }
 0x166   : > { %v5463_v32 = vpack.i.bf16 %v1225_v26, %v1224_v25 }
 0x168   : > { %4441 = vrot.lane.b32.xlu0 %v4440_v36, %s4888_s21 }
 0x169   : > { %4446 = vrot.lane.b32.xlu1 %v4430_v29, %s4890_s22 }
 0x16c   : > { %4461 = vrot.lane.b32.xlu0 %v4460_v40, %s4889_s15 }
 0x16d   : > { %4451 = vrot.lane.b32.xlu1 %v4435_v33, %s4888_s21  ;;  %v1256_v33 = vld [vmem:[#allocation2 + $0x109] sm:$0xff] }
 0x16e   : > { %v5470_v38 = vpack.i.bf16 %v1257_v34, %v1256_v33 }
 0x170   : > { %4466 = vrot.lane.b32.xlu0 %v4465_v48, %s4890_s22 }
 0x171   : > { %4456 = vrot.lane.b32.xlu1 %v4440_v36, %s4889_s15 }
 0x174   : > { %4471 = vrot.lane.b32.xlu0 %v4470_v51, %s4888_s21 }
 0x175   : > { %4476 = vrot.lane.b32.xlu1 %v4460_v40, %s4890_s22  ;;  %v5474_v40 = vld [vmem:[#allocation2 + $0x112] sm:$0xff] }
 0x176   : > { %v5483_v50 = vpack.i.bf16 %v5474_v40, %v5472_v39 }
 0x178   : > { %4491 = vrot.lane.b32.xlu0 %v4490_v54, %s4889_s15 }
 0x179   : > { %4481 = vrot.lane.b32.xlu1 %v4465_v48, %s4888_s21 }
 0x17c   : > { %4496 = vrot.lane.b32.xlu0 %v4495_v57, %s4890_s22 }
 0x17d   : > { %4486 = vrot.lane.b32.xlu1 %v4470_v51, %s4889_s15  ;;  %v5488_v51 = vpack.i.bf16 %v1231_v44, %v1230_v42 }
 0x180   : > { %4501 = vrot.lane.b32.xlu0 %v4500_v60, %s4888_s21 }
 0x181   : > { %4506 = vrot.lane.b32.xlu1 %v4490_v54, %s4890_s22  ;;  %v4254_v54 = vunpack.i.h.bf16 %v4252_v10  ;;  %v2070_v10 = vsel %vm924_vm1, %v1013_v61, %v4253_v55 }
 0x184   : > { %4531 = vrot.lane.b32.xlu0 %v4530_v2, %s4888_s21 }
 0x185   : > { %4511 = vrot.lane.b32.xlu1 %v4495_v57, %s4888_s21  ;;  %v1263_v57 = vld [vmem:[#allocation2 + $0x159] sm:$0xff] }
 0x188   : > { %4551 = vrot.lane.b32.xlu0 %v4550_v3, %s4889_s15 }
 0x189   : > { %4516 = vrot.lane.b32.xlu1 %v4500_v60, %s4889_s15  ;;  %v1014_v60 = vld [vmem:[#allocation2 + $0x8] sm:$0xff] }
 0x18a   : > { %v2071_v16 = vsel %vm924_vm1, %v1014_v60, %v4254_v54 }
 0x18b   : > { %v2103_v34 = vsel %vm604_vm0, %v2071_v16, %v4259_v4  ;;  %v1270_v16 = vld [vmem:[#allocation2 + $0x32] sm:$0xff] }
 0x18c   : > { %4556 = vrot.lane.b32.xlu0 %v4555_v17, %s4890_s22 }
 0x18d   : > { %4521 = vrot.lane.b32.xlu1 %v4520_v20, %s4889_s15 }
 0x190   : > { %4561 = vrot.lane.b32.xlu0 %v5454_v24, %s4888_s21 }
 0x191   : > { %4526 = vrot.lane.b32.xlu1 %v4525_v31, %s4890_s22 }
 0x192   : > { %v5459_v29 = vpop.permute.xlu0 %4261 }
 0x193   : > { %v5461_v30 = vpop.permute.xlu1 %4266 }
 0x194   : > { %4581 = vrot.lane.b32.xlu0 %v5463_v32, %s4889_s15 }
 0x195   : > { %4536 = vrot.lane.b32.xlu1 %v4520_v20, %s4890_s22 }
 0x196   : > { %v4282_v35 = vpop.permute.xlu0 %4281 }
 0x197   : > { %v5468_v36 = vpop.permute.xlu1 %4271  ;;  %v4284_v42 = vunpack.i.h.bf16 %v4282_v35  ;;  %v4283_v44 = vunpack.i.l.bf16 %v4282_v35 }
 0x198   : > { %4586 = vrot.lane.b32.xlu0 %v5470_v38, %s4890_s22 }
 0x199   : > { %4541 = vrot.lane.b32.xlu1 %v4525_v31, %s4888_s21  ;;  %v5503_v31 = vld [vmem:[#allocation2 + $0x15a] sm:$0xff] }
 0x19a   : > { %v4287_v48 = vpop.permute.xlu0 %4286 }
 0x19b   : > { %v5479_v49 = vpop.permute.xlu1 %4276  ;;  %v4288_v60 = vunpack.i.l.bf16 %v4287_v48 }
 0x19c   : > { %4591 = vrot.lane.b32.xlu0 %v5483_v50, %s4888_s21 }
 0x19d   : > { %4546 = vrot.lane.b32.xlu1 %v4530_v2, %s4889_s15  ;;  %v5497_v2 = vpack.i.bf16 %v1263_v57, %v1262_v56  ;;  %v5516_v56 = vpack.i.bf16 %v5503_v31, %v5501_v21  ;;  %v4289_v57 = vunpack.i.h.bf16 %v4287_v48 }
 0x19e   : > { %v5492_v0 = vpop.permute.xlu0 %4291 }
 0x19f   : > { %v5490_v63 = vpop.permute.xlu1 %4296 }
 0x1a0   : > { %4611 = vrot.lane.b32.xlu0 %v5488_v51, %s4889_s15 }
 0x1a1   : > { %4566 = vrot.lane.b32.xlu1 %v4550_v3, %s4890_s22  ;;  %v2102_v3 = vsel %vm604_vm0, %v2070_v10, %v4258_v12  ;;  %v1271_v10 = vld [vmem:[#allocation2 + $0x3a] sm:$0xff] }
 0x1a2   : > { %v4302_v28 = vpop.permute.xlu0 %4301 }
 0x1a3   : > { %v4307_v20 = vpop.permute.xlu1 %4306  ;;  %v4304_v23 = vunpack.i.h.bf16 %v4302_v28  ;;  %v4303_v33 = vunpack.i.l.bf16 %v4302_v28  ;;  %v1228_v28 = vld [vmem:[#allocation2 + $0x138] sm:$0xff] }
 0x1a4   : > { %v4309_v25 = vunpack.i.h.bf16 %v4307_v20  ;;  %v4308_v26 = vunpack.i.l.bf16 %v4307_v20  ;;  %4616 = vrot.lane.b32.xlu0 %v5497_v2, %s4890_s22 }
 0x1a5   : > { %4571 = vrot.lane.b32.xlu1 %v4555_v17, %s4888_s21  ;;  %v2168_v54 = vsel %vm924_vm1, %v5273_v45, %v4304_v23  ;;  %v2167_v55 = vsel %vm924_vm1, %v5283_v52, %v4303_v33  ;;  %v1229_v23 = vld [vmem:[#allocation2 + $0x140] sm:$0xff] }
 0x1a6   : > { %v5518_v61 = vpop.permute.xlu0 %4311  ;;  %v2199_v17 = vsel %vm604_vm0, %v2167_v55, %v4283_v44  ;;  %v2200_v4 = vsel %vm604_vm0, %v2168_v54, %v4284_v42  ;;  %v2136_v12 = vsel %vm2134_vm3, %v2103_v34, %v4309_v25  ;;  %v2135_v45 = vsel %vm2134_vm3, %v2102_v3, %v4308_v26  ;;  %v1272_v54 = vld [vmem:[#allocation2 + $0x4a] sm:$0xff]  ;;  %v1273_v55 = vld [vmem:[#allocation2 + $0x52] sm:$0xff] }
 0x1a7   : > { %v5520_v35 = vpop.permute.xlu1 %4326  ;;  %v2231_v52 = vsel %vm2134_vm3, %v2199_v17, %v4288_v60  ;;  %v2232_v48 = vsel %vm2134_vm3, %v2200_v4, %v4289_v57  ;;  %v2263_v33 = vpack.c.bf16 %v2136_v12, %v2135_v45  ;;  %v4294_v26 = vunpack.i.h.bf16 %v5492_v0  ;;  %v1274_v57 = vld [vmem:[#allocation2 + $0x62] sm:$0xff]  ;;  %v1275_v60 = vld [vmem:[#allocation2 + $0x6a] sm:$0xff]  ;;  %v1260_v17 = vld [vmem:[#allocation2 + $0x139] sm:$0xff] }
 0x1a8   : > { %4621 = vrot.lane.b32.xlu0 %v5516_v56, %s4888_s21  ;;  %v2264_v20 = vpack.c.bf16 %v2232_v48, %v2231_v52  ;;  %v4293_v3 = vunpack.i.l.bf16 %v5492_v0  ;;  %v2265_v34 = vpack.c.bf16 %v1271_v10, %v1270_v16  ;;  %v5543_v44 = vpack.i.bf16 %v1229_v23, %v1228_v28  ;;  %v1261_v4 = vld [vmem:[#allocation2 + $0x141] sm:$0xff] }
 0x1a9   : > { %4576 = vrot.lane.b32.xlu1 %v5454_v24, %s4889_s15  ;;  %v4767_v24 = vld [vmem:[%s6387_s4 + $0x80] sm:$0xff]   ;;  %v4299_v0 = vunpack.i.h.bf16 %v5490_v63  ;;  %v4298_v45 = vunpack.i.l.bf16 %v5490_v63  ;;  %v1235_v16 = vld [vmem:[#allocation2 + $0x188] sm:$0xff]  ;;  %v4264_v63 = vunpack.i.h.bf16 %v5459_v29  ;;  %v4263_v28 = vunpack.i.l.bf16 %v5459_v29 }
 0x1aa   : > { %v5532_v42 = vpop.permute.xlu0 %4316  ;;  %2535 = vmatprep.mubr.bf16.mxu0 %v2264_v20  ;;  %v5547_v12 = vld [vmem:[#allocation2 + $0x13a] sm:$0xff]  ;;  %v5557_v48 = vld [vmem:[#allocation2 + $0x142] sm:$0xff]  ;;  %v2072_v10 = vsel %vm924_vm1, %v5302_v1, %v4293_v3  ;;  %v2073_v20 = vsel %vm924_vm1, %v5296_v59, %v4294_v26  ;;  %v5567_v23 = vpack.i.bf16 %v1261_v4, %v1260_v17  ;;  %v4269_v29 = vunpack.i.h.bf16 %v5461_v30 }
 0x1ab   : > { %v5534_v25 = vpop.permute.xlu1 %4331  ;;  %2536 = vmatmul.mubr.bf16.vlgmr.msra.gmra.mxu0 %v2263_v33  ;;  %v2268_v33 = vpack.c.bf16 %v1273_v55, %v1272_v54  ;;  %v5571_v53 = vpack.i.bf16 %v5557_v48, %v5547_v12  ;;  %v5575_v3 = vld [vmem:[#allocation2 + $0x181] sm:$0xff]  ;;  %v5577_v59 = vld [vmem:[#allocation2 + $0x189] sm:$0xff]  ;;  %v4268_v26 = vunpack.i.l.bf16 %v5461_v30  ;;  %v2104_v54 = vsel %vm604_vm0, %v2072_v10, %v4298_v45 }
 0x1ac   : > { %4069 = vmatpush3.bf16.msra.mxu0 %v5294_v58  ;;  %4072 = vmatprep.mubr.msk.bf16.mxu0 %vm924_vm1, %v2265_v34  ;;  %v1234_v58 = vld [vmem:[#allocation2 + $0x180] sm:$0xff]  ;;  %v2271_v34 = vpack.c.bf16 %v1275_v60, %v1274_v57  ;;  %v2105_v55 = vsel %vm604_vm0, %v2073_v20, %v4299_v0  ;;  %v4675_v45 = vpack.i.bf16 %v5577_v59, %v5575_v3  ;;  %v4279_v59 = vunpack.i.h.bf16 %v5479_v49 }
 0x1ad   : > { %4596 = vrot.lane.b32.xlu1 %v5463_v32, %s4890_s22  ;;  %4636 = vrot.lane.b32.xlu0 %v5543_v44, %s4889_s15  ;;  %v5573_v1 = vpack.i.bf16 %v1235_v16, %v1234_v58  ;;  %v1143_v58 = vld [vmem:[#allocation2 + $0x31] sm:$0xff]  ;;  %v1144_v16 = vld [vmem:[#allocation2 + $0x39] sm:$0xff]  ;;  %v2137_v20 = vsel %vm2134_vm3, %v2104_v54, %v4268_v26  ;;  %v1145_v26 = vld [vmem:[#allocation2 + $0x49] sm:$0xff]  ;;  %v4314_v54 = vunpack.i.h.bf16 %v5518_v61 }
 0x1ae   : > { %v5553_v32 = vpop.permute.xlu0 %4321  ;;  %4070 = vmatprep.subr.bf16.mxu0 %v4767_v24  ;;  %v2169_v30 = vsel %vm924_vm1, %v1143_v58, %v4263_v28  ;;  %v2170_v19 = vsel %vm924_vm1, %v1144_v16, %v4264_v63  ;;  %v1279_v58 = vld [vmem:[#allocation2 + $0x9a] sm:$0xff]  ;;  %v4318_v16 = vunpack.i.l.bf16 %v5532_v42 }
 0x1af   : > { %v5555_v52 = vpop.permute.xlu1 %4336 }
 0x1b0   : > { %4071 = vmatpush3.bf16.msra.mxu0 %v4767_v24  ;;  %v4339_v15 = vunpack.i.h.bf16 %v5555_v52 }
 0x1b1   : > { %4601 = vrot.lane.b32.xlu1 %v5470_v38, %s4888_s21  ;;  %4641 = vrot.lane.b32.xlu0 %v5567_v23, %s4890_s22 }
 0x1b2   : > { %v4347_v38 = vpop.permute.xlu0 %4346 }
 0x1b3   : > { %v4342_v24 = vpop.permute.xlu1 %4341  ;;  %v4349_v57 = vunpack.i.h.bf16 %v4347_v38  ;;  %v4348_v60 = vunpack.i.l.bf16 %v4347_v38  ;;  %4073 = vmatmul.mubr.msk.bf16.vlgmr.msra.gmra.mxu0 %vm924_vm1, %v2268_v33  ;;  %v2138_v33 = vsel %vm2134_vm3, %v2105_v55, %v4269_v29  ;;  %v4274_v38 = vunpack.i.h.bf16 %v5468_v36  ;;  %v1146_v55 = vld [vmem:[#allocation2 + $0x51] sm:$0xff] }
 0x1b4   : > { %v4344_v17 = vunpack.i.h.bf16 %v4342_v24  ;;  %v4343_v4 = vunpack.i.l.bf16 %v4342_v24  ;;  %4076 = vmatprep.mubr.msk.bf16.mxu0 %vm924_vm1, %v2271_v34 }
 0x1b5   : > { %4606 = vrot.lane.b32.xlu1 %v5483_v50, %s4889_s15  ;;  %v4273_v50 = vunpack.i.l.bf16 %v5468_v36  ;;  %4646 = vrot.lane.b32.xlu0 %v5571_v53, %s4888_s21  ;;  %v4313_v36 = vunpack.i.l.bf16 %v5518_v61 }
 0x1b6   : > { %v2201_v0 = vsel %vm604_vm0, %v2169_v30, %v4343_v4  ;;  %v2202_v10 = vsel %vm604_vm0, %v2170_v19, %v4344_v17  ;;  %v4352_v63 = vpop.permute.xlu0 %4351  ;;  %v4278_v19 = vunpack.i.l.bf16 %v5479_v49  ;;  %v2266_v4 = vpack.c.bf16 %v2138_v33, %v2137_v20 }
 0x1b7   : > { %v4357_v28 = vpop.permute.xlu1 %4356  ;;  %v2233_v3 = vsel %vm2134_vm3, %v2201_v0, %v4348_v60  ;;  %v2234_v34 = vsel %vm2134_vm3, %v2202_v10, %v4349_v57  ;;  %v4354_v24 = vunpack.i.h.bf16 %v4352_v63  ;;  %v4353_v29 = vunpack.i.l.bf16 %v4352_v63  ;;  %v1278_v60 = vld [vmem:[#allocation2 + $0x92] sm:$0xff] }
 0x1b8   : > { %v2267_v17 = vpack.c.bf16 %v2234_v34, %v2233_v3  ;;  %v4319_v57 = vunpack.i.h.bf16 %v5532_v42  ;;  %v4359_v0 = vunpack.i.h.bf16 %v4357_v28  ;;  %v4358_v10 = vunpack.i.l.bf16 %v4357_v28 }
 0x1b9   : > { %4626 = vrot.lane.b32.xlu1 %v5488_v51, %s4890_s22  ;;  %v2171_v49 = vsel %vm924_vm1, %v1145_v26, %v4353_v29  ;;  %v2172_v30 = vsel %vm924_vm1, %v1146_v55, %v4354_v24  ;;  %4671 = vrot.lane.b32.xlu0 %v5573_v1, %s4889_s15  ;;  %v2074_v42 = vsel %vm924_vm1, %v5233_v7, %v4273_v50  ;;  %v1283_v24 = vld [vmem:[#allocation2 + $0xca] sm:$0xff] }
 0x1ba   : > { %2543 = vmatprep.mubr.bf16.mxu1 %v2267_v17  ;;  %v5615_v51 = vpop.permute.xlu0 %4371  ;;  %v2203_v20 = vsel %vm604_vm0, %v2171_v49, %v4313_v36  ;;  %v2204_v33 = vsel %vm604_vm0, %v2172_v30, %v4314_v54  ;;  %v2277_v63 = vpack.c.bf16 %v1279_v58, %v1278_v60  ;;  %v2075_v3 = vsel %vm924_vm1, %v5236_v11, %v4274_v38  ;;  %v1232_v11 = vld [vmem:[#allocation2 + $0x168] sm:$0xff]  ;;  %v1233_v38 = vld [vmem:[#allocation2 + $0x170] sm:$0xff] }
 0x1bb   : > { %v4362_v61 = vpop.permute.xlu1 %4361  ;;  %2544 = vmatmul.mubr.bf16.vlgmr.msra.gmra.mxu1 %v2266_v4  ;;  %4077 = vmatmul.mubr.msk.bf16.gmra.mxu0 %vm924_vm1, %v2274_v18  ;;  %v2235_v28 = vsel %vm2134_vm3, %v2203_v20, %v4318_v16  ;;  %v2236_v34 = vsel %vm2134_vm3, %v2204_v33, %v4319_v57  ;;  %v2106_v26 = vsel %vm604_vm0, %v2074_v42, %v4278_v19  ;;  %v5643_v54 = vld [vmem:[#allocation2 + $0x169] sm:$0xff]  ;;  %v5645_v36 = vld [vmem:[#allocation2 + $0x171] sm:$0xff]  ;;  %v4323_v30 = vunpack.i.l.bf16 %v5553_v32 }
 0x1bc   : > { %v2107_v7 = vsel %vm604_vm0, %v2075_v3, %v4279_v59  ;;  %4080 = vmatprep.mubr.msk.bf16.mxu0 %vm924_vm1, %v2277_v63  ;;  %v2270_v50 = vpack.c.bf16 %v2236_v34, %v2235_v28  ;;  %v2139_v18 = vsel %vm2134_vm3, %v2106_v26, %v4358_v10  ;;  %v5641_v19 = vpack.i.bf16 %v1233_v38, %v1232_v11  ;;  %v1282_v59 = vld [vmem:[#allocation2 + $0xc2] sm:$0xff]  ;;  %v5663_v57 = vld [vmem:[#allocation2 + $0x16a] sm:$0xff]  ;;  %v5665_v16 = vld [vmem:[#allocation2 + $0x172] sm:$0xff] }
 0x1bd   : > { %4631 = vrot.lane.b32.xlu1 %v5497_v2, %s4888_s21  ;;  %4676 = vrot.lane.b32.xlu0 %v4675_v45, %s4890_s22  ;;  %v2140_v2 = vsel %vm2134_vm3, %v2107_v7, %v4359_v0  ;;  %v4363_v17 = vunpack.i.l.bf16 %v4362_v61  ;;  %v2283_v4 = vpack.c.bf16 %v1283_v24, %v1282_v59  ;;  %v5661_v58 = vpack.i.bf16 %v5645_v36, %v5643_v54  ;;  %v1019_v0 = vld [vmem:[#allocation2 + $0x48] sm:$0xff]  ;;  %v1237_v24 = vld [vmem:[#allocation2 + $0x1a0] sm:$0xff] }
 0x1be   : > { %v5635_v13 = vpop.permute.xlu0 %4376  ;;  %2551 = vmatprep.mubr.bf16.mxu1 %v2270_v50  ;;  %v2269_v29 = vpack.c.bf16 %v2140_v2, %v2139_v18  ;;  %v5679_v20 = vld [vmem:[#allocation2 + $0x182] sm:$0xff]  ;;  %v5681_v33 = vld [vmem:[#allocation2 + $0x18a] sm:$0xff]  ;;  %v4329_v26 = vunpack.i.h.bf16 %v5520_v35  ;;  %v2173_v50 = vsel %vm924_vm1, %v5331_v22, %v4323_v30  ;;  %v2292_v18 = vpack.c.bf16 %v5474_v40, %v5472_v39 }
 0x1bf   : > { %v4367_v9 = vpop.permute.xlu1 %4366  ;;  %v2076_v10 = vsel %vm924_vm1, %v1019_v0, %v4363_v17  ;;  %v1148_v7 = vld [vmem:[#allocation2 + $0x69] sm:$0xff]  ;;  %v1269_v17 = vld [vmem:[#allocation2 + $0x1a1] sm:$0xff]  ;;  %v4334_v40 = vunpack.i.h.bf16 %v5534_v25  ;;  %v6417_v30 = vpack.c.bf16 %v5364_v5, %v5361_v62  ;;  %v4374_v5 = vunpack.i.h.bf16 %v5615_v51 }
 0x1c0   : > { %v4368_v60 = vunpack.i.l.bf16 %v4367_v9  ;;  %v4369_v49 = vunpack.i.h.bf16 %v4367_v9  ;;  %v4695_v9 = vpack.i.bf16 %v5681_v33, %v5679_v20 }
 0x1c1   : > { %4651 = vrot.lane.b32.xlu1 %v5543_v44, %s4890_s22  ;;  %4681 = vrot.lane.b32.xlu0 %v5641_v19, %s4889_s15  ;;  %v4364_v44 = vunpack.i.h.bf16 %v4362_v61  ;;  %v5677_v61 = vpack.i.bf16 %v5665_v16, %v5663_v57 }
 0x1c2   : > { %v5649_v45 = vpop.permute.xlu0 %4381  ;;  %v2108_v63 = vsel %vm604_vm0, %v2076_v10, %v4368_v60 }
 0x1c3   : > { %v5651_v55 = vpop.permute.xlu1 %4386  ;;  %2552 = vmatmul.mubr.bf16.gmra.mxu1 %v2269_v29  ;;  %4081 = vmatmul.mubr.msk.bf16.gmra.mxu0 %vm924_vm1, %v2280_v46  ;;  %v4324_v46 = vunpack.i.h.bf16 %v5553_v32  ;;  %v4328_v32 = vunpack.i.l.bf16 %v5520_v35  ;;  %v1268_v29 = vld [vmem:[#allocation2 + $0x199] sm:$0xff] }
 0x1c4   : > { %4084 = vmatprep.mubr.msk.bf16.mxu0 %vm924_vm1, %v2283_v4  ;;  %v4333_v4 = vunpack.i.l.bf16 %v5534_v25  ;;  %v4720_v25 = vpack.i.bf16 %v1269_v17, %v1268_v29 }
 0x1c5   : > { %4656 = vrot.lane.b32.xlu1 %v5567_v23, %s4888_s21  ;;  %4686 = vrot.lane.b32.xlu0 %v5661_v58, %s4890_s22  ;;  %v1020_v23 = vld [vmem:[#allocation2 + $0x50] sm:$0xff]  ;;  %v2174_v2 = vsel %vm924_vm1, %v1148_v7, %v4324_v46  ;;  %v2141_v22 = vsel %vm2134_vm3, %v2108_v63, %v4328_v32 }
 0x1c6   : > { %v4402_v41 = vpop.permute.xlu0 %4401  ;;  %v2077_v42 = vsel %vm924_vm1, %v1020_v23, %v4364_v44  ;;  %v2078_v62 = vsel %vm924_vm1, %v5310_v6, %v4333_v4 }
 0x1c7   : > { %v5671_v37 = vpop.permute.xlu1 %4391  ;;  %v4404_v3 = vunpack.i.h.bf16 %v4402_v41  ;;  %v4403_v28 = vunpack.i.l.bf16 %v4402_v41  ;;  %v2109_v34 = vsel %vm604_vm0, %v2077_v42, %v4369_v49  ;;  %v4338_v49 = vunpack.i.l.bf16 %v5555_v52  ;;  %v1150_v52 = vld [vmem:[#allocation2 + $0x81] sm:$0xff] }
 0x1c8   : > { %v2142_v39 = vsel %vm2134_vm3, %v2109_v34, %v4329_v26  ;;  %v2079_v34 = vsel %vm924_vm1, %v5312_v8, %v4334_v40 }
 0x1c9   : > { %4661 = vrot.lane.b32.xlu1 %v5571_v53, %s4889_s15  ;;  %4691 = vrot.lane.b32.xlu0 %v5677_v61, %s4888_s21  ;;  %v1236_v53 = vld [vmem:[#allocation2 + $0x198] sm:$0xff]  ;;  %v2206_v44 = vsel %vm604_vm0, %v2174_v2, %v4404_v3  ;;  %v2205_v60 = vsel %vm604_vm0, %v2173_v50, %v4403_v28  ;;  %v2272_v63 = vpack.c.bf16 %v2142_v39, %v2141_v22  ;;  %v4373_v3 = vunpack.i.l.bf16 %v5615_v51 }
 0x1ca   : > { %v4407_v38 = vpop.permute.xlu0 %4406  ;;  %v4700_v46 = vpack.i.bf16 %v1237_v24, %v1236_v53  ;;  %v1149_v28 = vld [vmem:[#allocation2 + $0x79] sm:$0xff]  ;;  %v2110_v26 = vsel %vm604_vm0, %v2078_v62, %v4338_v49  ;;  %v4379_v50 = vunpack.i.h.bf16 %v5635_v13  ;;  %v4378_v51 = vunpack.i.l.bf16 %v5635_v13 }
 0x1cb   : > { %v5694_v11 = vpop.permute.xlu1 %4396  ;;  %v4409_v35 = vunpack.i.h.bf16 %v4407_v38  ;;  %v4408_v59 = vunpack.i.l.bf16 %v4407_v38  ;;  %4085 = vmatmul.mubr.msk.bf16.gmra.mxu0 %vm924_vm1, %v2286_v27  ;;  %v2111_v53 = vsel %vm604_vm0, %v2079_v34, %v4339_v15  ;;  %v6418_v24 = vpack.c.bf16 %v5392_v47, %v5389_v43 }
 0x1cc   : > { %4088 = vmatprep.mubr.msk.bf16.mxu0 %vm924_vm1, %v6417_v30  ;;  %v2298_v43 = vpack.c.bf16 %v5557_v48, %v5547_v12  ;;  %v2301_v47 = vpack.c.bf16 %v5503_v31, %v5501_v21  ;;  %v4384_v30 = vunpack.i.h.bf16 %v5649_v45  ;;  %v4383_v12 = vunpack.i.l.bf16 %v5649_v45  ;;  %v1023_v48 = vld [vmem:[#allocation2 + $0x78] sm:$0xff]  ;;  %v1024_v21 = vld [vmem:[#allocation2 + $0x80] sm:$0xff] }
 0x1cd   : > { %4666 = vrot.lane.b32.xlu1 %v5516_v56, %s4889_s15  ;;  %v2237_v0 = vsel %vm2134_vm3, %v2205_v60, %v4408_v59  ;;  %v2238_v14 = vsel %vm2134_vm3, %v2206_v44, %v4409_v35  ;;  %4696 = vrot.lane.b32.xlu0 %v4695_v9, %s4888_s21 }
 0x1ce   : > { %v4412_v27 = vpop.permute.xlu0 %4411  ;;  %v2273_v41 = vpack.c.bf16 %v2238_v14, %v2237_v0 }
 0x1cf   : > { %v4417_v56 = vpop.permute.xlu1 %4416  ;;  %v4414_v23 = vunpack.i.h.bf16 %v4412_v27  ;;  %v4413_v10 = vunpack.i.l.bf16 %v4412_v27 }
 0x1d0   : > { %v4418_v42 = vunpack.i.l.bf16 %v4417_v56  ;;  %v4419_v32 = vunpack.i.h.bf16 %v4417_v56  ;;  %2559 = vmatprep.mubr.bf16.mxu1 %v2273_v41  ;;  %v1151_v56 = vld [vmem:[#allocation2 + $0x91] sm:$0xff]  ;;  %v1152_v41 = vld [vmem:[#allocation2 + $0x99] sm:$0xff] }
 0x1d1   : > { %4706 = vrot.lane.b32.xlu1 %v5641_v19, %s4890_s22  ;;  %v2175_v7 = vsel %vm924_vm1, %v1149_v28, %v4413_v10  ;;  %v2176_v6 = vsel %vm924_vm1, %v1150_v52, %v4414_v23  ;;  %2560 = vmatmul.mubr.bf16.gmra.mxu1 %v2272_v63  ;;  %v2304_v10 = vpack.c.bf16 %v5665_v16, %v5663_v57  ;;  %v1300_v57 = vld [vmem:[#allocation2 + $0x19a] sm:$0xff]  ;;  %v1301_v16 = vld [vmem:[#allocation2 + $0x1a2] sm:$0xff] }
 0x1d2   : > { %4701 = vrot.lane.b32.xlu0 %v4700_v46, %s4889_s15  ;;  %v5736_v9 = vpop.permute.xlu0 %4431  ;;  %v2207_v19 = vsel %vm604_vm0, %v2175_v7, %v4373_v3  ;;  %v2208_v8 = vsel %vm604_vm0, %v2176_v6, %v4374_v5  ;;  %v2143_v2 = vsel %vm2134_vm3, %v2110_v26, %v4418_v42  ;;  %v2144_v59 = vsel %vm2134_vm3, %v2111_v53, %v4419_v32 }
 0x1d3   : > { %v4422_v38 = vpop.permute.xlu1 %4421  ;;  %4089 = vmatmul.mubr.msk.bf16.gmra.mxu0 %vm924_vm1, %v2292_v18  ;;  %v2239_v13 = vsel %vm2134_vm3, %v2207_v19, %v4378_v51  ;;  %v2240_v35 = vsel %vm2134_vm3, %v2208_v8, %v4379_v50  ;;  %v2275_v18 = vpack.c.bf16 %v2144_v59, %v2143_v2  ;;  %v4389_v46 = vunpack.i.h.bf16 %v5651_v55  ;;  %v1025_v19 = vld [vmem:[#allocation2 + $0x90] sm:$0xff] }
 0x1d4   : > { %4092 = vmatprep.mubr.msk.bf16.mxu0 %vm924_vm1, %v6418_v24  ;;  %v2276_v22 = vpack.c.bf16 %v2240_v35, %v2239_v13  ;;  %v4424_v44 = vunpack.i.h.bf16 %v4422_v38  ;;  %v4423_v60 = vunpack.i.l.bf16 %v4422_v38  ;;  %v2307_v42 = vpack.c.bf16 %v5681_v33, %v5679_v20  ;;  %v1026_v35 = vld [vmem:[#allocation2 + $0x98] sm:$0xff]  ;;  %v1153_v24 = vld [vmem:[#allocation2 + $0xa9] sm:$0xff] }
 0x1d5   : > { %4711 = vrot.lane.b32.xlu1 %v5661_v58, %s4888_s21  ;;  %v2177_v63 = vsel %vm924_vm1, %v1151_v56, %v4383_v12  ;;  %v2178_v62 = vsel %vm924_vm1, %v1152_v41, %v4384_v30  ;;  %v4394_v20 = vunpack.i.h.bf16 %v5671_v37  ;;  %v4393_v33 = vunpack.i.l.bf16 %v5671_v37  ;;  %s6186_s21 = scalar_lea.vmem [#allocation6], %s3716_s18 }
 0x1d6   : > { %4721 = vrot.lane.b32.xlu0 %v4720_v25, %s4890_s22  ;;  %v5753_v17 = vpop.permute.xlu0 %4436  ;;  %2567 = vmatprep.mubr.bf16.mxu1 %v2276_v22  ;;  %v2080_v31 = vsel %vm924_vm1, %v1023_v48, %v4423_v60  ;;  %v2081_v0 = vsel %vm924_vm1, %v1024_v21, %v4424_v44  ;;  %v4388_v25 = vunpack.i.l.bf16 %v5651_v55  ;;  %v4399_v7 = vunpack.i.h.bf16 %v5694_v11  ;;  %v1154_v22 = vld [vmem:[#allocation2 + $0xb1] sm:$0xff] }
 0x1d7   : > { %v4427_v29 = vpop.permute.xlu1 %4426  ;;  %v4398_v6 = vunpack.i.l.bf16 %v5694_v11  ;;  %v2310_v13 = vpack.c.bf16 %v1301_v16, %v1300_v57  ;;  %v4434_v37 = vunpack.i.h.bf16 %v5736_v9  ;;  %v4433_v59 = vunpack.i.l.bf16 %v5736_v9  ;;  %v4768_v57 = vld [vmem:[%s6393_s10 + $0x18] sm:$0xff]  }
 0x1d8   : > { %v4429_v39 = vunpack.i.h.bf16 %v4427_v29  ;;  %v2082_v11 = vsel %vm924_vm1, %v1025_v19, %v4393_v33  ;;  %v4439_v60 = vunpack.i.h.bf16 %v5753_v17  ;;  %4140 = vmatprep.subr.bf16.mxu1 %v4768_v57 }
 0x1d9   : > { %4716 = vrot.lane.b32.xlu1 %v5677_v61, %s4889_s15  ;;  %2568 = vmatmul.mubr.bf16.gmra.mxu1 %v2275_v18  ;;  %v4428_v61 = vunpack.i.l.bf16 %v4427_v29  ;;  %v2114_v12 = vsel %vm604_vm0, %v2082_v11, %v4398_v6  ;;  %s3839_s15 = sshll.u32 %s4985_s29, 12  ;;  %s4891_s29 = smov [#allocation6]  }
 0x1da   : > { %v5757_v58 = vpop.permute.xlu0 %4441  ;;  %v2113_v27 = vsel %vm604_vm0, %v2081_v0, %v4429_v39  ;;  %v4438_v39 = vunpack.i.l.bf16 %v5753_v17  ;;  %4141 = vmatpush3.bf16.msra.mxu1 %v4768_v57  ;;  %s6336_s17 = scalar_lea.hbm %s6419_s27, %s3839_s15  ;;  %s4822_s23 = sshll.u32 %s4891_s29, 4  ;;  %s4823_s23 = int_to_ptr.vmem [resolvable:$false] %s4822_s23 }
 0x1db   : > { %v5759_v4 = vpop.permute.xlu1 %4446  ;;  %4093 = vmatmul.mubr.msk.bf16.gmra.mxu0 %vm924_vm1, %v2298_v43  ;;  %v2146_v32 = vsel %vm2134_vm3, %v2113_v27, %v4389_v46  ;;  %v2083_v43 = vsel %vm924_vm1, %v1026_v35, %v4394_v20  ;;  %s4824_s24 = scalar_lea.vmem %s4823_s23, 8192 }
 0x1dc   : > { %4096 = vmatprep.mubr.msk.bf16.mxu0 %vm924_vm1, %v2301_v47  ;;  %v2115_v48 = vsel %vm604_vm0, %v2083_v43, %v4399_v7  ;;  %v4449_v20 = vunpack.i.h.bf16 %v5759_v4  ;;  %v4448_v33 = vunpack.i.l.bf16 %v5759_v4 }
 0x1dd   : > { %4726 = vrot.lane.b32.xlu1 %v5573_v1, %s4890_s22  ;;  %v2112_v1 = vsel %vm604_vm0, %v2080_v31, %v4428_v61  ;;  %s3635_s22 = sshll.u32 %s6186_s21, 4  ;;  %s6338_s22 = int_to_ptr.vmem [resolvable:$true] %s3635_s22 }
 0x1de   : > { %v4462_v49 = vpop.permute.xlu0 %4461  ;;  %v2145_v55 = vsel %vm2134_vm3, %v2112_v1, %v4388_v25  ;;  %s4818_s19 = scalar_lea.vmem %s6338_s22, 4096  ;;  %p4825_p5 = scmp.lt.s32.totalorder %s6338_s22, %s4823_s23 }
 0x1df   : > { %v5769_v40 = vpop.permute.xlu1 %4451  ;;  %v4464_v14 = vunpack.i.h.bf16 %v4462_v49  ;;  %v4463_v15 = vunpack.i.l.bf16 %v4462_v49  ;;  %v2278_v2 = vpack.c.bf16 %v2146_v32, %v2145_v55  ;;  %p4819_p11 = scmp.ne.s32.totalorder %s6338_s22, %s4818_s19  ;;  %p4826_p7 = scmp.lt.s32.totalorder %s4824_s24, %s4818_s19 }
 0x1e1   : > { %v2210_v28 = vsel %vm604_vm0, %v2178_v62, %v4464_v14  ;;  %v2209_v52 = vsel %vm604_vm0, %v2177_v63, %v4463_v15  ;;  %p4820_p13 = pnand %p4819_p11, %p6421_p12  ;;  %p4827_p8 = por %p4826_p7, %p4825_p5 }
 0x1e2   : > { %v4467_v45 = vpop.permute.xlu0 %4466 }
 0x1e3   : > { %v5779_v23 = vpop.permute.xlu1 %4456  ;;  %v4469_v5 = vunpack.i.h.bf16 %v4467_v45  ;;  %v4468_v3 = vunpack.i.l.bf16 %v4467_v45  ;;  %4097 = vmatmul.mubr.msk.bf16.gmra.mxu0 %vm924_vm1, %v2304_v10  ;;  %v4443_v45 = vunpack.i.l.bf16 %v5757_v58  ;;  %p4821_p4 = pneg %p4820_p13 }
 0x1e4   : > { %4100 = vmatprep.mubr.msk.bf16.mxu0 %vm924_vm1, %v2307_v42 }
 0x1e5   : > { %v2241_v34 = vsel %vm2134_vm3, %v2209_v52, %v4468_v3  ;;  %v2242_v26 = vsel %vm2134_vm3, %v2210_v28, %v4469_v5  ;;  %v1155_v28 = vld [vmem:[#allocation2 + $0xc1] sm:$0xff]  ;;  %v4444_v52 = vunpack.i.h.bf16 %v5757_v58  ;;  %p4828_p10 = pnand %p4827_p8, %p4821_p4 }
 0x1e6   : > { %v4472_v50 = vpop.permute.xlu0 %4471  ;;  %v2279_v38 = vpack.c.bf16 %v2242_v26, %v2241_v34  ;;  %v2181_v16 = vsel %vm924_vm1, %v1155_v28, %v4443_v45  ;;  %v1157_v34 = vld [vmem:[#allocation2 + $0xd9] sm:$0xff]  ;;  %v1158_v26 = vld [vmem:[#allocation2 + $0xe1] sm:$0xff] }
 0x1e7   : > { %v4477_v51 = vpop.permute.xlu1 %4476  ;;  %v4474_v8 = vunpack.i.h.bf16 %v4472_v50  ;;  %v4473_v53 = vunpack.i.l.bf16 %v4472_v50  ;;  %v1027_v50 = vld [vmem:[#allocation2 + $0xa8] sm:$0xff] }
 0x1e8   : > { %v4479_v29 = vunpack.i.h.bf16 %v4477_v51  ;;  %v4478_v18 = vunpack.i.l.bf16 %v4477_v51  ;;  %2575 = vmatprep.mubr.bf16.mxu1 %v2279_v38  ;;  %v1028_v51 = vld [vmem:[#allocation2 + $0xb0] sm:$0xff]  ;;  %v4770_v28 = vld [vmem:[%s6390_s7 + $0x8] sm:$0xff]  }
 0x1e9   : > { %v2179_v47 = vsel %vm924_vm1, %v1153_v24, %v4473_v53  ;;  %v2180_v44 = vsel %vm924_vm1, %v1154_v22, %v4474_v8  ;;  %2576 = vmatmul.mubr.bf16.gmra.mxu1 %v2278_v2  ;;  %v1156_v53 = vld [vmem:[#allocation2 + $0xc9] sm:$0xff]  ;;  %4104 = vmatprep.subr.bf16.mxu0 %v4770_v28 }
 0x1ea   : > { %v5807_v9 = vpop.permute.xlu0 %4491  ;;  %v2211_v49 = vsel %vm604_vm0, %v2179_v47, %v4433_v59  ;;  %v2212_v30 = vsel %vm604_vm0, %v2180_v44, %v4434_v37  ;;  %v2147_v0 = vsel %vm2134_vm3, %v2114_v12, %v4478_v18  ;;  %v2148_v14 = vsel %vm2134_vm3, %v2115_v48, %v4479_v29  ;;  %4105 = vmatpush3.bf16.msra.mxu0 %v4770_v28 }
 0x1eb   : > { %v4482_v61 = vpop.permute.xlu1 %4481  ;;  %v2243_v21 = vsel %vm2134_vm3, %v2211_v49, %v4438_v39  ;;  %v2244_v31 = vsel %vm2134_vm3, %v2212_v30, %v4439_v60  ;;  %4101 = vmatmul.mubr.msk.bf16.gmra.mxu0 %vm924_vm1, %v2310_v13  ;;  %v2281_v27 = vpack.c.bf16 %v2148_v14, %v2147_v0  ;;  %v4494_v58 = vunpack.i.h.bf16 %v5807_v9  ;;  %v4769_v49 = vld [vmem:[%s6393_s10 + $0x10] sm:$0xff]  }
 0x1ec   : > { %v2282_v17 = vpack.c.bf16 %v2244_v31, %v2243_v21  ;;  %v4484_v5 = vunpack.i.h.bf16 %v4482_v61  ;;  %v4483_v3 = vunpack.i.l.bf16 %v4482_v61  ;;  %v4493_v38 = vunpack.i.l.bf16 %v5807_v9  ;;  %4142 = vmatprep.subr.bf16.mxu1 %v4769_v49 }
 0x1ed   : > { %v2182_v37 = vsel %vm924_vm1, %v1156_v53, %v4444_v52  ;;  %v4454_v59 = vunpack.i.h.bf16 %v5769_v40  ;;  %v4453_v29 = vunpack.i.l.bf16 %v5769_v40  ;;  %v4458_v18 = vunpack.i.l.bf16 %v5779_v23  ;;  %4143 = vmatpush3.bf16.msra.mxu1 %v4769_v49  ;;  %v1030_v52 = vld [vmem:[#allocation2 + $0xc8] sm:$0xff] }
 0x1ee   : > { %v5818_v1 = vpop.permute.xlu0 %4496  ;;  %2583 = vmatprep.mubr.bf16.mxu1 %v2282_v17  ;;  %v2084_v2 = vsel %vm924_vm1, %v1027_v50, %v4483_v3  ;;  %v2085_v4 = vsel %vm924_vm1, %v1028_v51, %v4484_v5  ;;  %v4459_v17 = vunpack.i.h.bf16 %v5779_v23  ;;  %v4771_v23 = vld [vmem:[%s6393_s10 + $0x8] sm:$0xff]  }
 0x1ef   : > { %v4487_v15 = vpop.permute.xlu1 %4486  ;;  %v4499_v60 = vunpack.i.h.bf16 %v5818_v1  ;;  %v4498_v39 = vunpack.i.l.bf16 %v5818_v1  ;;  %4144 = vmatprep.subr.bf16.mxu1 %v4771_v23 }
 0x1f0   : > { %v4489_v55 = vunpack.i.h.bf16 %v4487_v15  ;;  %v4488_v32 = vunpack.i.l.bf16 %v4487_v15 }
 0x1f1   : > { %2584 = vmatmul.mubr.bf16.gmra.mxu1 %v2281_v27 }
 0x1f2   : > { %v5820_v56 = vpop.permute.xlu0 %4501  ;;  %v2116_v24 = vsel %vm604_vm0, %v2084_v2, %v4488_v32  ;;  %v2117_v22 = vsel %vm604_vm0, %v2085_v4, %v4489_v55  ;;  %v4772_v2 = vld [vmem:[%s6390_s7] sm:$0xff]   ;;  %4145 = vmatpush3.bf16.msra.mxu1 %v4771_v23 }
 0x1f3   : > { %v5822_v41 = vpop.permute.xlu1 %4506  ;;  %v2149_v12 = vsel %vm2134_vm3, %v2116_v24, %v4448_v33  ;;  %v2150_v48 = vsel %vm2134_vm3, %v2117_v22, %v4449_v20  ;;  %v4504_v15 = vunpack.i.h.bf16 %v5820_v56  ;;  %v4503_v1 = vunpack.i.l.bf16 %v5820_v56  ;;  %v1159_v33 = vld [vmem:[#allocation2 + $0xf1] sm:$0xff]  ;;  %v4773_v4 = vld [vmem:[%s6393_s10] sm:$0xff]   ;;  %4106 = vmatprep.subr.bf16.mxu0 %v4772_v2 }
 0x1f4   : > { %v2284_v3 = vpack.c.bf16 %v2150_v48, %v2149_v12  ;;  %4146 = vmatprep.subr.bf16.mxu1 %v4773_v4  ;;  %4107 = vmatpush3.bf16.msra.mxu0 %v4772_v2  ;;  %v1161_v48 = vld [vmem:[#allocation2 + $0x109] sm:$0xff] }
 0x1f6   : > { %v4532_v25 = vpop.permute.xlu0 %4531  ;;  %4147 = vmatpush3.bf16.msra.mxu1 %v4773_v4 }
 0x1f7   : > { %v5824_v46 = vpop.permute.xlu1 %4511  ;;  %v4534_v63 = vunpack.i.h.bf16 %v4532_v25  ;;  %v4533_v62 = vunpack.i.l.bf16 %v4532_v25 }
 0x1f9   : > { %v2183_v19 = vsel %vm924_vm1, %v1157_v34, %v4533_v62  ;;  %v2184_v8 = vsel %vm924_vm1, %v1158_v26, %v4534_v63  ;;  %v1029_v63 = vld [vmem:[#allocation2 + $0xc0] sm:$0xff] }
 0x1fa   : > { %v5829_v42 = vpop.permute.xlu0 %4551  ;;  %v2215_v47 = vsel %vm604_vm0, %v2183_v19, %v4493_v38  ;;  %v2216_v44 = vsel %vm604_vm0, %v2184_v8, %v4494_v58  ;;  %v2086_v55 = vsel %vm924_vm1, %v1029_v63, %v4453_v29  ;;  %v1160_v34 = vld [vmem:[#allocation2 + $0xf9] sm:$0xff] }
 0x1fb   : > { %v5827_v10 = vpop.permute.xlu1 %4516  ;;  %v2247_v0 = vsel %vm2134_vm3, %v2215_v47, %v4498_v39  ;;  %v2248_v14 = vsel %vm2134_vm3, %v2216_v44, %v4499_v60  ;;  %v2118_v20 = vsel %vm604_vm0, %v2086_v55, %v4458_v18  ;;  %v2186_v50 = vsel %vm924_vm1, %v1160_v34, %v4504_v15  ;;  %v1031_v44 = vld [vmem:[#allocation2 + $0xd8] sm:$0xff]  ;;  %v1032_v60 = vld [vmem:[#allocation2 + $0xe0] sm:$0xff] }
 0x1fc   : > { %v2288_v57 = vpack.c.bf16 %v2248_v14, %v2247_v0  ;;  %v4554_v29 = vunpack.i.h.bf16 %v5829_v42  ;;  %v4518_v34 = vunpack.i.l.bf16 %v5827_v10 }
 0x1fe   : > { %v5838_v6 = vpop.permute.xlu0 %4556 }
 0x1ff   : > { %v4522_v7 = vpop.permute.xlu1 %4521 }
 0x200   : > { %v4524_v13 = vunpack.i.h.bf16 %v4522_v7  ;;  %v4523_v35 = vunpack.i.l.bf16 %v4522_v7  ;;  %v2185_v7 = vsel %vm924_vm1, %v1159_v33, %v4503_v1  ;;  %v4509_v1 = vunpack.i.h.bf16 %v5822_v41 }
 0x201   : > { %v4519_v33 = vunpack.i.h.bf16 %v5827_v10 }
 0x202   : > { %v5852_v43 = vpop.permute.xlu0 %4561  ;;  %v2214_v40 = vsel %vm604_vm0, %v2182_v37, %v4524_v13  ;;  %v2213_v30 = vsel %vm604_vm0, %v2181_v16, %v4523_v35  ;;  %v2087_v16 = vsel %vm924_vm1, %v1030_v52, %v4454_v59 }
 0x203   : > { %v4527_v11 = vpop.permute.xlu1 %4526  ;;  %v2119_v26 = vsel %vm604_vm0, %v2087_v16, %v4459_v17  ;;  %v4563_v4 = vunpack.i.l.bf16 %v5852_v43 }
 0x204   : > { %v4529_v61 = vunpack.i.h.bf16 %v4527_v11  ;;  %v4528_v9 = vunpack.i.l.bf16 %v4527_v11 }
 0x206   : > { %v2245_v21 = vsel %vm2134_vm3, %v2213_v30, %v4528_v9  ;;  %v2246_v31 = vsel %vm2134_vm3, %v2214_v40, %v4529_v61  ;;  %v4582_v25 = vpop.permute.xlu0 %4581  ;;  %v4553_v40 = vunpack.i.l.bf16 %v5829_v42  ;;  %v4508_v42 = vunpack.i.l.bf16 %v5822_v41 }
 0x207   : > { %v4537_v27 = vpop.permute.xlu1 %4536  ;;  %v2285_v45 = vpack.c.bf16 %v2246_v31, %v2245_v21  ;;  %v4584_v56 = vunpack.i.h.bf16 %v4582_v25  ;;  %v4583_v32 = vunpack.i.l.bf16 %v4582_v25  ;;  %v1162_v21 = vld [vmem:[#allocation2 + $0x111] sm:$0xff] }
 0x208   : > { %v4539_v62 = vunpack.i.h.bf16 %v4537_v27  ;;  %v4538_v5 = vunpack.i.l.bf16 %v4537_v27 }
 0x209   : > { %2591 = vmatprep.mubr.bf16.mxu1 %v2285_v45  ;;  %v2218_v13 = vsel %vm604_vm0, %v2186_v50, %v4584_v56  ;;  %v2217_v35 = vsel %vm604_vm0, %v2185_v7, %v4583_v32  ;;  %v1034_v7 = vld [vmem:[#allocation2 + $0xf8] sm:$0xff] }
 0x20a   : > { %2592 = vmatmul.mubr.bf16.gmra.mxu1 %v2284_v3  ;;  %v4587_v58 = vpop.permute.xlu0 %4586  ;;  %v2151_v8 = vsel %vm2134_vm3, %v2118_v20, %v4538_v5  ;;  %v2152_v53 = vsel %vm2134_vm3, %v2119_v26, %v4539_v62  ;;  %v4559_v62 = vunpack.i.h.bf16 %v5838_v6  ;;  %v4558_v5 = vunpack.i.l.bf16 %v5838_v6  ;;  %v1033_v26 = vld [vmem:[#allocation2 + $0xf0] sm:$0xff] }
 0x20b   : > { %2599 = vmatprep.mubr.bf16.mxu1 %v2288_v57  ;;  %v4542_v51 = vpop.permute.xlu1 %4541  ;;  %v4589_v38 = vunpack.i.h.bf16 %v4587_v58  ;;  %v4588_v19 = vunpack.i.l.bf16 %v4587_v58  ;;  %v2287_v47 = vpack.c.bf16 %v2152_v53, %v2151_v8  ;;  %v4514_v6 = vunpack.i.h.bf16 %v5824_v46 }
 0x20c   : > { %v4544_v37 = vunpack.i.h.bf16 %v4542_v51  ;;  %v4543_v59 = vunpack.i.l.bf16 %v4542_v51  ;;  %v4513_v20 = vunpack.i.l.bf16 %v5824_v46  ;;  %v4564_v46 = vunpack.i.h.bf16 %v5852_v43 }
 0x20d   : > { %v2249_v24 = vsel %vm2134_vm3, %v2217_v35, %v4588_v19  ;;  %v2250_v22 = vsel %vm2134_vm3, %v2218_v13, %v4589_v38  ;;  %v2091_v58 = vsel %vm924_vm1, %v1034_v7, %v4514_v6 }
 0x20e   : > { %v4592_v11 = vpop.permute.xlu0 %4591  ;;  %v2088_v30 = vsel %vm924_vm1, %v1031_v44, %v4543_v59  ;;  %v2089_v12 = vsel %vm924_vm1, %v1032_v60, %v4544_v37  ;;  %v2291_v31 = vpack.c.bf16 %v2250_v22, %v2249_v24  ;;  %v2090_v51 = vsel %vm924_vm1, %v1033_v26, %v4513_v20  ;;  %v1163_v22 = vld [vmem:[#allocation2 + $0x121] sm:$0xff] }
 0x20f   : > { %v4547_v18 = vpop.permute.xlu1 %4546  ;;  %v4594_v9 = vunpack.i.h.bf16 %v4592_v11  ;;  %v4593_v49 = vunpack.i.l.bf16 %v4592_v11  ;;  %v2122_v8 = vsel %vm604_vm0, %v2090_v51, %v4518_v34  ;;  %v2123_v53 = vsel %vm604_vm0, %v2091_v58, %v4519_v33 }
 0x210   : > { %v4549_v39 = vunpack.i.h.bf16 %v4547_v18  ;;  %v4548_v61 = vunpack.i.l.bf16 %v4547_v18  ;;  %v2189_v44 = vsel %vm924_vm1, %v1163_v22, %v4563_v4  ;;  %v1037_v4 = vld [vmem:[#allocation2 + $0x120] sm:$0xff] }
 0x211   : > { %v2187_v17 = vsel %vm924_vm1, %v1161_v48, %v4593_v49  ;;  %v2188_v15 = vsel %vm924_vm1, %v1162_v21, %v4594_v9 }
 0x212   : > { %v2120_v0 = vsel %vm604_vm0, %v2088_v30, %v4548_v61  ;;  %v2121_v14 = vsel %vm604_vm0, %v2089_v12, %v4549_v39  ;;  %2600 = vmatmul.mubr.bf16.gmra.mxu1 %v2287_v47  ;;  %v5908_v25 = vpop.permute.xlu0 %4611  ;;  %v2219_v45 = vsel %vm604_vm0, %v2187_v17, %v4553_v40  ;;  %v2220_v63 = vsel %vm604_vm0, %v2188_v15, %v4554_v29  ;;  %v1164_v29 = vld [vmem:[#allocation2 + $0x129] sm:$0xff] }
 0x213   : > { %v5906_v27 = vpop.permute.xlu1 %4566  ;;  %2607 = vmatprep.mubr.bf16.mxu1 %v2291_v31  ;;  %v2153_v3 = vsel %vm2134_vm3, %v2120_v0, %v4508_v42  ;;  %v2154_v28 = vsel %vm2134_vm3, %v2121_v14, %v4509_v1  ;;  %v2251_v23 = vsel %vm2134_vm3, %v2219_v45, %v4558_v5  ;;  %v2252_v41 = vsel %vm2134_vm3, %v2220_v63, %v4559_v62  ;;  %v1035_v30 = vld [vmem:[#allocation2 + $0x108] sm:$0xff]  ;;  %v1036_v12 = vld [vmem:[#allocation2 + $0x110] sm:$0xff] }
 0x214   : > { %v2290_v56 = vpack.c.bf16 %v2154_v28, %v2153_v3  ;;  %v2294_v32 = vpack.c.bf16 %v2252_v41, %v2251_v23  ;;  %v2190_v60 = vsel %vm924_vm1, %v1164_v29, %v4564_v46  ;;  %v4569_v61 = vunpack.i.h.bf16 %v5906_v27  ;;  %v1165_v23 = vld [vmem:[#allocation2 + $0x139] sm:$0xff]  ;;  %v1166_v41 = vld [vmem:[#allocation2 + $0x141] sm:$0xff] }
 0x215   : > { %v4568_v14 = vunpack.i.l.bf16 %v5906_v27  ;;  %v4614_v3 = vunpack.i.h.bf16 %v5908_v25  ;;  %v4613_v28 = vunpack.i.l.bf16 %v5908_v25 }
 0x216   : > { %v5920_v55 = vpop.permute.xlu0 %4616 }
 0x217   : > { %v5918_v52 = vpop.permute.xlu1 %4571  ;;  %v4619_v6 = vunpack.i.h.bf16 %v5920_v55  ;;  %v4618_v20 = vunpack.i.l.bf16 %v5920_v55 }
 0x218   : > { %v4574_v55 = vunpack.i.h.bf16 %v5918_v52 }
 0x21a   : > { %2608 = vmatmul.mubr.bf16.gmra.mxu1 %v2290_v56  ;;  %v5924_v16 = vpop.permute.xlu0 %4621 }
 0x21b   : > { %v5922_v57 = vpop.permute.xlu1 %4576  ;;  %2615 = vmatprep.mubr.bf16.mxu1 %v2294_v32  ;;  %v4623_v29 = vunpack.i.l.bf16 %v5924_v16 }
 0x21f   : > { %v4597_v50 = vpop.permute.xlu1 %4596  ;;  %v4637_v2 = vpop.permute.xlu0 %4636 }
 0x220   : > { %v4599_v38 = vunpack.i.h.bf16 %v4597_v50  ;;  %v4598_v19 = vunpack.i.l.bf16 %v4597_v50  ;;  %v4639_v35 = vunpack.i.h.bf16 %v4637_v2  ;;  %v4638_v37 = vunpack.i.l.bf16 %v4637_v2 }
 0x221   : > { %v4578_v2 = vunpack.i.l.bf16 %v5922_v57 }
 0x222   : > { %v2155_v10 = vsel %vm2134_vm3, %v2122_v8, %v4598_v19  ;;  %v2156_v13 = vsel %vm2134_vm3, %v2123_v53, %v4599_v38  ;;  %v2222_v9 = vsel %vm604_vm0, %v2190_v60, %v4639_v35  ;;  %v2221_v49 = vsel %vm604_vm0, %v2189_v44, %v4638_v37 }
 0x223   : > { %v4602_v59 = vpop.permute.xlu1 %4601  ;;  %v2293_v24 = vpack.c.bf16 %v2156_v13, %v2155_v10  ;;  %v4642_v47 = vpop.permute.xlu0 %4641  ;;  %v4573_v8 = vunpack.i.l.bf16 %v5918_v52  ;;  %v4579_v53 = vunpack.i.h.bf16 %v5922_v57  ;;  %v1038_v10 = vld [vmem:[#allocation2 + $0x128] sm:$0xff]  ;;  %v4624_v57 = vunpack.i.h.bf16 %v5924_v16 }
 0x224   : > { %v4604_v18 = vunpack.i.h.bf16 %v4602_v59  ;;  %v4603_v11 = vunpack.i.l.bf16 %v4602_v59  ;;  %v4644_v39 = vunpack.i.h.bf16 %v4642_v47  ;;  %v4643_v43 = vunpack.i.l.bf16 %v4642_v47 }
 0x225   : > { %2616 = vmatmul.mubr.bf16.gmra.mxu1 %v2293_v24  ;;  %v2094_v35 = vsel %vm924_vm1, %v1037_v4, %v4573_v8  ;;  %v2095_v37 = vsel %vm924_vm1, %v1038_v10, %v4574_v55 }
 0x226   : > { %v2253_v31 = vsel %vm2134_vm3, %v2221_v49, %v4643_v43  ;;  %v2254_v0 = vsel %vm2134_vm3, %v2222_v9, %v4644_v39  ;;  %v2092_v17 = vsel %vm924_vm1, %v1035_v30, %v4603_v11  ;;  %v2093_v15 = vsel %vm924_vm1, %v1036_v12, %v4604_v18  ;;  %v1168_v9 = vld [vmem:[#allocation2 + $0x159] sm:$0xff] }
 0x227   : > { %v4607_v40 = vpop.permute.xlu1 %4606  ;;  %v4647_v1 = vpop.permute.xlu0 %4646  ;;  %v2297_v42 = vpack.c.bf16 %v2254_v0, %v2253_v31  ;;  %v2126_v22 = vsel %vm604_vm0, %v2094_v35, %v4578_v2  ;;  %v2127_v52 = vsel %vm604_vm0, %v2095_v37, %v4579_v53 }
 0x228   : > { %v4609_v48 = vunpack.i.h.bf16 %v4607_v40  ;;  %v4608_v21 = vunpack.i.l.bf16 %v4607_v40  ;;  %v4649_v62 = vunpack.i.h.bf16 %v4647_v1  ;;  %v4648_v5 = vunpack.i.l.bf16 %v4647_v1 }
 0x229   : > { %2623 = vmatprep.mubr.bf16.mxu1 %v2297_v42  ;;  %v1039_v42 = vld [vmem:[#allocation2 + $0x138] sm:$0xff] }
 0x22a   : > { %v2124_v45 = vsel %vm604_vm0, %v2092_v17, %v4608_v21  ;;  %v2125_v63 = vsel %vm604_vm0, %v2093_v15, %v4609_v48  ;;  %v2191_v33 = vsel %vm924_vm1, %v1165_v23, %v4648_v5  ;;  %v2192_v34 = vsel %vm924_vm1, %v1166_v41, %v4649_v62 }
 0x22b   : > { %v5952_v27 = vpop.permute.xlu1 %4626  ;;  %v2157_v56 = vsel %vm2134_vm3, %v2124_v45, %v4568_v14  ;;  %v2158_v32 = vsel %vm2134_vm3, %v2125_v63, %v4569_v61  ;;  %v5960_v26 = vpop.permute.xlu0 %4671  ;;  %v2223_v7 = vsel %vm604_vm0, %v2191_v33, %v4613_v28  ;;  %v2224_v50 = vsel %vm604_vm0, %v2192_v34, %v4614_v3  ;;  %v1167_v61 = vld [vmem:[#allocation2 + $0x151] sm:$0xff]  ;;  %v1040_v45 = vld [vmem:[#allocation2 + $0x140] sm:$0xff] }
 0x22c   : > { %v2296_v25 = vpack.c.bf16 %v2158_v32, %v2157_v56  ;;  %v2255_v51 = vsel %vm2134_vm3, %v2223_v7, %v4618_v20  ;;  %v2256_v58 = vsel %vm2134_vm3, %v2224_v50, %v4619_v6  ;;  %v2193_v49 = vsel %vm924_vm1, %v1167_v61, %v4623_v29 }
 0x22d   : > { %v2300_v19 = vpack.c.bf16 %v2256_v58, %v2255_v51  ;;  %v2194_v48 = vsel %vm924_vm1, %v1168_v9, %v4624_v57  ;;  %v4629_v16 = vunpack.i.h.bf16 %v5952_v27  ;;  %v4628_v0 = vunpack.i.l.bf16 %v5952_v27  ;;  %v1171_v9 = vld [vmem:[#allocation2 + $0x181] sm:$0xff] }
 0x22e   : > { %2624 = vmatmul.mubr.bf16.gmra.mxu1 %v2296_v25  ;;  %v4674_v14 = vunpack.i.h.bf16 %v5960_v26  ;;  %v4673_v28 = vunpack.i.l.bf16 %v5960_v26 }
 0x22f   : > { %v5966_v38 = vpop.permute.xlu1 %4631  ;;  %2631 = vmatprep.mubr.bf16.mxu1 %v2300_v19  ;;  %v5972_v46 = vpop.permute.xlu0 %4676 }
 0x230   : > { %v4634_v34 = vunpack.i.h.bf16 %v5966_v38  ;;  %v4633_v25 = vunpack.i.l.bf16 %v5966_v38  ;;  %v4679_v51 = vunpack.i.h.bf16 %v5972_v46  ;;  %v4678_v58 = vunpack.i.l.bf16 %v5972_v46 }
 0x233   : > { %v4652_v13 = vpop.permute.xlu1 %4651  ;;  %v4682_v18 = vpop.permute.xlu0 %4681 }
 0x234   : > { %v4654_v59 = vunpack.i.h.bf16 %v4652_v13  ;;  %v4653_v24 = vunpack.i.l.bf16 %v4652_v13  ;;  %v4684_v44 = vunpack.i.h.bf16 %v4682_v18  ;;  %v4683_v60 = vunpack.i.l.bf16 %v4682_v18  ;;  %v1042_v13 = vld [vmem:[#allocation2 + $0x158] sm:$0xff] }
 0x236   : > { %v2159_v11 = vsel %vm2134_vm3, %v2126_v22, %v4653_v24  ;;  %v2160_v47 = vsel %vm2134_vm3, %v2127_v52, %v4654_v59  ;;  %v2226_v17 = vsel %vm604_vm0, %v2194_v48, %v4684_v44  ;;  %v2225_v15 = vsel %vm604_vm0, %v2193_v49, %v4683_v60  ;;  %v1041_v59 = vld [vmem:[#allocation2 + $0x150] sm:$0xff] }
 0x237   : > { %v4657_v39 = vpop.permute.xlu1 %4656  ;;  %v2299_v43 = vpack.c.bf16 %v2160_v47, %v2159_v11  ;;  %v4687_v12 = vpop.permute.xlu0 %4686  ;;  %v2098_v22 = vsel %vm924_vm1, %v1041_v59, %v4633_v25  ;;  %v1172_v49 = vld [vmem:[#allocation2 + $0x189] sm:$0xff] }
 0x238   : > { %v4659_v40 = vunpack.i.h.bf16 %v4657_v39  ;;  %v4658_v30 = vunpack.i.l.bf16 %v4657_v39  ;;  %v4689_v21 = vunpack.i.h.bf16 %v4687_v12  ;;  %v4688_v31 = vunpack.i.l.bf16 %v4687_v12  ;;  %v4774_v25 = vld [vmem:[%s5065_s16] sm:$0xff]  }
 0x239   : > { %2632 = vmatmul.mubr.bf16.gmra.mxu1 %v2299_v43 }
 0x23a   : > { %v2257_v5 = vsel %vm2134_vm3, %v2225_v15, %v4688_v31  ;;  %v2258_v3 = vsel %vm2134_vm3, %v2226_v17, %v4689_v21  ;;  %v2096_v23 = vsel %vm924_vm1, %v1039_v42, %v4658_v30  ;;  %v2097_v41 = vsel %vm924_vm1, %v1040_v45, %v4659_v40 }
 0x23b   : > { %v4662_v1 = vpop.permute.xlu1 %4661  ;;  %v4692_v27 = vpop.permute.xlu0 %4691  ;;  %v2303_v56 = vpack.c.bf16 %v2258_v3, %v2257_v5  ;;  %v1043_v5 = vld [vmem:[#allocation2 + $0x168] sm:$0xff]  ;;  %v1044_v3 = vld [vmem:[#allocation2 + $0x170] sm:$0xff] }
 0x23c   : > { %v4664_v63 = vunpack.i.h.bf16 %v4662_v1  ;;  %v4663_v62 = vunpack.i.l.bf16 %v4662_v1  ;;  %v4694_v20 = vunpack.i.h.bf16 %v4692_v27  ;;  %v4693_v33 = vunpack.i.l.bf16 %v4692_v27 }
 0x23d   : > { %2639 = vmatprep.mubr.bf16.mxu1 %v2303_v56 }
 0x23e   : > { %v2128_v32 = vsel %vm604_vm0, %v2096_v23, %v4663_v62  ;;  %v2129_v6 = vsel %vm604_vm0, %v2097_v41, %v4664_v63  ;;  %v2195_v19 = vsel %vm924_vm1, %v5643_v54, %v4693_v33  ;;  %v2196_v55 = vsel %vm924_vm1, %v5645_v36, %v4694_v20 }
 0x23f   : > { %v4667_v7 = vpop.permute.xlu1 %4666  ;;  %v2161_v26 = vsel %vm2134_vm3, %v2128_v32, %v4628_v0  ;;  %v2162_v50 = vsel %vm2134_vm3, %v2129_v6, %v4629_v16  ;;  %v4697_v53 = vpop.permute.xlu0 %4696  ;;  %v2227_v38 = vsel %vm604_vm0, %v2195_v19, %v4673_v28  ;;  %v2228_v4 = vsel %vm604_vm0, %v2196_v55, %v4674_v14  ;;  %v4779_v19 = vld [vmem:[%s5065_s16 + $0x28] sm:$0xff]   ;;  %v4780_v55 = vld [vmem:[%s5065_s16 + $0x30] sm:$0xff]  }
 0x240   : > { %v4669_v8 = vunpack.i.h.bf16 %v4667_v7  ;;  %v2302_v2 = vpack.c.bf16 %v2162_v50, %v2161_v26  ;;  %v4668_v10 = vunpack.i.l.bf16 %v4667_v7  ;;  %v2259_v35 = vsel %vm2134_vm3, %v2227_v38, %v4678_v58  ;;  %v4775_v7 = vld [vmem:[%s5065_s16 + $0x8] sm:$0xff]   ;;  %v4776_v26 = vld [vmem:[%s5065_s16 + $0x10] sm:$0xff]   ;;  %v4777_v50 = vld [vmem:[%s5065_s16 + $0x18] sm:$0xff]  }
 0x241   : > { %v2260_v46 = vsel %vm2134_vm3, %v2228_v4, %v4679_v51  ;;  %v2099_v54 = vsel %vm924_vm1, %v1042_v13, %v4634_v34  ;;  %v4699_v11 = vunpack.i.h.bf16 %v4697_v53  ;;  %v4698_v47 = vunpack.i.l.bf16 %v4697_v53  ;;  %v4778_v51 = vld [vmem:[%s5065_s16 + $0x20] sm:$0xff]   ;;  %v4781_v4 = vld [vmem:[%s5065_s16 + $0x38] sm:$0xff]  }
 0x242   : > { %2640 = vmatmul.mubr.bf16.gmra.mxu1 %v2302_v2  ;;  %v2306_v24 = vpack.c.bf16 %v2260_v46, %v2259_v35  ;;  %v2131_v52 = vsel %vm604_vm0, %v2099_v54, %v4669_v8  ;;  %v2130_v57 = vsel %vm604_vm0, %v2098_v22, %v4668_v10  ;;  %v4782_v13 = vld [vmem:[%s5065_s16 + $0x40] sm:$0xff]   ;;  %v6049_v46 = vld [vmem:[%s6388_s5] ss:$0 sm:$0xff] }
 0x243   : > { %v4707_v37 = vpop.permute.xlu1 %4706  ;;  %v2198_v12 = vsel %vm924_vm1, %v1172_v49, %v4699_v11  ;;  %v2197_v48 = vsel %vm924_vm1, %v1171_v9, %v4698_v47 }
 0x244   : > { %v4709_v36 = vunpack.i.h.bf16 %v4707_v37  ;;  %v4702_v29 = vpop.permute.xlu0 %4701  ;;  %v4708_v18 = vunpack.i.l.bf16 %v4707_v37  ;;  %2647 = vmatprep.mubr.bf16.mxu1 %v2306_v24 }
 0x245   : > { %v4704_v60 = vunpack.i.h.bf16 %v4702_v29  ;;  %v4703_v39 = vunpack.i.l.bf16 %v4702_v29 }
 0x246   : > { %v2164_v44 = vsel %vm2134_vm3, %v2131_v52, %v4709_v36  ;;  %v2163_v61 = vsel %vm2134_vm3, %v2130_v57, %v4708_v18  ;;  %v6055_v36 = vld [vmem:[%s6389_s6] ss:$0 sm:$0xff]  ;;  %v4783_v18 = vld [vmem:[%s5065_s16 + $0x48] sm:$0xff]  }
 0x247   : > { %v4712_v43 = vpop.permute.xlu1 %4711  ;;  %v2305_v30 = vpack.c.bf16 %v2164_v44, %v2163_v61  ;;  %v2229_v31 = vsel %vm604_vm0, %v2197_v48, %v4703_v39  ;;  %v2230_v0 = vsel %vm604_vm0, %v2198_v12, %v4704_v60  ;;  %v4784_v44 = vld [vmem:[%s5065_s16 + $0x50] sm:$0xff]  }
 0x248   : > { %v4722_v40 = vpop.permute.xlu0 %4721  ;;  %v4714_v17 = vunpack.i.h.bf16 %v4712_v43  ;;  %v4713_v15 = vunpack.i.l.bf16 %v4712_v43 }
 0x249   : > { %v4724_v16 = vunpack.i.h.bf16 %v4722_v40  ;;  %v4723_v21 = vunpack.i.l.bf16 %v4722_v40 }
 0x24a   : > { %2648 = vmatmul.mubr.bf16.gmra.mxu1 %v2305_v30  ;;  %v2100_v23 = vsel %vm924_vm1, %v1043_v5, %v4713_v15  ;;  %v2101_v41 = vsel %vm924_vm1, %v1044_v3, %v4714_v17  ;;  %v4786_v15 = vld [vmem:[%s5065_s16 + $0x60] sm:$0xff]  }
 0x24b   : > { %v4717_v14 = vpop.permute.xlu1 %4716  ;;  %v2261_v1 = vsel %vm2134_vm3, %v2229_v31, %v4723_v21  ;;  %v2262_v42 = vsel %vm2134_vm3, %v2230_v0, %v4724_v16 }
 0x24c   : > { %v4719_v45 = vunpack.i.h.bf16 %v4717_v14  ;;  %v4718_v63 = vunpack.i.l.bf16 %v4717_v14  ;;  %v2309_v62 = vpack.c.bf16 %v2262_v42, %v2261_v1  ;;  %v4785_v14 = vld [vmem:[%s5065_s16 + $0x58] sm:$0xff]  }
 0x24e   : > { %2655 = vmatprep.mubr.bf16.mxu1 %v2309_v62  ;;  %v2132_v32 = vsel %vm604_vm0, %v2100_v23, %v4718_v63  ;;  %v2133_v6 = vsel %vm604_vm0, %v2101_v41, %v4719_v45 }
 0x24f   : > { %v4727_v28 = vpop.permute.xlu1 %4726 }
 0x250   : > { %v4729_v27 = vunpack.i.h.bf16 %v4727_v28  ;;  %v4728_v56 = vunpack.i.l.bf16 %v4727_v28 }
 0x252   : > { %v2165_v20 = vsel %vm2134_vm3, %v2132_v32, %v4728_v56  ;;  %v2166_v33 = vsel %vm2134_vm3, %v2133_v6, %v4729_v27 }
 0x253   : > { %v2308_v34 = vpack.c.bf16 %v2166_v33, %v2165_v20  ;;  %v4787_v33 = vld [vmem:[%s5065_s16 + $0x68] sm:$0xff]  }
 0x255   : > { %2656 = vmatmul.mubr.bf16.gmra.mxu1 %v2308_v34  ;;  %v4788_v34 = vld [vmem:[%s5065_s16 + $0x70] sm:$0xff]  }
 0x256   : > { %4148 = vmatprep.mubr.msk.bf16.mxu1 %vm604_vm0, %v4774_v25 }
 0x25d   : > { %4149 = vmatmul.mubr.msk.bf16.vlgmr.msra.gmra.mxu1 %vm604_vm0, %v4775_v7 }
 0x25e   : > { %4152 = vmatprep.mubr.msk.bf16.mxu1 %vm604_vm0, %v4776_v26 }
 0x265   : > { %4153 = vmatmul.mubr.msk.bf16.gmra.mxu1 %vm604_vm0, %v4777_v50 }
 0x266   : > { %4156 = vmatprep.mubr.msk.bf16.mxu1 %vm604_vm0, %v4778_v51 }
 0x26b   : > { %v3876_v58 = vpop.f32.mrf.mxu0 }
 0x26d   : > { %4157 = vmatmul.mubr.msk.bf16.gmra.mxu1 %vm604_vm0, %v4779_v19  ;;  %v3877_v8 = vpop.f32.mrf.mxu0 }
 0x26e   : > { %4160 = vmatprep.mubr.msk.bf16.mxu1 %vm604_vm0, %v4780_v55  ;;  %v3878_v10 = vadd.f32 %v3877_v8, %v3876_v58 }
 0x26f   : > { %v3879_v53 = vpop.f32.mrf.mxu0 }
 0x271   : > { %v3880_v2 = vpop.f32.mrf.mxu0 }
 0x272   : > { %v3881_v54 = vadd.f32 %v3880_v2, %v3879_v53  ;;  %v4789_v53 = vld [vmem:[%s5065_s16 + $0x78] sm:$0xff]  }
 0x273   : > { %v4074_v38 = vpop.f32.mrf.mxu0 }
 0x275   : > { %4161 = vmatmul.mubr.msk.bf16.gmra.mxu1 %vm604_vm0, %v4781_v4  ;;  %v2698_v35 = vpop.f32.mrf.mxu0 }
 0x276   : > { %4164 = vmatprep.mubr.msk.bf16.mxu1 %vm604_vm0, %v4782_v13  ;;  %v2699_v37 = vadd.f32 %v3878_v10, %v2698_v35 }
 0x277   : > { %v4075_v59 = vpop.f32.mrf.mxu0 }
 0x278   : > { %v2832_v24 = vmul.f32 %v6049_v46, %v2699_v37 }
 0x279   : > { %v2701_v22 = vpop.f32.mrf.mxu0 }
 0x27a   : > { %v2702_v52 = vadd.f32 %v3881_v54, %v2701_v22  ;;  %v2871_v57 = vadd.f32 %v6055_v36, %v2832_v24 }
 0x27b   : > { %v3882_v29 = vpop.f32.mrf.mxu1  ;;  %v4078_v43 = vpop.f32.mrf.mxu0 }
 0x27c   : > { %v2833_v11 = vmul.f32 %v6049_v46, %v2702_v52  ;;  %v2903_v49 = vmax.f32 %v2871_v57, 0.0 }
 0x27d   : > { %4165 = vmatmul.mubr.msk.bf16.gmra.mxu1 %vm604_vm0, %v4783_v18  ;;  %v3883_v47 = vpop.f32.mrf.mxu1  ;;  %v2714_v21 = vpop.f32.mrf.mxu0 }
 0x27e   : > { %4168 = vmatprep.mubr.msk.bf16.mxu1 %vm604_vm0, %v4784_v44  ;;  %v3884_v60 = vadd.f32 %v3883_v47, %v3882_v29  ;;  %v2872_v39 = vadd.f32 %v6055_v36, %v2833_v11 }
 0x27f   : > { %v3885_v61 = vpop.f32.mrf.mxu1  ;;  %v4079_v63 = vpop.f32.mrf.mxu0 }
 0x280   : > { %v2707_v9 = vadd.f32 %v4074_v38, %v3884_v60  ;;  %v2904_v40 = vmax.f32 %v2872_v39, 0.0 }
 0x281   : > { %v3886_v30 = vpop.f32.mrf.mxu1  ;;  %v2717_v32 = vpop.f32.mrf.mxu0 }
 0x282   : > { %v2834_v12 = vmul.f32 %v6049_v46, %v2707_v9  ;;  %v3887_v48 = vadd.f32 %v3886_v30, %v3885_v61  ;;  %v2935_v16 = vpack.c.bf16 %v2904_v40, %v2903_v49 }
 0x283   : > { %v3888_v31 = vpop.f32.mrf.mxu1  ;;  %v4082_v2 = vpop.f32.mrf.mxu0 }
 0x284   : > { %v2710_v0 = vadd.f32 %v4075_v59, %v3887_v48  ;;  %4108 = vmatprep.mubr.msk.bf16.mxu0 %vm924_vm1, %v2935_v16  ;;  %v2873_v1 = vadd.f32 %v6055_v36, %v2834_v12 }
 0x285   : > { %4169 = vmatmul.mubr.msk.bf16.gmra.mxu1 %vm604_vm0, %v4785_v14  ;;  %v3889_v17 = vpop.f32.mrf.mxu1  ;;  %v2730_v37 = vpop.f32.mrf.mxu0 }
 0x286   : > { %4172 = vmatprep.mubr.msk.bf16.mxu1 %vm604_vm0, %v4786_v15  ;;  %v2835_v42 = vmul.f32 %v6049_v46, %v2710_v0  ;;  %v3890_v45 = vadd.f32 %v3889_v17, %v3888_v31  ;;  %v2905_v23 = vmax.f32 %v2873_v1, 0.0 }
 0x287   : > { %v3891_v62 = vpop.f32.mrf.mxu1  ;;  %v4083_v18 = vpop.f32.mrf.mxu0 }
 0x288   : > { %v2874_v5 = vadd.f32 %v6055_v36, %v2835_v42  ;;  %v2715_v3 = vadd.f32 %v3890_v45, %v2714_v21 }
 0x289   : > { %v3892_v28 = vpop.f32.mrf.mxu1  ;;  %v2733_v9 = vpop.f32.mrf.mxu0 }
 0x28a   : > { %v2906_v41 = vmax.f32 %v2874_v5, 0.0  ;;  %v2836_v27 = vmul.f32 %v6049_v46, %v2715_v3  ;;  %v3893_v56 = vadd.f32 %v3892_v28, %v3891_v62 }
 0x28b   : > { %v4086_v15 = vpop.f32.mrf.mxu0 }
 0x28c   : > { %v2936_v6 = vpack.c.bf16 %v2906_v41, %v2905_v23  ;;  %v2718_v20 = vadd.f32 %v3893_v56, %v2717_v32  ;;  %v2875_v25 = vadd.f32 %v6055_v36, %v2836_v27 }
 0x28d   : > { %4173 = vmatmul.mubr.msk.bf16.gmra.mxu1 %vm604_vm0, %v4787_v33  ;;  %v2746_v5 = vpop.f32.mrf.mxu0 }
 0x28e   : > { %4176 = vmatprep.mubr.msk.bf16.mxu1 %vm604_vm0, %v4788_v34  ;;  %v2837_v7 = vmul.f32 %v6049_v46, %v2718_v20  ;;  %4109 = vmatmul.mubr.msk.bf16.vlgmr.msra.gmra.mxu0 %vm924_vm1, %v2936_v6  ;;  %v2907_v51 = vmax.f32 %v2875_v25, 0.0 }
 0x28f   : > { %v4087_v32 = vpop.f32.mrf.mxu0 }
 0x290   : > { %v2876_v26 = vadd.f32 %v6055_v36, %v2837_v7 }
 0x291   : > { %v3894_v50 = vpop.f32.mrf.mxu1 }
 0x292   : > { %v2908_v58 = vmax.f32 %v2876_v26, 0.0 }
 0x293   : > { %v3895_v19 = vpop.f32.mrf.mxu1 }
 0x294   : > { %v3896_v55 = vadd.f32 %v3895_v19, %v3894_v50  ;;  %v2937_v8 = vpack.c.bf16 %v2908_v58, %v2907_v51  ;;  %v2749_v51 = vpop.f32.mrf.mxu0 }
 0x295   : > { %4177 = vmatmul.mubr.msk.bf16.gmra.mxu1 %vm604_vm0, %v4789_v53  ;;  %v3897_v38 = vpop.f32.mrf.mxu1 }
 0x296   : > { %v2723_v4 = vadd.f32 %v4078_v43, %v3896_v55  ;;  %4112 = vmatprep.mubr.msk.bf16.mxu0 %vm924_vm1, %v2937_v8 }
 0x297   : > { %v3898_v10 = vpop.f32.mrf.mxu1 }
 0x298   : > { %v2838_v13 = vmul.f32 %v6049_v46, %v2723_v4  ;;  %v3899_v35 = vadd.f32 %v3898_v10, %v3897_v38 }
 0x299   : > { %v3900_v59 = vpop.f32.mrf.mxu1 }
 0x29a   : > { %v2726_v54 = vadd.f32 %v4079_v63, %v3899_v35  ;;  %v2877_v22 = vadd.f32 %v6055_v36, %v2838_v13 }
 0x29b   : > { %v3901_v24 = vpop.f32.mrf.mxu1 }
 0x29c   : > { %v2839_v52 = vmul.f32 %v6049_v46, %v2726_v54  ;;  %v3902_v29 = vadd.f32 %v3901_v24, %v3900_v59  ;;  %v2909_v60 = vmax.f32 %v2877_v22, 0.0 }
 0x29d   : > { %v3903_v57 = vpop.f32.mrf.mxu1 }
 0x29e   : > { %v2878_v11 = vadd.f32 %v6055_v36, %v2839_v52  ;;  %v2731_v47 = vadd.f32 %v3902_v29, %v2730_v37  ;;  %v4090_v37 = vpop.f32.mrf.mxu0 }
 0x29f   : > { %v3904_v44 = vpop.f32.mrf.mxu1 }
 0x2a0   : > { %v2910_v39 = vmax.f32 %v2878_v11, 0.0  ;;  %v2840_v43 = vmul.f32 %v6049_v46, %v2731_v47  ;;  %v3905_v61 = vadd.f32 %v3904_v44, %v3903_v57  ;;  %v2762_v29 = vpop.f32.mrf.mxu0 }
 0x2a2   : > { %v2734_v49 = vadd.f32 %v3905_v61, %v2733_v9  ;;  %v2938_v40 = vpack.c.bf16 %v2910_v39, %v2909_v60  ;;  %v2879_v30 = vadd.f32 %v6055_v36, %v2840_v43  ;;  %v4091_v39 = vpop.f32.mrf.mxu0 }
 0x2a4   : > { %v2841_v12 = vmul.f32 %v6049_v46, %v2734_v49  ;;  %4113 = vmatmul.mubr.msk.bf16.gmra.mxu0 %vm924_vm1, %v2938_v40  ;;  %v2911_v16 = vmax.f32 %v2879_v30, 0.0 }
 0x2a6   : > { %v2880_v48 = vadd.f32 %v6055_v36, %v2841_v12 }
 0x2a8   : > { %v2912_v21 = vmax.f32 %v2880_v48, 0.0 }
 0x2a9   : > { %v3906_v31 = vpop.f32.mrf.mxu1 }
 0x2aa   : > { %v2939_v0 = vpack.c.bf16 %v2912_v21, %v2911_v16  ;;  %v2765_v16 = vpop.f32.mrf.mxu0 }
 0x2ab   : > { %v3907_v14 = vpop.f32.mrf.mxu1 }
 0x2ac   : > { %v3908_v17 = vadd.f32 %v3907_v14, %v3906_v31  ;;  %4116 = vmatprep.mubr.msk.bf16.mxu0 %vm924_vm1, %v2939_v0 }
 0x2ad   : > { %v3909_v1 = vpop.f32.mrf.mxu1 }
 0x2ae   : > { %v2739_v42 = vadd.f32 %v4082_v2, %v3908_v17 }
 0x2af   : > { %v3910_v45 = vpop.f32.mrf.mxu1 }
 0x2b0   : > { %v2842_v63 = vmul.f32 %v6049_v46, %v2739_v42  ;;  %v3911_v62 = vadd.f32 %v3910_v45, %v3909_v1 }
 0x2b1   : > { %v3912_v3 = vpop.f32.mrf.mxu1 }
 0x2b2   : > { %v2742_v28 = vadd.f32 %v4083_v18, %v3911_v62  ;;  %v2881_v41 = vadd.f32 %v6055_v36, %v2842_v63 }
 0x2b3   : > { %v3913_v23 = vpop.f32.mrf.mxu1 }
 0x2b4   : > { %v2843_v27 = vmul.f32 %v6049_v46, %v2742_v28  ;;  %v3914_v56 = vadd.f32 %v3913_v23, %v3912_v3  ;;  %v2913_v25 = vmax.f32 %v2881_v41, 0.0 }
 0x2b5   : > { %v3915_v6 = vpop.f32.mrf.mxu1 }
 0x2b6   : > { %v2882_v20 = vadd.f32 %v6055_v36, %v2843_v27  ;;  %v2747_v33 = vadd.f32 %v3914_v56, %v2746_v5  ;;  %v4094_v5 = vpop.f32.mrf.mxu0 }
 0x2b7   : > { %v3916_v34 = vpop.f32.mrf.mxu1 }
 0x2b8   : > { %v2914_v7 = vmax.f32 %v2882_v20, 0.0  ;;  %v2844_v26 = vmul.f32 %v6049_v46, %v2747_v33  ;;  %v3917_v50 = vadd.f32 %v3916_v34, %v3915_v6 }
 0x2ba   : > { %v2750_v58 = vadd.f32 %v3917_v50, %v2749_v51  ;;  %v2940_v19 = vpack.c.bf16 %v2914_v7, %v2913_v25  ;;  %v2883_v55 = vadd.f32 %v6055_v36, %v2844_v26 }
 0x2bc   : > { %v2845_v8 = vmul.f32 %v6049_v46, %v2750_v58  ;;  %4117 = vmatmul.mubr.msk.bf16.gmra.mxu0 %vm924_vm1, %v2940_v19  ;;  %v2915_v2 = vmax.f32 %v2883_v55, 0.0 }
 0x2be   : > { %v2884_v53 = vadd.f32 %v6055_v36, %v2845_v8 }
 0x2c0   : > { %v2916_v38 = vmax.f32 %v2884_v53, 0.0 }
 0x2c2   : > { %v2941_v4 = vpack.c.bf16 %v2916_v38, %v2915_v2 }
 0x2c4   : > { %4120 = vmatprep.mubr.msk.bf16.mxu0 %vm924_vm1, %v2941_v4 }
 0x2ca   : > { %v3918_v10 = vpop.f32.mrf.mxu1 }
 0x2cc   : > { %v3919_v13 = vpop.f32.mrf.mxu1 }
 0x2cd   : > { %v3920_v35 = vadd.f32 %v3919_v13, %v3918_v10 }
 0x2ce   : > { %v3921_v59 = vpop.f32.mrf.mxu1 }
 0x2cf   : > { %v2755_v54 = vadd.f32 %v4086_v15, %v3920_v35 }
 0x2d0   : > { %v3922_v24 = vpop.f32.mrf.mxu1 }
 0x2d1   : > { %v2846_v22 = vmul.f32 %v6049_v46, %v2755_v54  ;;  %v3923_v52 = vadd.f32 %v3922_v24, %v3921_v59 }
 0x2d2   : > { %v3924_v18 = vpop.f32.mrf.mxu1 }
 0x2d3   : > { %v2758_v57 = vadd.f32 %v4087_v32, %v3923_v52  ;;  %v2885_v47 = vadd.f32 %v6055_v36, %v2846_v22  ;;  %v2778_v32 = vpop.f32.mrf.mxu0 }
 0x2d4   : > { %v3925_v11 = vpop.f32.mrf.mxu1 }
 0x2d5   : > { %v2847_v44 = vmul.f32 %v6049_v46, %v2758_v57  ;;  %v3926_v60 = vadd.f32 %v3925_v11, %v3924_v18  ;;  %v2917_v40 = vmax.f32 %v2885_v47, 0.0  ;;  %v4095_v26 = vpop.f32.mrf.mxu0 }
 0x2d6   : > { %v3927_v43 = vpop.f32.mrf.mxu1 }
 0x2d7   : > { %v2886_v61 = vadd.f32 %v6055_v36, %v2847_v44  ;;  %v2763_v9 = vadd.f32 %v3926_v60, %v2762_v29  ;;  %v2781_v38 = vpop.f32.mrf.mxu0 }
 0x2d8   : > { %v3928_v49 = vpop.f32.mrf.mxu1 }
 0x2d9   : > { %v2918_v30 = vmax.f32 %v2886_v61, 0.0  ;;  %v2848_v12 = vmul.f32 %v6049_v46, %v2763_v9  ;;  %v3929_v48 = vadd.f32 %v3928_v49, %v3927_v43  ;;  %v4098_v18 = vpop.f32.mrf.mxu0 }
 0x2da   : > { %v3930_v21 = vpop.f32.mrf.mxu1 }
 0x2db   : > { %v2766_v31 = vadd.f32 %v3929_v48, %v2765_v16  ;;  %v2942_v0 = vpack.c.bf16 %v2918_v30, %v2917_v40  ;;  %v2887_v17 = vadd.f32 %v6055_v36, %v2848_v12 }
 0x2dc   : > { %v3931_v14 = vpop.f32.mrf.mxu1 }
 0x2dd   : > { %v2849_v15 = vmul.f32 %v6049_v46, %v2766_v31  ;;  %v3932_v1 = vadd.f32 %v3931_v14, %v3930_v21  ;;  %4121 = vmatmul.mubr.msk.bf16.gmra.mxu0 %vm924_vm1, %v2942_v0  ;;  %v2919_v3 = vmax.f32 %v2887_v17, 0.0 }
 0x2de   : > { %v3933_v42 = vpop.f32.mrf.mxu1 }
 0x2df   : > { %v2888_v45 = vadd.f32 %v6055_v36, %v2849_v15  ;;  %v2771_v63 = vadd.f32 %v4090_v37, %v3932_v1 }
 0x2e0   : > { %v3934_v62 = vpop.f32.mrf.mxu1 }
 0x2e1   : > { %v2920_v28 = vmax.f32 %v2888_v45, 0.0  ;;  %v2850_v23 = vmul.f32 %v6049_v46, %v2771_v63  ;;  %v3935_v41 = vadd.f32 %v3934_v62, %v3933_v42 }
 0x2e3   : > { %v2774_v27 = vadd.f32 %v4091_v39, %v3935_v41  ;;  %v2943_v56 = vpack.c.bf16 %v2920_v28, %v2919_v3  ;;  %v2889_v6 = vadd.f32 %v6055_v36, %v2850_v23  ;;  %v2794_v39 = vpop.f32.mrf.mxu0 }
 0x2e5   : > { %v2851_v20 = vmul.f32 %v6049_v46, %v2774_v27  ;;  %v3936_v33 = vpop.f32.mrf.mxu1  ;;  %4124 = vmatprep.mubr.msk.bf16.mxu0 %vm924_vm1, %v2943_v56  ;;  %v2921_v50 = vmax.f32 %v2889_v6, 0.0  ;;  %v4099_v12 = vpop.f32.mrf.mxu0 }
 0x2e7   : > { %v2890_v34 = vadd.f32 %v6055_v36, %v2851_v20  ;;  %v3937_v25 = vpop.f32.mrf.mxu1  ;;  %v2797_v1 = vpop.f32.mrf.mxu0 }
 0x2e8   : > { %v3938_v7 = vadd.f32 %v3937_v25, %v3936_v33 }
 0x2e9   : > { %v2922_v51 = vmax.f32 %v2890_v34, 0.0  ;;  %v3939_v58 = vpop.f32.mrf.mxu1  ;;  %v4102_v3 = vpop.f32.mrf.mxu0 }
 0x2ea   : > { %v2779_v19 = vadd.f32 %v3938_v7, %v2778_v32 }
 0x2eb   : > { %v3940_v55 = vpop.f32.mrf.mxu1  ;;  %v2944_v8 = vpack.c.bf16 %v2922_v51, %v2921_v50  ;;  %v2810_v20 = vpop.f32.mrf.mxu0 }
 0x2ec   : > { %v2852_v53 = vmul.f32 %v6049_v46, %v2779_v19  ;;  %v3941_v2 = vadd.f32 %v3940_v55, %v3939_v58 }
 0x2ed   : > { %4125 = vmatmul.mubr.msk.bf16.gmra.mxu0 %vm924_vm1, %v2944_v8  ;;  %v4103_v51 = vpop.f32.mrf.mxu0 }
 0x2ee   : > { %v2782_v4 = vadd.f32 %v3941_v2, %v2781_v38  ;;  %v3942_v10 = vpop.f32.mrf.mxu1  ;;  %v2891_v13 = vadd.f32 %v6055_v36, %v2852_v53 }
 0x2f0   : > { %v2853_v35 = vmul.f32 %v6049_v46, %v2782_v4  ;;  %v3943_v37 = vpop.f32.mrf.mxu1  ;;  %v2923_v22 = vmax.f32 %v2891_v13, 0.0  ;;  %v2813_v4 = vpop.f32.mrf.mxu0 }
 0x2f1   : > { %v3944_v54 = vadd.f32 %v3943_v37, %v3942_v10 }
 0x2f2   : > { %v2892_v59 = vadd.f32 %v6055_v36, %v2853_v35  ;;  %v3945_v24 = vpop.f32.mrf.mxu1 }
 0x2f3   : > { %v2787_v29 = vadd.f32 %v4094_v5, %v3944_v54 }
 0x2f4   : > { %v2924_v52 = vmax.f32 %v2892_v59, 0.0  ;;  %v3946_v57 = vpop.f32.mrf.mxu1 }
 0x2f5   : > { %v2854_v11 = vmul.f32 %v6049_v46, %v2787_v29  ;;  %v3947_v47 = vadd.f32 %v3946_v57, %v3945_v24 }
 0x2f6   : > { %v2945_v44 = vpack.c.bf16 %v2924_v52, %v2923_v22 }
 0x2f7   : > { %v2790_v60 = vadd.f32 %v4095_v26, %v3947_v47  ;;  %v2893_v61 = vadd.f32 %v6055_v36, %v2854_v11 }
 0x2f8   : > { %4128 = vmatprep.mubr.msk.bf16.mxu0 %vm924_vm1, %v2945_v44 }
 0x2f9   : > { %v3948_v43 = vpop.f32.mrf.mxu1  ;;  %v2855_v9 = vmul.f32 %v6049_v46, %v2790_v60  ;;  %v2925_v16 = vmax.f32 %v2893_v61, 0.0 }
 0x2fb   : > { %v3949_v49 = vpop.f32.mrf.mxu1  ;;  %v2894_v40 = vadd.f32 %v6055_v36, %v2855_v9 }
 0x2fc   : > { %v3950_v30 = vadd.f32 %v3949_v49, %v3948_v43 }
 0x2fd   : > { %v3951_v48 = vpop.f32.mrf.mxu1  ;;  %v2926_v21 = vmax.f32 %v2894_v40, 0.0 }
 0x2fe   : > { %v2795_v31 = vadd.f32 %v3950_v30, %v2794_v39 }
 0x2ff   : > { %v3952_v0 = vpop.f32.mrf.mxu1  ;;  %v2946_v15 = vpack.c.bf16 %v2926_v21, %v2925_v16 }
 0x300   : > { %v2856_v14 = vmul.f32 %v6049_v46, %v2795_v31  ;;  %v3953_v17 = vadd.f32 %v3952_v0, %v3951_v48 }
 0x301   : > { %4129 = vmatmul.mubr.msk.bf16.gmra.mxu0 %vm924_vm1, %v2946_v15 }
 0x302   : > { %v2798_v42 = vadd.f32 %v3953_v17, %v2797_v1  ;;  %v3954_v45 = vpop.f32.mrf.mxu1  ;;  %v2895_v63 = vadd.f32 %v6055_v36, %v2856_v14  ;;  %v6153_v14 = vld [vmem:[%s6394_s11] ss:$0 sm:$0xff] }
 0x304   : > { %v2857_v62 = vmul.f32 %v6049_v46, %v2798_v42  ;;  %v3955_v5 = vpop.f32.mrf.mxu1  ;;  %v2927_v27 = vmax.f32 %v2895_v63, 0.0  ;;  %v6170_v63 = vld [vmem:[%s6392_s9] ss:$0 sm:$0xff] }
 0x305   : > { %v3956_v23 = vadd.f32 %v3955_v5, %v3954_v45 }
 0x306   : > { %v2896_v28 = vadd.f32 %v6055_v36, %v2857_v62  ;;  %v3957_v41 = vpop.f32.mrf.mxu1 }
 0x307   : > { %v2803_v32 = vadd.f32 %v4098_v18, %v3956_v23 }
 0x308   : > { %v2928_v56 = vmax.f32 %v2896_v28, 0.0  ;;  %v3958_v6 = vpop.f32.mrf.mxu1 }
 0x309   : > { %v2858_v33 = vmul.f32 %v6049_v46, %v2803_v32  ;;  %v3959_v34 = vadd.f32 %v3958_v6, %v3957_v41 }
 0x30a   : > { %v2947_v25 = vpack.c.bf16 %v2928_v56, %v2927_v27  ;;  %v3960_v7 = vpop.f32.mrf.mxu1 }
 0x30b   : > { %v2806_v26 = vadd.f32 %v4099_v12, %v3959_v34  ;;  %v2897_v58 = vadd.f32 %v6055_v36, %v2858_v33 }
 0x30c   : > { %4132 = vmatprep.mubr.msk.bf16.mxu0 %vm924_vm1, %v2947_v25  ;;  %v3961_v50 = vpop.f32.mrf.mxu1 }
 0x30d   : > { %v2859_v19 = vmul.f32 %v6049_v46, %v2806_v26  ;;  %v3962_v55 = vadd.f32 %v3961_v50, %v3960_v7  ;;  %v2929_v10 = vmax.f32 %v2897_v58, 0.0 }
 0x30e   : > { %v3963_v8 = vpop.f32.mrf.mxu1 }
 0x30f   : > { %v2898_v53 = vadd.f32 %v6055_v36, %v2859_v19  ;;  %v2811_v2 = vadd.f32 %v3962_v55, %v2810_v20 }
 0x310   : > { %v3964_v38 = vpop.f32.mrf.mxu1 }
 0x311   : > { %v2930_v13 = vmax.f32 %v2898_v53, 0.0  ;;  %v2860_v35 = vmul.f32 %v6049_v46, %v2811_v2  ;;  %v3965_v37 = vadd.f32 %v3964_v38, %v3963_v8 }
 0x313   : > { %v2814_v59 = vadd.f32 %v3965_v37, %v2813_v4  ;;  %v2948_v54 = vpack.c.bf16 %v2930_v13, %v2929_v10  ;;  %v2899_v22 = vadd.f32 %v6055_v36, %v2860_v35 }
 0x315   : > { %v3966_v24 = vpop.f32.mrf.mxu1  ;;  %v2861_v52 = vmul.f32 %v6049_v46, %v2814_v59  ;;  %4133 = vmatmul.mubr.msk.bf16.gmra.mxu0 %vm924_vm1, %v2948_v54  ;;  %v2931_v47 = vmax.f32 %v2899_v22, 0.0 }
 0x317   : > { %v3967_v29 = vpop.f32.mrf.mxu1  ;;  %v2900_v18 = vadd.f32 %v6055_v36, %v2861_v52 }
 0x318   : > { %v3968_v57 = vadd.f32 %v3967_v29, %v3966_v24 }
 0x319   : > { %v3969_v11 = vpop.f32.mrf.mxu1  ;;  %v2932_v44 = vmax.f32 %v2900_v18, 0.0 }
 0x31a   : > { %v2819_v60 = vadd.f32 %v4102_v3, %v3968_v57 }
 0x31b   : > { %v3970_v39 = vpop.f32.mrf.mxu1  ;;  %v2949_v43 = vpack.c.bf16 %v2932_v44, %v2931_v47 }
 0x31c   : > { %v2862_v61 = vmul.f32 %v6049_v46, %v2819_v60  ;;  %v3971_v9 = vadd.f32 %v3970_v39, %v3969_v11 }
 0x31d   : > { %4136 = vmatprep.mubr.msk.bf16.mxu0 %vm924_vm1, %v2949_v43  ;;  %v4150_v31 = vpop.f32.mrf.mxu1 }
 0x31e   : > { %v2822_v49 = vadd.f32 %v4103_v51, %v3971_v9  ;;  %v2901_v40 = vadd.f32 %v6055_v36, %v2862_v61  ;;  %v3456_v15 = vmul.f32 %v4150_v31, %v6153_v14 }
 0x31f   : > { %v3320_v0 = vpop.f32.mrf.mxu1 }
 0x320   : > { %v2863_v30 = vmul.f32 %v6049_v46, %v2822_v49  ;;  %v2933_v48 = vmax.f32 %v2901_v40, 0.0  ;;  %v6159_v46 = vld [vmem:[%s6391_s8] ss:$0 sm:$0xff]  ;;  %v3454_v1 = vmul.f32 %v6153_v14, %v3320_v0 }
 0x321   : > { %v4151_v17 = vpop.f32.mrf.mxu1 }
 0x322   : > { %v2902_v12 = vadd.f32 %v6055_v36, %v2863_v30  ;;  %v6164_v36 = vld [vmem:[%s6395_s12] ss:$0 sm:$0xff]  ;;  %v3457_v3 = vmul.f32 %v4151_v17, %v6153_v14 }
 0x323   : > { %v3323_v42 = vpop.f32.mrf.mxu1  ;;  %v3495_v5 = vadd.f32 %v6164_v36, %v3456_v15  ;;  %v3493_v56 = vadd.f32 %v6164_v36, %v3454_v1 }
 0x324   : > { %v2934_v16 = vmax.f32 %v2902_v12, 0.0  ;;  %v3455_v23 = vmul.f32 %v6153_v14, %v3323_v42  ;;  %v3496_v34 = vadd.f32 %v6164_v36, %v3457_v3 }
 0x325   : > { %v4154_v53 = vpop.f32.mrf.mxu1 }
 0x326   : > { %v2950_v21 = vpack.c.bf16 %v2934_v16, %v2933_v48  ;;  %v3494_v7 = vadd.f32 %v6164_v36, %v3455_v23  ;;  %v3460_v35 = vmul.f32 %v4154_v53, %v6153_v14 }
 0x327   : > { %v3336_v10 = vpop.f32.mrf.mxu1 }
 0x328   : > { %4137 = vmatmul.mubr.msk.bf16.gmra.mxu0 %vm924_vm1, %v2950_v21  ;;  %v3458_v37 = vmul.f32 %v6153_v14, %v3336_v10  ;;  %v3499_v22 = vadd.f32 %v6164_v36, %v3460_v35 }
 0x329   : > { %v4155_v13 = vpop.f32.mrf.mxu1 }
 0x32a   : > { %v3461_v52 = vmul.f32 %v4155_v13, %v6153_v14  ;;  %v3497_v47 = vadd.f32 %v6164_v36, %v3458_v37 }
 0x32b   : > { %v3339_v59 = vpop.f32.mrf.mxu1 }
 0x32c   : > { %v3459_v18 = vmul.f32 %v6153_v14, %v3339_v59  ;;  %v3500_v61 = vadd.f32 %v6164_v36, %v3461_v52 }
 0x32d   : > { %v4158_v15 = vpop.f32.mrf.mxu1 }
 0x32e   : > { %v3498_v49 = vadd.f32 %v6164_v36, %v3459_v18 }
 0x32f   : > { %v3352_v42 = vpop.f32.mrf.mxu1 }
 0x34e   : > { %v4110_v45 = vpop.f32.mrf.mxu0 }
 0x34f   : > { %v3185_v62 = vmul.f32 %v4110_v45, %v6159_v46  ;;  %v4159_v45 = vpop.f32.mrf.mxu1 }
 0x350   : > { %v3049_v28 = vpop.f32.mrf.mxu0 }
 0x351   : > { %v3224_v41 = vadd.f32 %v6170_v63, %v3185_v62  ;;  %v3183_v27 = vmul.f32 %v6159_v46, %v3049_v28  ;;  %v3464_v62 = vmul.f32 %v4158_v15, %v6153_v14  ;;  %v3355_v3 = vpop.f32.mrf.mxu1 }
 0x352   : > { %v4111_v32 = vpop.f32.mrf.mxu0 }
 0x353   : > { %v3527_v6 = vadd.f32 %v3495_v5, %v3224_v41  ;;  %v3222_v20 = vadd.f32 %v6170_v63, %v3183_v27  ;;  %v3186_v33 = vmul.f32 %v4111_v32, %v6159_v46  ;;  %v3462_v5 = vmul.f32 %v6153_v14, %v3352_v42  ;;  %v4162_v37 = vpop.f32.mrf.mxu1 }
 0x354   : > { %v3052_v25 = vpop.f32.mrf.mxu0  ;;  %v3503_v41 = vadd.f32 %v6164_v36, %v3464_v62  ;;  %v3465_v27 = vmul.f32 %v4159_v45, %v6153_v14  ;;  %v3463_v32 = vmul.f32 %v6153_v14, %v3355_v3 }
 0x355   : > { %v3559_v26 = vmax.f32 %v3527_v6, 0.0  ;;  %v3525_v50 = vadd.f32 %v3493_v56, %v3222_v20  ;;  %v3225_v51 = vadd.f32 %v6170_v63, %v3186_v33  ;;  %v3184_v58 = vmul.f32 %v6159_v46, %v3052_v25  ;;  %v3368_v59 = vpop.f32.mrf.mxu1 }
 0x356   : > { %v3501_v33 = vadd.f32 %v6164_v36, %v3462_v5 }
 0x357   : > { %3591 = vst [vmem:[%s6186_s21 + $0x10] sm:$0xff] %v3559_v26  ;;  %v3557_v19 = vmax.f32 %v3525_v50, 0.0  ;;  %v3528_v55 = vadd.f32 %v3496_v34, %v3225_v51  ;;  %v3223_v8 = vadd.f32 %v6170_v63, %v3184_v58  ;;  %v3504_v50 = vadd.f32 %v6164_v36, %v3465_v27 }
 0x358   : > { %v3502_v58 = vadd.f32 %v6164_v36, %v3463_v32 }
 0x359   : > { %3589 = vst [vmem:[%s6186_s21] sm:$0xff] %v3557_v19  ;;  %v3560_v2 = vmax.f32 %v3528_v55, 0.0  ;;  %v3526_v38 = vadd.f32 %v3494_v7, %v3223_v8 }
 0x35b   : > { %3592 = vst [vmem:[%s6186_s21 + $0x18] sm:$0xff] %v3560_v2  ;;  %v3558_v4 = vmax.f32 %v3526_v38, 0.0 }
 0x35d   : > { %3590 = vst [vmem:[%s6186_s21 + $0x8] sm:$0xff] %v3558_v4 }
 0x364   : > { %v4114_v54 = vpop.f32.mrf.mxu0 }
 0x365   : > { %v3189_v24 = vmul.f32 %v4114_v54, %v6159_v46  ;;  %v4163_v54 = vpop.f32.mrf.mxu1 }
 0x366   : > { %v3065_v29 = vpop.f32.mrf.mxu0 }
 0x367   : > { %v3228_v57 = vadd.f32 %v6170_v63, %v3189_v24  ;;  %v3187_v11 = vmul.f32 %v6159_v46, %v3065_v29  ;;  %v3468_v24 = vmul.f32 %v4162_v37, %v6153_v14  ;;  %v3371_v52 = vpop.f32.mrf.mxu1 }
 0x368   : > { %v4115_v44 = vpop.f32.mrf.mxu0 }
 0x369   : > { %v3531_v60 = vadd.f32 %v3499_v22, %v3228_v57  ;;  %v3226_v39 = vadd.f32 %v6170_v63, %v3187_v11  ;;  %v3190_v43 = vmul.f32 %v4115_v44, %v6159_v46  ;;  %v3466_v22 = vmul.f32 %v6153_v14, %v3368_v59 }
 0x36a   : > { %v3068_v9 = vpop.f32.mrf.mxu0  ;;  %v3507_v57 = vadd.f32 %v6164_v36, %v3468_v24  ;;  %v3469_v11 = vmul.f32 %v4163_v54, %v6153_v14  ;;  %v3467_v44 = vmul.f32 %v6153_v14, %v3371_v52 }
 0x36b   : > { %v3563_v40 = vmax.f32 %v3531_v60, 0.0  ;;  %v3529_v30 = vadd.f32 %v3497_v47, %v3226_v39  ;;  %v3229_v12 = vadd.f32 %v6170_v63, %v3190_v43  ;;  %v3188_v48 = vmul.f32 %v6159_v46, %v3068_v9 }
 0x36c   : > { %v3505_v43 = vadd.f32 %v6164_v36, %v3466_v22 }
 0x36d   : > { %3595 = vst [vmem:[%s6186_s21 + $0x30] sm:$0xff] %v3563_v40  ;;  %v3561_v16 = vmax.f32 %v3529_v30, 0.0  ;;  %v3532_v21 = vadd.f32 %v3500_v61, %v3229_v12  ;;  %v3227_v31 = vadd.f32 %v6170_v63, %v3188_v48  ;;  %v4166_v61 = vpop.f32.mrf.mxu1  ;;  %v3508_v12 = vadd.f32 %v6164_v36, %v3469_v11 }
 0x36f   : > { %3593 = vst [vmem:[%s6186_s21 + $0x20] sm:$0xff] %v3561_v16  ;;  %v3564_v0 = vmax.f32 %v3532_v21, 0.0  ;;  %v3530_v17 = vadd.f32 %v3498_v49, %v3227_v31  ;;  %v3506_v16 = vadd.f32 %v6164_v36, %v3467_v44  ;;  %v3384_v15 = vpop.f32.mrf.mxu1 }
 0x371   : > { %3596 = vst [vmem:[%s6186_s21 + $0x38] sm:$0xff] %v3564_v0  ;;  %v3562_v1 = vmax.f32 %v3530_v17, 0.0  ;;  %v4167_v3 = vpop.f32.mrf.mxu1 }
 0x373   : > { %3594 = vst [vmem:[%s6186_s21 + $0x28] sm:$0xff] %v3562_v1  ;;  %v3387_v27 = vpop.f32.mrf.mxu1 }
 0x37c   : > { %v4118_v28 = vpop.f32.mrf.mxu0 }
 0x37d   : > { %v3193_v23 = vmul.f32 %v4118_v28, %v6159_v46 }
 0x37e   : > { %v3081_v56 = vpop.f32.mrf.mxu0 }
 0x37f   : > { %v3232_v6 = vadd.f32 %v6170_v63, %v3193_v23  ;;  %v3191_v20 = vmul.f32 %v6159_v46, %v3081_v56  ;;  %v3472_v23 = vmul.f32 %v4166_v61, %v6153_v14 }
 0x380   : > { %v4119_v34 = vpop.f32.mrf.mxu0 }
 0x381   : > { %v3535_v25 = vadd.f32 %v3503_v41, %v3232_v6  ;;  %v3230_v7 = vadd.f32 %v6170_v63, %v3191_v20  ;;  %v3194_v26 = vmul.f32 %v4119_v34, %v6159_v46  ;;  %v3470_v41 = vmul.f32 %v6153_v14, %v3384_v15 }
 0x382   : > { %v3084_v51 = vpop.f32.mrf.mxu0  ;;  %v3511_v6 = vadd.f32 %v6164_v36, %v3472_v23  ;;  %v3473_v20 = vmul.f32 %v4167_v3, %v6153_v14  ;;  %v3471_v34 = vmul.f32 %v6153_v14, %v3387_v27 }
 0x383   : > { %v3567_v19 = vmax.f32 %v3535_v25, 0.0  ;;  %v3533_v55 = vadd.f32 %v3501_v33, %v3230_v7  ;;  %v3233_v8 = vadd.f32 %v6170_v63, %v3194_v26  ;;  %v3192_v53 = vmul.f32 %v6159_v46, %v3084_v51 }
 0x384   : > { %v3509_v26 = vadd.f32 %v6164_v36, %v3470_v41 }
 0x385   : > { %3599 = vst [vmem:[%s6186_s21 + $0x50] sm:$0xff] %v3567_v19  ;;  %v3565_v2 = vmax.f32 %v3533_v55, 0.0  ;;  %v3536_v38 = vadd.f32 %v3504_v50, %v3233_v8  ;;  %v3231_v4 = vadd.f32 %v6170_v63, %v3192_v53  ;;  %v3512_v55 = vadd.f32 %v6164_v36, %v3473_v20 }
 0x386   : > { %v3510_v53 = vadd.f32 %v6164_v36, %v3471_v34 }
 0x387   : > { %3597 = vst [vmem:[%s6186_s21 + $0x40] sm:$0xff] %v3565_v2  ;;  %v3568_v10 = vmax.f32 %v3536_v38, 0.0  ;;  %v3534_v13 = vadd.f32 %v3502_v58, %v3231_v4 }
 0x389   : > { %3600 = vst [vmem:[%s6186_s21 + $0x58] sm:$0xff] %v3568_v10  ;;  %v3566_v35 = vmax.f32 %v3534_v13, 0.0  ;;  %v4170_v13 = vpop.f32.mrf.mxu1 }
 0x38b   : > { %3598 = vst [vmem:[%s6186_s21 + $0x48] sm:$0xff] %v3566_v35  ;;  %v3400_v22 = vpop.f32.mrf.mxu1 }
 0x39d   : > { %v4122_v29 = vpop.f32.mrf.mxu0 }
 0x39e   : > { %v3197_v18 = vmul.f32 %v4122_v29, %v6159_v46  ;;  %v4171_v29 = vpop.f32.mrf.mxu1 }
 0x39f   : > { %v3097_v47 = vpop.f32.mrf.mxu0 }
 0x3a0   : > { %v3236_v60 = vadd.f32 %v6170_v63, %v3197_v18  ;;  %v3195_v39 = vmul.f32 %v6159_v46, %v3097_v47  ;;  %v3476_v18 = vmul.f32 %v4170_v13, %v6153_v14  ;;  %v3403_v11 = vpop.f32.mrf.mxu1 }
 0x3a1   : > { %v4123_v9 = vpop.f32.mrf.mxu0  ;;  %v3475_v61 = vmul.f32 %v6153_v14, %v3403_v11 }
 0x3a2   : > { %v3539_v49 = vadd.f32 %v3507_v57, %v3236_v60  ;;  %v3234_v40 = vadd.f32 %v6170_v63, %v3195_v39  ;;  %v3198_v30 = vmul.f32 %v4123_v9, %v6159_v46  ;;  %v3474_v57 = vmul.f32 %v6153_v14, %v3400_v22 }
 0x3a3   : > { %v3100_v48 = vpop.f32.mrf.mxu0  ;;  %v3515_v60 = vadd.f32 %v6164_v36, %v3476_v18  ;;  %v3477_v39 = vmul.f32 %v4171_v29, %v6153_v14 }
 0x3a4   : > { %v3571_v21 = vmax.f32 %v3539_v49, 0.0  ;;  %v3537_v31 = vadd.f32 %v3505_v43, %v3234_v40  ;;  %v3237_v0 = vadd.f32 %v6170_v63, %v3198_v30  ;;  %v3196_v17 = vmul.f32 %v6159_v46, %v3100_v48 }
 0x3a5   : > { %v3513_v40 = vadd.f32 %v6164_v36, %v3474_v57 }
 0x3a6   : > { %3603 = vst [vmem:[%s6186_s21 + $0x70] sm:$0xff] %v3571_v21  ;;  %v3569_v1 = vmax.f32 %v3537_v31, 0.0  ;;  %v3540_v42 = vadd.f32 %v3508_v12, %v3237_v0  ;;  %v3235_v45 = vadd.f32 %v6170_v63, %v3196_v17  ;;  %v3516_v21 = vadd.f32 %v6164_v36, %v3477_v39 }
 0x3a7   : > { %v3514_v0 = vadd.f32 %v6164_v36, %v3475_v61 }
 0x3a8   : > { %3601 = vst [vmem:[%s6186_s21 + $0x60] sm:$0xff] %v3569_v1  ;;  %v3572_v62 = vmax.f32 %v3540_v42, 0.0  ;;  %v3538_v5 = vadd.f32 %v3506_v16, %v3235_v45  ;;  %v4174_v45 = vpop.f32.mrf.mxu1 }
 0x3aa   : > { %3604 = vst [vmem:[%s6186_s21 + $0x78] sm:$0xff] %v3572_v62  ;;  %v3570_v28 = vmax.f32 %v3538_v5, 0.0  ;;  %v3416_v41 = vpop.f32.mrf.mxu1 }
 0x3ac   : > { %3602 = vst [vmem:[%s6186_s21 + $0x68] sm:$0xff] %v3570_v28 }
 0x3ad   : > { %v4126_v56 = vpop.f32.mrf.mxu0 }
 0x3ae   : > { %v3201_v32 = vmul.f32 %v4126_v56, %v6159_v46  ;;  %v4175_v56 = vpop.f32.mrf.mxu1 }
 0x3af   : > { %v3113_v33 = vpop.f32.mrf.mxu0 }
 0x3b0   : > { %v3240_v25 = vadd.f32 %v6170_v63, %v3201_v32  ;;  %v3199_v7 = vmul.f32 %v6159_v46, %v3113_v33  ;;  %v3480_v32 = vmul.f32 %v4174_v45, %v6153_v14  ;;  %v3419_v20 = vpop.f32.mrf.mxu1 }
 0x3b1   : > { %v4127_v50 = vpop.f32.mrf.mxu0 }
 0x3b2   : > { %v3543_v51 = vadd.f32 %v3511_v6, %v3240_v25  ;;  %v3238_v58 = vadd.f32 %v6170_v63, %v3199_v7  ;;  %v3202_v19 = vmul.f32 %v4127_v50, %v6159_v46  ;;  %v3478_v6 = vmul.f32 %v6153_v14, %v3416_v41 }
 0x3b3   : > { %v3116_v8 = vpop.f32.mrf.mxu0  ;;  %v3519_v25 = vadd.f32 %v6164_v36, %v3480_v32  ;;  %v3481_v7 = vmul.f32 %v4175_v56, %v6153_v14  ;;  %v3479_v50 = vmul.f32 %v6153_v14, %v3419_v20 }
 0x3b4   : > { %v3575_v2 = vmax.f32 %v3543_v51, 0.0  ;;  %v3541_v38 = vadd.f32 %v3509_v26, %v3238_v58  ;;  %v3241_v4 = vadd.f32 %v6170_v63, %v3202_v19  ;;  %v3200_v10 = vmul.f32 %v6159_v46, %v3116_v8 }
 0x3b5   : > { %v3517_v19 = vadd.f32 %v6164_v36, %v3478_v6 }
 0x3b6   : > { %3607 = vst [vmem:[%s6186_s21 + $0x90] sm:$0xff] %v3575_v2  ;;  %v3573_v35 = vmax.f32 %v3541_v38, 0.0  ;;  %v3544_v37 = vadd.f32 %v3512_v55, %v3241_v4  ;;  %v3239_v59 = vadd.f32 %v6170_v63, %v3200_v10  ;;  %v3520_v38 = vadd.f32 %v6164_v36, %v3481_v7 }
 0x3b7   : > { %v3518_v10 = vadd.f32 %v6164_v36, %v3479_v50 }
 0x3b8   : > { %3605 = vst [vmem:[%s6186_s21 + $0x80] sm:$0xff] %v3573_v35  ;;  %v3576_v54 = vmax.f32 %v3544_v37, 0.0  ;;  %v3542_v24 = vadd.f32 %v3510_v53, %v3239_v59 }
 0x3ba   : > { %3608 = vst [vmem:[%s6186_s21 + $0x98] sm:$0xff] %v3576_v54  ;;  %v3574_v52 = vmax.f32 %v3542_v24, 0.0  ;;  %v4178_v54 = vpop.f32.mrf.mxu1 }
 0x3bc   : > { %3606 = vst [vmem:[%s6186_s21 + $0x88] sm:$0xff] %v3574_v52  ;;  %v3432_v57 = vpop.f32.mrf.mxu1 }
 0x3c1   : > { %v4130_v47 = vpop.f32.mrf.mxu0 }
 0x3c2   : > { %v3205_v44 = vmul.f32 %v4130_v47, %v6159_v46  ;;  %v3484_v47 = vmul.f32 %v4178_v54, %v6153_v14 }
 0x3c3   : > { %v3129_v43 = vpop.f32.mrf.mxu0 }
 0x3c4   : > { %v3244_v9 = vadd.f32 %v6170_v63, %v3205_v44  ;;  %v3203_v49 = vmul.f32 %v6159_v46, %v3129_v43  ;;  %v4179_v44 = vpop.f32.mrf.mxu1  ;;  %v3523_v43 = vadd.f32 %v6164_v36, %v3484_v47 }
 0x3c5   : > { %v4131_v30 = vpop.f32.mrf.mxu0 }
 0x3c6   : > { %v3547_v12 = vadd.f32 %v3515_v60, %v3244_v9  ;;  %v3242_v48 = vadd.f32 %v6170_v63, %v3203_v49  ;;  %v3206_v16 = vmul.f32 %v4131_v30, %v6159_v46  ;;  %v3482_v60 = vmul.f32 %v6153_v14, %v3432_v57  ;;  %v3435_v49 = vpop.f32.mrf.mxu1 }
 0x3c7   : > { %v3132_v31 = vpop.f32.mrf.mxu0  ;;  %v3485_v9 = vmul.f32 %v4179_v44, %v6153_v14 }
 0x3c8   : > { %v3579_v17 = vmax.f32 %v3547_v12, 0.0  ;;  %v3545_v15 = vadd.f32 %v3513_v40, %v3242_v48  ;;  %v3245_v1 = vadd.f32 %v6170_v63, %v3206_v16  ;;  %v3204_v42 = vmul.f32 %v6159_v46, %v3132_v31 }
 0x3c9   : > { %v3521_v48 = vadd.f32 %v6164_v36, %v3482_v60  ;;  %v3483_v31 = vmul.f32 %v6153_v14, %v3435_v49 }
 0x3ca   : > { %3611 = vst [vmem:[%s6186_s21 + $0xb0] sm:$0xff] %v3579_v17  ;;  %v3577_v62 = vmax.f32 %v3545_v15, 0.0  ;;  %v3548_v5 = vadd.f32 %v3516_v21, %v3245_v1  ;;  %v3243_v3 = vadd.f32 %v6170_v63, %v3204_v42  ;;  %v3524_v15 = vadd.f32 %v6164_v36, %v3485_v9 }
 0x3cb   : > { %v3522_v14 = vadd.f32 %v6164_v36, %v3483_v31 }
 0x3cc   : > { %3609 = vst [vmem:[%s6186_s21 + $0xa0] sm:$0xff] %v3577_v62  ;;  %v3580_v28 = vmax.f32 %v3548_v5, 0.0  ;;  %v3546_v23 = vadd.f32 %v3514_v0, %v3243_v3 }
 0x3ce   : > { %3612 = vst [vmem:[%s6186_s21 + $0xb8] sm:$0xff] %v3580_v28  ;;  %v3578_v27 = vmax.f32 %v3546_v23, 0.0 }
 0x3d0   : > { %3610 = vst [vmem:[%s6186_s21 + $0xa8] sm:$0xff] %v3578_v27 }
 0x3d5   : > { %v4134_v33 = vpop.f32.mrf.mxu0 }
 0x3d6   : > { %v3209_v34 = vmul.f32 %v4134_v33, %v6159_v46 }
 0x3d7   : > { %v3145_v26 = vpop.f32.mrf.mxu0 }
 0x3d8   : > { %v3248_v51 = vadd.f32 %v6170_v63, %v3209_v34  ;;  %v3207_v58 = vmul.f32 %v6159_v46, %v3145_v26 }
 0x3d9   : > { %v4135_v55 = vpop.f32.mrf.mxu0 }
 0x3da   : > { %v3551_v8 = vadd.f32 %v3519_v25, %v3248_v51  ;;  %v3246_v53 = vadd.f32 %v6170_v63, %v3207_v58  ;;  %v3210_v2 = vmul.f32 %v4135_v55, %v6159_v46 }
 0x3db   : > { %v3148_v4 = vpop.f32.mrf.mxu0 }
 0x3dc   : > { %v3583_v13 = vmax.f32 %v3551_v8, 0.0  ;;  %v3549_v35 = vadd.f32 %v3517_v19, %v3246_v53  ;;  %v3249_v37 = vadd.f32 %v6170_v63, %v3210_v2  ;;  %v3208_v59 = vmul.f32 %v6159_v46, %v3148_v4 }
 0x3de   : > { %3615 = vst [vmem:[%s6186_s21 + $0xd0] sm:$0xff] %v3583_v13  ;;  %v3581_v24 = vmax.f32 %v3549_v35, 0.0  ;;  %v3552_v22 = vadd.f32 %v3520_v38, %v3249_v37  ;;  %v3247_v52 = vadd.f32 %v6170_v63, %v3208_v59 }
 0x3e0   : > { %3613 = vst [vmem:[%s6186_s21 + $0xc0] sm:$0xff] %v3581_v24  ;;  %v3584_v29 = vmax.f32 %v3552_v22, 0.0  ;;  %v3550_v18 = vadd.f32 %v3518_v10, %v3247_v52 }
 0x3e2   : > { %3616 = vst [vmem:[%s6186_s21 + $0xd8] sm:$0xff] %v3584_v29  ;;  %v3582_v11 = vmax.f32 %v3550_v18, 0.0 }
 0x3e4   : > { %3614 = vst [vmem:[%s6186_s21 + $0xc8] sm:$0xff] %v3582_v11 }
 0x3e8   : > { %v4138_v39 = vpop.f32.mrf.mxu0 }
 0x3e9   : > { %v3213_v61 = vmul.f32 %v4138_v39, %v6159_v46 }
 0x3ea   : > { %v3161_v40 = vpop.f32.mrf.mxu0 }
 0x3eb   : > { %v3252_v30 = vadd.f32 %v6170_v63, %v3213_v61  ;;  %v3211_v12 = vmul.f32 %v6159_v46, %v3161_v40 }
 0x3ec   : > { %v4139_v16 = vpop.f32.mrf.mxu0 }
 0x3ed   : > { %v3555_v21 = vadd.f32 %v3523_v43, %v3252_v30  ;;  %v3250_v0 = vadd.f32 %v6170_v63, %v3211_v12  ;;  %v3214_v17 = vmul.f32 %v4139_v16, %v6159_v46 }
 0x3ee   : > { %v3164_v1 = vpop.f32.mrf.mxu0 }
 0x3ef   : > { %v3587_v42 = vmax.f32 %v3555_v21, 0.0  ;;  %v3553_v45 = vadd.f32 %v3521_v48, %v3250_v0  ;;  %v3253_v62 = vadd.f32 %v6170_v63, %v3214_v17  ;;  %v3212_v5 = vmul.f32 %v6159_v46, %v3164_v1 }
 0x3f1   : > { %3619 = vst [vmem:[%s6186_s21 + $0xf0] sm:$0xff] %v3587_v42  ;;  %v3585_v3 = vmax.f32 %v3553_v45, 0.0  ;;  %v3556_v28 = vadd.f32 %v3524_v15, %v3253_v62  ;;  %v3251_v23 = vadd.f32 %v6170_v63, %v3212_v5 }
 0x3f3   : > { %3617 = vst [vmem:[%s6186_s21 + $0xe0] sm:$0xff] %v3585_v3  ;;  %v3588_v41 = vmax.f32 %v3556_v28, 0.0  ;;  %v3554_v27 = vadd.f32 %v3522_v14, %v3251_v23 }
 0x3f5   : > { %3620 = vst [vmem:[%s6186_s21 + $0xf8] sm:$0xff] %v3588_v41  ;;  %v3586_v46 = vmax.f32 %v3554_v27, 0.0 }
 0x3f7   : > { %3618 = vst [vmem:[%s6186_s21 + $0xe8] sm:$0xff] %v3586_v46 }
 0x3f8   : > { %4831 = shalt.err (!%p4828_p10)
}
 0x3f9   : > { %s4832_s18 = scalar_lea.hbm %s6336_s17, 4096  ;;  %s4836_s25 = scalar_lea.hbm %s6420_s14, 8192 }
 0x3fa   : > { %p4833_p0 = scmp.ne.s32.totalorder %s6336_s17, %s4832_s18  ;;  %p4837_p1 = scmp.lt.s32.totalorder %s6336_s17, %s6420_s14 }
 0x3fb   : > { %p4838_p3 = scmp.lt.s32.totalorder %s4836_s25, %s4832_s18 }
 0x3fc   : > { %p4834_p2 = pnand %p4833_p0, %p6421_p12 }
 0x3fd   : > { %p4839_p6 = por %p4838_p3, %p4837_p1 }
 0x3fe   : > { %p4835_p9 = pneg %p4834_p2 }
 0x400   : > { %p4840_p11 = pnand %p4839_p6, %p4835_p9 }
 0x402   : > { %4843 = shalt.err (!%p4840_p11)
}
 0x403   : > { %s4892_s19 = smov 128   ;;  %s4893_s29 = smov 8  }
 0x404   : > { %4198 = dma.vmem_to_hbm [thread:$0]  (%p6421_p12), %s6338_s22, 4096, %s6336_s17, %s3622_s30, %s4892_s19, %s4892_s19, %s4893_s29  }
 0x405 PF: > { %s6422_s23 = sld [smem:[#allocation9_spill]]  ;;  %p6425_p4 = scmp.ge.s32.totalorder %s4882_s28, 2 }
 0x406   : > { %s6423_s24 = sld [smem:[#allocation13_spill]] }
 0x40b   : > { %s3650_s21 = sand.u32 1, %s6422_s23  }
 0x40c   : > { %p6424_p13 = scmp.ne.s32.totalorder %s6423_s24, 0  ;;  %s3651_s18 = scalar_lea.sflag [#allocation5], %s3650_s21 }
 0x40e   : > { %p4205_p5 = pnand %p6425_p4, %p6424_p13 }
 0x410   : > { %p4206_p7 = pneg %p4205_p5 }
 0x412   : > { %4865 = dma.done.wait (%p4206_p7), %s3651_s18, 4096  }
 0x413   : > { %4867 = vsyncadd (%p4206_p7), %s3651_s18, 4294963200  ;;  %s6426_s28 = sld [smem:[#allocation11_spill]]  ;;  %s6429_s25 = smov %s4874_s26 }
 0x414   : > { %s6427_s15 = sld [smem:[#allocation10_spill]] }
 0x415   : > { %s6428_s27 = sld [smem:[#allocation12_spill]] }
 0x419   : > { %p26_p8 = scmp.ge.s32.totalorder %s6426_s28, 4  }
 0x41a   : > { %s6430_s26 = smov %s6427_s15 }
 0x41b   :  { %28 = sbr.rel (!%p26_p8) target bundleno = 7 (0x7), region = 119 }
 0x420   :  { %3656 = vsyncpa [#allocation4], 1 }
 0x421   :  { %3658 = vsyncpa [#allocation4 + $0x1], 1 }
 0x422   :  { %3659 = vsyncpa [#allocation5], 1 }
 0x423   :  { %3661 = vsyncpa [#allocation5 + $0x1], 1 }

</bundles_post_ra>
